<compile_context>
chip_gen: v6e
topology: v6e:2x2x1
jax: 0.10.0
libtpu: 0.0.40
codegen_flags: <defaults>
</compile_context>

<pallas_src>
import numpy as np
import jax
import jax.numpy as jnp
from jax.experimental import pallas as pl
from jax.experimental.pallas import tpu as pltpu


_VMEM = pl.BlockSpec(memory_space=pltpu.MemorySpace.VMEM)


# ---------------------------------------------------------------------------
# Fused Pallas kernel: biLSTM(layer1) -> biLSTM(layer2) -> Linear(+Sigmoid)
# ---------------------------------------------------------------------------
def fused_cat_lstm(x_flat, T, B, wi1, wh1f, wh1b, b1,
                   wi2, wh2f, wh2b, b2, head_w, head_b):
    """x_flat: (T*B, D) time-major-flattened embeddings.

    wi1: (D, 8*H1)    fwd|bwd input weights concatenated along gates
    wh1f/wh1b: (H1, 4*H1) recurrent weights, b1: (1, 8*H1) combined biases
    wi2: (2*H1, 8*H2), wh2f/wh2b: (H2, 4*H2), b2: (1, 8*H2)
    head_w: (2*H2, out_dim), head_b: (1, out_dim)
    Returns (B, out_dim).
    """
    H1 = wh1f.shape[0]
    H2 = wh2f.shape[0]
    out_dim = head_w.shape[1]
    apply_sigmoid = out_dim < 2     # (nn.Sigmoid, nn.Identity)[out_dim >= 2]

    def kernel(x_ref, wi1_ref, wh1f_ref, wh1b_ref, b1_ref,
               wi2_ref, wh2f_ref, wh2b_ref, b2_ref,
               hw_ref, hb_ref, out_ref, o1_s):
        f32 = jnp.float32

        def act(gates, c, H):
            # One full-width sigmoid + one full-width tanh (2 EUP passes),
            # then static lane slices.  Gate order: i, f, g, o.
            sg = jax.nn.sigmoid(gates)
            tg = jnp.tanh(gates)
            i_g = sg[:, 0 * H:1 * H]
            f_g = sg[:, 1 * H:2 * H]
            g_g = tg[:, 2 * H:3 * H]
            o_g = sg[:, 3 * H:4 * H]
            c_new = f_g * c + i_g * g_g
            h_new = o_g * jnp.tanh(c_new)
            return h_new, c_new

        # ---------------- layer 1 (self.rnn) ----------------
        # Hoisted input projection: one (T*B, D) x (D, 8*H1) matmul.
        gin1 = jnp.dot(x_ref[...], wi1_ref[...],
                       preferred_element_type=f32) + b1_ref[...]
        gin1_f = gin1[:, :4 * H1]
        gin1_b = gin1[:, 4 * H1:]
        w1f = wh1f_ref[...]
        w1b = wh1b_ref[...]

        z1 = jnp.zeros((B, H1), f32)
        h1f, c1f, h1b, c1b = z1, z1, z1, z1
        for t in range(T):                      # unrolled; fwd/bwd interleaved
            tb = T - 1 - t
            gf = gin1_f[t * B:(t + 1) * B, :] + jnp.dot(
                h1f, w1f, preferred_element_type=f32)
            gb = gin1_b[tb * B:(tb + 1) * B, :] + jnp.dot(
                h1b, w1b, preferred_element_type=f32)
            h1f, c1f = act(gf, c1f, H1)
            h1b, c1b = act(gb, c1b, H1)
            # layer-1 output stays in VMEM scratch (lane-dense 2*H1 rows)
            o1_s[t * B:(t + 1) * B, 0:H1] = h1f
            o1_s[tb * B:(tb + 1) * B, H1:2 * H1] = h1b

        # ---------------- layer 2 (self.lstm) ----------------
        gin2 = jnp.dot(o1_s[...], wi2_ref[...],
                       preferred_element_type=f32) + b2_ref[...]
        gin2_f = gin2[:, :4 * H2]
        gin2_b = gin2[:, 4 * H2:]
        w2f = wh2f_ref[...]
        w2b = wh2b_ref[...]

        z2 = jnp.zeros((B, H2), f32)
        h2f, c2f, h2b, c2b = z2, z2, z2, z2
        for t in range(T):
            tb = T - 1 - t
            gf = gin2_f[t * B:(t + 1) * B, :] + jnp.dot(
                h2f, w2f, preferred_element_type=f32)
            gb = gin2_b[tb * B:(tb + 1) * B, :] + jnp.dot(
                h2b, w2b, preferred_element_type=f32)
            h2f, c2f = act(gf, c2f, H2)
            h2b, c2b = act(gb, c2b, H2)
        # No per-timestep stores: only o[:, -1, :H2] (= final fwd hidden) and
        # o[:, 0, H2:] (= final bwd hidden) are consumed.

        # ---------------- head (self.linear_layers_new) ----------------
        feat = jnp.concatenate([h2f, h2b], axis=-1)          # (B, 2*H2)
        y = jnp.dot(feat, hw_ref[...],
                    preferred_element_type=f32) + hb_ref[...]
        out_ref[...] = jax.nn.sigmoid(y) if apply_sigmoid else y

    return pl.pallas_call(
        kernel,
        out_shape=jax.ShapeDtypeStruct((B, out_dim), jnp.float32),
        in_specs=[_VMEM] * 11,
        out_specs=_VMEM,
        scratch_shapes=[pltpu.VMEM((T * B, 2 * H1), jnp.float32)],
    )(x_flat, wi1, wh1f, wh1b, b1, wi2, wh2f, wh2b, b2, head_w, head_b)


# ---------------------------------------------------------------------------
# Model: parameter init + forward
# ---------------------------------------------------------------------------
def init_params(key, vocab=50, in_dim=16, hidden_size=32, out_dim=1):
    H1, H2 = hidden_size, 32  # second LSTM hidden size is hard-coded to 32
    ks = jax.random.split(key, 16)

    def u(k, shape, h):
        s = 1.0 / np.sqrt(h)
        return jax.random.uniform(k, shape, jnp.float32, -s, s)

    emb_table = jax.random.normal(ks[0], (vocab, in_dim), jnp.float32) * 0.1

    # layer 1 (self.rnn): in_dim -> H1, bidirectional; gate order (i, f, g, o)
    rnn = (u(ks[1], (in_dim, 4 * H1), H1), u(ks[2], (H1, 4 * H1), H1),
           u(ks[3], (1, 4 * H1), H1),
           u(ks[4], (in_dim, 4 * H1), H1), u(ks[5], (H1, 4 * H1), H1),
           u(ks[6], (1, 4 * H1), H1))
    # layer 2 (self.lstm): 2*H1 -> H2=32, bidirectional
    lstm = (u(ks[7], (2 * H1, 4 * H2), H2), u(ks[8], (H2, 4 * H2), H2),
            u(ks[9], (1, 4 * H2), H2),
            u(ks[10], (2 * H1, 4 * H2), H2), u(ks[11], (H2, 4 * H2), H2),
            u(ks[12], (1, 4 * H2), H2))
    # head: Linear(2*32 -> out_dim), xavier_normal weight, uniform bias
    fan_in, fan_out = 2 * H2, out_dim
    xav = np.sqrt(2.0 / (fan_in + fan_out))
    head_w = jax.random.normal(ks[13], (fan_in, fan_out), jnp.float32) * xav
    head_b = u(ks[14], (1, fan_out), fan_in)
    return dict(emb_table=emb_table, rnn=rnn, lstm=lstm,
                head_w=head_w, head_b=head_b)


@jax.jit
def cat_transfer_lstm_forward(samples, params):
    # embeddings.get_embeddings(samples) -> (B, T, in_dim), batch-first (glue)
    emb = jnp.take(params["emb_table"], samples, axis=0)
    x = jnp.transpose(emb, (1, 0, 2))               # (T, B, D), time-major
    T, B, D = x.shape
    x_flat = x.reshape(T * B, D)

    # Concatenate fwd|bwd input weights / biases along the gate axis so the
    # kernel can hoist one big input-projection matmul per layer.
    wi_f, wh_f, b_f, wi_b, wh_b, b_b = params["rnn"]
    wi1 = jnp.concatenate([wi_f, wi_b], axis=1)     # (D, 8*H1)
    b1 = jnp.concatenate([b_f, b_b], axis=1)        # (1, 8*H1)

    wi_f2, wh_f2, b_f2, wi_b2, wh_b2, b_b2 = params["lstm"]
    wi2 = jnp.concatenate([wi_f2, wi_b2], axis=1)   # (2*H1, 8*H2)
    b2 = jnp.concatenate([b_f2, b_b2], axis=1)      # (1, 8*H2)

    return fused_cat_lstm(x_flat, T, B, wi1, wh_f, wh_b, b1,
                          wi2, wh_f2, wh_b2, b2,
                          params["head_w"], params["head_b"])


# ---------------------------------------------------------------------------
# Pure-JAX reference (same math) for a correctness check
# ---------------------------------------------------------------------------
def _lstm_dir_ref(x, wi, wh, b, reverse):
    T, B, _ = x.shape
    H = wh.shape[0]
    h = jnp.zeros((B, H), jnp.float32)
    c = jnp.zeros((B, H), jnp.float32)
    out = jnp.zeros((T, B, H), jnp.float32)
    order = range(T - 1, -1, -1) if reverse else range(T)
    for t in order:
        g = x[t] @ wi + h @ wh + b
        i = jax.nn.sigmoid(g[:, :H]); f = jax.nn.sigmoid(g[:, H:2 * H])
        gg = jnp.tanh(g[:, 2 * H:3 * H]); o = jax.nn.sigmoid(g[:, 3 * H:])
        c = f * c + i * gg
        h = o * jnp.tanh(c)
        out = out.at[t].set(h)
    return out


def reference_forward(samples, params):
    emb = jnp.take(params["emb_table"], samples, axis=0)
    x = jnp.transpose(emb, (1, 0, 2))
    wi_f, wh_f, b_f, wi_b, wh_b, b_b = params["rnn"]
    of1 = _lstm_dir_ref(x, wi_f, wh_f, b_f, False)
    ob1 = _lstm_dir_ref(x, wi_b, wh_b, b_b, True)
    x2 = jnp.concatenate([of1, ob1], axis=-1)
    wi_f, wh_f, b_f, wi_b, wh_b, b_b = params["lstm"]
    of2 = _lstm_dir_ref(x2, wi_f, wh_f, b_f, False)
    ob2 = _lstm_dir_ref(x2, wi_b, wh_b, b_b, True)
    feat = jnp.concatenate([of2[-1], ob2[0]], axis=-1)
    return jax.nn.sigmoid(feat @ params["head_w"] + params["head_b"])


# ---------------------------------------------------------------------------
if __name__ == "__main__":
    B, T = 2, 8
    VOCAB, IN_DIM, HIDDEN, OUT_DIM = 50, 16, 32, 1

    key = jax.random.PRNGKey(0)
    k_samples, k_params = jax.random.split(key)
    samples = jax.random.randint(k_samples, (B, T), 0, VOCAB, jnp.int32)
    params = init_params(k_params, vocab=VOCAB, in_dim=IN_DIM,
                         hidden_size=HIDDEN, out_dim=OUT_DIM)

    out = jax.block_until_ready(cat_transfer_lstm_forward(samples, params))
    ref = jax.block_until_ready(reference_forward(samples, params))

    assert out.shape == (B, OUT_DIM)
    assert bool(jnp.all(jnp.isfinite(out)))
    np.testing.assert_allclose(np.asarray(out), np.asarray(ref),
                               rtol=2e-2, atol=2e-2)

    print("KERNEL_OK")
</pallas_src>

<mosaic_0001>
module attributes {stable_mosaic.version = 11 : i64} {
  func.func @kernel(%arg0: memref<16x16xf32, #tpu.memory_space<vmem>>, %arg1: memref<16x256xf32, #tpu.memory_space<vmem>>, %arg2: memref<32x128xf32, #tpu.memory_space<vmem>>, %arg3: memref<32x128xf32, #tpu.memory_space<vmem>>, %arg4: memref<1x256xf32, #tpu.memory_space<vmem>>, %arg5: memref<64x256xf32, #tpu.memory_space<vmem>>, %arg6: memref<32x128xf32, #tpu.memory_space<vmem>>, %arg7: memref<32x128xf32, #tpu.memory_space<vmem>>, %arg8: memref<1x256xf32, #tpu.memory_space<vmem>>, %arg9: memref<64x1xf32, #tpu.memory_space<vmem>>, %arg10: memref<1x1xf32, #tpu.memory_space<vmem>>, %arg11: memref<2x1xf32, #tpu.memory_space<vmem>>, %arg12: memref<16x64xf32, #tpu.memory_space<vmem>>) attributes {dimension_semantics = [], scalar_prefetch = 0 : i64, scratch_operands = 1 : i64, tpu.core_type = #tpu.core_type<tc>} {
    %c0 = arith.constant 0 : index
    %c0_0 = arith.constant 0 : index
    %0 = vector.load %arg0[%c0, %c0_0] : memref<16x16xf32, #tpu.memory_space<vmem>>, vector<16x16xf32>
    %c0_1 = arith.constant 0 : index
    %c0_2 = arith.constant 0 : index
    %1 = vector.load %arg1[%c0_1, %c0_2] : memref<16x256xf32, #tpu.memory_space<vmem>>, vector<16x256xf32>
    %cst = arith.constant dense<0.000000e+00> : vector<16x256xf32>
    %2 = tpu.matmul %0, %1, %cst {dimension_numbers = #tpu.dot_dimension_numbers<[1], [0], [0], [1], [0, 0, 1, 1], [], []>} : vector<16x16xf32>, vector<16x256xf32>, vector<16x256xf32> -> vector<16x256xf32>
    %c0_3 = arith.constant 0 : index
    %c0_4 = arith.constant 0 : index
    %3 = vector.load %arg4[%c0_3, %c0_4] : memref<1x256xf32, #tpu.memory_space<vmem>>, vector<1x256xf32>
    %4 = vector.broadcast %3 : vector<1x256xf32> to vector<16x256xf32>
    %5 = arith.addf %2, %4 : vector<16x256xf32>
    %6 = vector.extract_strided_slice %5 {offsets = [0, 0], sizes = [16, 128], strides = [1, 1]} : vector<16x256xf32> to vector<16x128xf32>
    %7 = vector.extract_strided_slice %5 {offsets = [0, 128], sizes = [16, 128], strides = [1, 1]} : vector<16x256xf32> to vector<16x128xf32>
    %c0_5 = arith.constant 0 : index
    %c0_6 = arith.constant 0 : index
    %8 = vector.load %arg2[%c0_5, %c0_6] : memref<32x128xf32, #tpu.memory_space<vmem>>, vector<32x128xf32>
    %c0_7 = arith.constant 0 : index
    %c0_8 = arith.constant 0 : index
    %9 = vector.load %arg3[%c0_7, %c0_8] : memref<32x128xf32, #tpu.memory_space<vmem>>, vector<32x128xf32>
    %cst_9 = arith.constant 0.000000e+00 : f32
    %10 = vector.broadcast %cst_9 : f32 to vector<2x32xf32>
    %11 = vector.extract_strided_slice %6 {offsets = [0, 0], sizes = [2, 128], strides = [1, 1]} : vector<16x128xf32> to vector<2x128xf32>
    %cst_10 = arith.constant dense<0.000000e+00> : vector<2x128xf32>
    %12 = tpu.matmul %10, %8, %cst_10 {dimension_numbers = #tpu.dot_dimension_numbers<[1], [0], [0], [1], [0, 0, 1, 1], [], []>} : vector<2x32xf32>, vector<32x128xf32>, vector<2x128xf32> -> vector<2x128xf32>
    %13 = arith.addf %11, %12 : vector<2x128xf32>
    %14 = vector.extract_strided_slice %7 {offsets = [14, 0], sizes = [2, 128], strides = [1, 1]} : vector<16x128xf32> to vector<2x128xf32>
    %cst_11 = arith.constant dense<0.000000e+00> : vector<2x128xf32>
    %15 = tpu.matmul %10, %9, %cst_11 {dimension_numbers = #tpu.dot_dimension_numbers<[1], [0], [0], [1], [0, 0, 1, 1], [], []>} : vector<2x32xf32>, vector<32x128xf32>, vector<2x128xf32> -> vector<2x128xf32>
    %16 = arith.addf %14, %15 : vector<2x128xf32>
    %17 = arith.negf %13 : vector<2x128xf32>
    %18 = math.exp %17 : vector<2x128xf32>
    %cst_12 = arith.constant 1.000000e+00 : f32
    %19 = vector.broadcast %cst_12 : f32 to vector<2x128xf32>
    %20 = arith.addf %19, %18 : vector<2x128xf32>
    %21 = arith.divf %19, %20 : vector<2x128xf32>
    %22 = math.tanh %13 : vector<2x128xf32>
    %23 = vector.extract_strided_slice %21 {offsets = [0, 0], sizes = [2, 32], strides = [1, 1]} : vector<2x128xf32> to vector<2x32xf32>
    %24 = vector.extract_strided_slice %21 {offsets = [0, 32], sizes = [2, 32], strides = [1, 1]} : vector<2x128xf32> to vector<2x32xf32>
    %25 = vector.extract_strided_slice %22 {offsets = [0, 64], sizes = [2, 32], strides = [1, 1]} : vector<2x128xf32> to vector<2x32xf32>
    %26 = vector.extract_strided_slice %21 {offsets = [0, 96], sizes = [2, 32], strides = [1, 1]} : vector<2x128xf32> to vector<2x32xf32>
    %27 = arith.mulf %24, %10 : vector<2x32xf32>
    %28 = arith.mulf %23, %25 : vector<2x32xf32>
    %29 = arith.addf %27, %28 : vector<2x32xf32>
    %30 = math.tanh %29 : vector<2x32xf32>
    %31 = arith.mulf %26, %30 : vector<2x32xf32>
    %32 = arith.negf %16 : vector<2x128xf32>
    %33 = math.exp %32 : vector<2x128xf32>
    %cst_13 = arith.constant 1.000000e+00 : f32
    %34 = vector.broadcast %cst_13 : f32 to vector<2x128xf32>
    %35 = arith.addf %34, %33 : vector<2x128xf32>
    %36 = arith.divf %34, %35 : vector<2x128xf32>
    %37 = math.tanh %16 : vector<2x128xf32>
    %38 = vector.extract_strided_slice %36 {offsets = [0, 0], sizes = [2, 32], strides = [1, 1]} : vector<2x128xf32> to vector<2x32xf32>
    %39 = vector.extract_strided_slice %36 {offsets = [0, 32], sizes = [2, 32], strides = [1, 1]} : vector<2x128xf32> to vector<2x32xf32>
    %40 = vector.extract_strided_slice %37 {offsets = [0, 64], sizes = [2, 32], strides = [1, 1]} : vector<2x128xf32> to vector<2x32xf32>
    %41 = vector.extract_strided_slice %36 {offsets = [0, 96], sizes = [2, 32], strides = [1, 1]} : vector<2x128xf32> to vector<2x32xf32>
    %42 = arith.mulf %39, %10 : vector<2x32xf32>
    %43 = arith.mulf %38, %40 : vector<2x32xf32>
    %44 = arith.addf %42, %43 : vector<2x32xf32>
    %45 = math.tanh %44 : vector<2x32xf32>
    %46 = arith.mulf %41, %45 : vector<2x32xf32>
    %c0_14 = arith.constant 0 : index
    %c0_15 = arith.constant 0 : index
    %47 = vector.load %arg12[%c0_14, %c0_15] : memref<16x64xf32, #tpu.memory_space<vmem>>, vector<2x32xf32>
    tpu.vector_store %arg12[%c0_14, %c0_15], %31 {strides = array<i32>} : memref<16x64xf32, #tpu.memory_space<vmem>>, vector<2x32xf32>,
    %c14 = arith.constant 14 : index
    %c32 = arith.constant 32 : index
    %48 = vector.load %arg12[%c14, %c32] : memref<16x64xf32, #tpu.memory_space<vmem>>, vector<2x32xf32>
    tpu.vector_store %arg12[%c14, %c32], %46 {strides = array<i32>} : memref<16x64xf32, #tpu.memory_space<vmem>>, vector<2x32xf32>,
    %49 = vector.extract_strided_slice %6 {offsets = [2, 0], sizes = [2, 128], strides = [1, 1]} : vector<16x128xf32> to vector<2x128xf32>
    %cst_16 = arith.constant dense<0.000000e+00> : vector<2x128xf32>
    %50 = tpu.matmul %31, %8, %cst_16 {dimension_numbers = #tpu.dot_dimension_numbers<[1], [0], [0], [1], [0, 0, 1, 1], [], []>} : vector<2x32xf32>, vector<32x128xf32>, vector<2x128xf32> -> vector<2x128xf32>
    %51 = arith.addf %49, %50 : vector<2x128xf32>
    %52 = vector.extract_strided_slice %7 {offsets = [12, 0], sizes = [2, 128], strides = [1, 1]} : vector<16x128xf32> to vector<2x128xf32>
    %cst_17 = arith.constant dense<0.000000e+00> : vector<2x128xf32>
    %53 = tpu.matmul %46, %9, %cst_17 {dimension_numbers = #tpu.dot_dimension_numbers<[1], [0], [0], [1], [0, 0, 1, 1], [], []>} : vector<2x32xf32>, vector<32x128xf32>, vector<2x128xf32> -> vector<2x128xf32>
    %54 = arith.addf %52, %53 : vector<2x128xf32>
    %55 = arith.negf %51 : vector<2x128xf32>
    %56 = math.exp %55 : vector<2x128xf32>
    %cst_18 = arith.constant 1.000000e+00 : f32
    %57 = vector.broadcast %cst_18 : f32 to vector<2x128xf32>
    %58 = arith.addf %57, %56 : vector<2x128xf32>
    %59 = arith.divf %57, %58 : vector<2x128xf32>
    %60 = math.tanh %51 : vector<2x128xf32>
    %61 = vector.extract_strided_slice %59 {offsets = [0, 0], sizes = [2, 32], strides = [1, 1]} : vector<2x128xf32> to vector<2x32xf32>
    %62 = vector.extract_strided_slice %59 {offsets = [0, 32], sizes = [2, 32], strides = [1, 1]} : vector<2x128xf32> to vector<2x32xf32>
    %63 = vector.extract_strided_slice %60 {offsets = [0, 64], sizes = [2, 32], strides = [1, 1]} : vector<2x128xf32> to vector<2x32xf32>
    %64 = vector.extract_strided_slice %59 {offsets = [0, 96], sizes = [2, 32], strides = [1, 1]} : vector<2x128xf32> to vector<2x32xf32>
    %65 = arith.mulf %62, %29 : vector<2x32xf32>
    %66 = arith.mulf %61, %63 : vector<2x32xf32>
    %67 = arith.addf %65, %66 : vector<2x32xf32>
    %68 = math.tanh %67 : vector<2x32xf32>
    %69 = arith.mulf %64, %68 : vector<2x32xf32>
    %70 = arith.negf %54 : vector<2x128xf32>
    %71 = math.exp %70 : vector<2x128xf32>
    %cst_19 = arith.constant 1.000000e+00 : f32
    %72 = vector.broadcast %cst_19 : f32 to vector<2x128xf32>
    %73 = arith.addf %72, %71 : vector<2x128xf32>
    %74 = arith.divf %72, %73 : vector<2x128xf32>
    %75 = math.tanh %54 : vector<2x128xf32>
    %76 = vector.extract_strided_slice %74 {offsets = [0, 0], sizes = [2, 32], strides = [1, 1]} : vector<2x128xf32> to vector<2x32xf32>
    %77 = vector.extract_strided_slice %74 {offsets = [0, 32], sizes = [2, 32], strides = [1, 1]} : vector<2x128xf32> to vector<2x32xf32>
    %78 = vector.extract_strided_slice %75 {offsets = [0, 64], sizes = [2, 32], strides = [1, 1]} : vector<2x128xf32> to vector<2x32xf32>
    %79 = vector.extract_strided_slice %74 {offsets = [0, 96], sizes = [2, 32], strides = [1, 1]} : vector<2x128xf32> to vector<2x32xf32>
    %80 = arith.mulf %77, %44 : vector<2x32xf32>
    %81 = arith.mulf %76, %78 : vector<2x32xf32>
    %82 = arith.addf %80, %81 : vector<2x32xf32>
    %83 = math.tanh %82 : vector<2x32xf32>
    %84 = arith.mulf %79, %83 : vector<2x32xf32>
    %c2 = arith.constant 2 : index
    %c0_20 = arith.constant 0 : index
    %85 = vector.load %arg12[%c2, %c0_20] : memref<16x64xf32, #tpu.memory_space<vmem>>, vector<2x32xf32>
    tpu.vector_store %arg12[%c2, %c0_20], %69 {strides = array<i32>} : memref<16x64xf32, #tpu.memory_space<vmem>>, vector<2x32xf32>,
    %c12 = arith.constant 12 : index
    %c32_21 = arith.constant 32 : index
    %86 = vector.load %arg12[%c12, %c32_21] : memref<16x64xf32, #tpu.memory_space<vmem>>, vector<2x32xf32>
    tpu.vector_store %arg12[%c12, %c32_21], %84 {strides = array<i32>} : memref<16x64xf32, #tpu.memory_space<vmem>>, vector<2x32xf32>,
    %87 = vector.extract_strided_slice %6 {offsets = [4, 0], sizes = [2, 128], strides = [1, 1]} : vector<16x128xf32> to vector<2x128xf32>
    %cst_22 = arith.constant dense<0.000000e+00> : vector<2x128xf32>
    %88 = tpu.matmul %69, %8, %cst_22 {dimension_numbers = #tpu.dot_dimension_numbers<[1], [0], [0], [1], [0, 0, 1, 1], [], []>} : vector<2x32xf32>, vector<32x128xf32>, vector<2x128xf32> -> vector<2x128xf32>
    %89 = arith.addf %87, %88 : vector<2x128xf32>
    %90 = vector.extract_strided_slice %7 {offsets = [10, 0], sizes = [2, 128], strides = [1, 1]} : vector<16x128xf32> to vector<2x128xf32>
    %cst_23 = arith.constant dense<0.000000e+00> : vector<2x128xf32>
    %91 = tpu.matmul %84, %9, %cst_23 {dimension_numbers = #tpu.dot_dimension_numbers<[1], [0], [0], [1], [0, 0, 1, 1], [], []>} : vector<2x32xf32>, vector<32x128xf32>, vector<2x128xf32> -> vector<2x128xf32>
    %92 = arith.addf %90, %91 : vector<2x128xf32>
    %93 = arith.negf %89 : vector<2x128xf32>
    %94 = math.exp %93 : vector<2x128xf32>
    %cst_24 = arith.constant 1.000000e+00 : f32
    %95 = vector.broadcast %cst_24 : f32 to vector<2x128xf32>
    %96 = arith.addf %95, %94 : vector<2x128xf32>
    %97 = arith.divf %95, %96 : vector<2x128xf32>
    %98 = math.tanh %89 : vector<2x128xf32>
    %99 = vector.extract_strided_slice %97 {offsets = [0, 0], sizes = [2, 32], strides = [1, 1]} : vector<2x128xf32> to vector<2x32xf32>
    %100 = vector.extract_strided_slice %97 {offsets = [0, 32], sizes = [2, 32], strides = [1, 1]} : vector<2x128xf32> to vector<2x32xf32>
    %101 = vector.extract_strided_slice %98 {offsets = [0, 64], sizes = [2, 32], strides = [1, 1]} : vector<2x128xf32> to vector<2x32xf32>
    %102 = vector.extract_strided_slice %97 {offsets = [0, 96], sizes = [2, 32], strides = [1, 1]} : vector<2x128xf32> to vector<2x32xf32>
    %103 = arith.mulf %100, %67 : vector<2x32xf32>
    %104 = arith.mulf %99, %101 : vector<2x32xf32>
    %105 = arith.addf %103, %104 : vector<2x32xf32>
    %106 = math.tanh %105 : vector<2x32xf32>
    %107 = arith.mulf %102, %106 : vector<2x32xf32>
    %108 = arith.negf %92 : vector<2x128xf32>
    %109 = math.exp %108 : vector<2x128xf32>
    %cst_25 = arith.constant 1.000000e+00 : f32
    %110 = vector.broadcast %cst_25 : f32 to vector<2x128xf32>
    %111 = arith.addf %110, %109 : vector<2x128xf32>
    %112 = arith.divf %110, %111 : vector<2x128xf32>
    %113 = math.tanh %92 : vector<2x128xf32>
    %114 = vector.extract_strided_slice %112 {offsets = [0, 0], sizes = [2, 32], strides = [1, 1]} : vector<2x128xf32> to vector<2x32xf32>
    %115 = vector.extract_strided_slice %112 {offsets = [0, 32], sizes = [2, 32], strides = [1, 1]} : vector<2x128xf32> to vector<2x32xf32>
    %116 = vector.extract_strided_slice %113 {offsets = [0, 64], sizes = [2, 32], strides = [1, 1]} : vector<2x128xf32> to vector<2x32xf32>
    %117 = vector.extract_strided_slice %112 {offsets = [0, 96], sizes = [2, 32], strides = [1, 1]} : vector<2x128xf32> to vector<2x32xf32>
    %118 = arith.mulf %115, %82 : vector<2x32xf32>
    %119 = arith.mulf %114, %116 : vector<2x32xf32>
    %120 = arith.addf %118, %119 : vector<2x32xf32>
    %121 = math.tanh %120 : vector<2x32xf32>
    %122 = arith.mulf %117, %121 : vector<2x32xf32>
    %c4 = arith.constant 4 : index
    %c0_26 = arith.constant 0 : index
    %123 = vector.load %arg12[%c4, %c0_26] : memref<16x64xf32, #tpu.memory_space<vmem>>, vector<2x32xf32>
    tpu.vector_store %arg12[%c4, %c0_26], %107 {strides = array<i32>} : memref<16x64xf32, #tpu.memory_space<vmem>>, vector<2x32xf32>,
    %c10 = arith.constant 10 : index
    %c32_27 = arith.constant 32 : index
    %124 = vector.load %arg12[%c10, %c32_27] : memref<16x64xf32, #tpu.memory_space<vmem>>, vector<2x32xf32>
    tpu.vector_store %arg12[%c10, %c32_27], %122 {strides = array<i32>} : memref<16x64xf32, #tpu.memory_space<vmem>>, vector<2x32xf32>,
    %125 = vector.extract_strided_slice %6 {offsets = [6, 0], sizes = [2, 128], strides = [1, 1]} : vector<16x128xf32> to vector<2x128xf32>
    %cst_28 = arith.constant dense<0.000000e+00> : vector<2x128xf32>
    %126 = tpu.matmul %107, %8, %cst_28 {dimension_numbers = #tpu.dot_dimension_numbers<[1], [0], [0], [1], [0, 0, 1, 1], [], []>} : vector<2x32xf32>, vector<32x128xf32>, vector<2x128xf32> -> vector<2x128xf32>
    %127 = arith.addf %125, %126 : vector<2x128xf32>
    %128 = vector.extract_strided_slice %7 {offsets = [8, 0], sizes = [2, 128], strides = [1, 1]} : vector<16x128xf32> to vector<2x128xf32>
    %cst_29 = arith.constant dense<0.000000e+00> : vector<2x128xf32>
    %129 = tpu.matmul %122, %9, %cst_29 {dimension_numbers = #tpu.dot_dimension_numbers<[1], [0], [0], [1], [0, 0, 1, 1], [], []>} : vector<2x32xf32>, vector<32x128xf32>, vector<2x128xf32> -> vector<2x128xf32>
    %130 = arith.addf %128, %129 : vector<2x128xf32>
    %131 = arith.negf %127 : vector<2x128xf32>
    %132 = math.exp %131 : vector<2x128xf32>
    %cst_30 = arith.constant 1.000000e+00 : f32
    %133 = vector.broadcast %cst_30 : f32 to vector<2x128xf32>
    %134 = arith.addf %133, %132 : vector<2x128xf32>
    %135 = arith.divf %133, %134 : vector<2x128xf32>
    %136 = math.tanh %127 : vector<2x128xf32>
    %137 = vector.extract_strided_slice %135 {offsets = [0, 0], sizes = [2, 32], strides = [1, 1]} : vector<2x128xf32> to vector<2x32xf32>
    %138 = vector.extract_strided_slice %135 {offsets = [0, 32], sizes = [2, 32], strides = [1, 1]} : vector<2x128xf32> to vector<2x32xf32>
    %139 = vector.extract_strided_slice %136 {offsets = [0, 64], sizes = [2, 32], strides = [1, 1]} : vector<2x128xf32> to vector<2x32xf32>
    %140 = vector.extract_strided_slice %135 {offsets = [0, 96], sizes = [2, 32], strides = [1, 1]} : vector<2x128xf32> to vector<2x32xf32>
    %141 = arith.mulf %138, %105 : vector<2x32xf32>
    %142 = arith.mulf %137, %139 : vector<2x32xf32>
    %143 = arith.addf %141, %142 : vector<2x32xf32>
    %144 = math.tanh %143 : vector<2x32xf32>
    %145 = arith.mulf %140, %144 : vector<2x32xf32>
    %146 = arith.negf %130 : vector<2x128xf32>
    %147 = math.exp %146 : vector<2x128xf32>
    %cst_31 = arith.constant 1.000000e+00 : f32
    %148 = vector.broadcast %cst_31 : f32 to vector<2x128xf32>
    %149 = arith.addf %148, %147 : vector<2x128xf32>
    %150 = arith.divf %148, %149 : vector<2x128xf32>
    %151 = math.tanh %130 : vector<2x128xf32>
    %152 = vector.extract_strided_slice %150 {offsets = [0, 0], sizes = [2, 32], strides = [1, 1]} : vector<2x128xf32> to vector<2x32xf32>
    %153 = vector.extract_strided_slice %150 {offsets = [0, 32], sizes = [2, 32], strides = [1, 1]} : vector<2x128xf32> to vector<2x32xf32>
    %154 = vector.extract_strided_slice %151 {offsets = [0, 64], sizes = [2, 32], strides = [1, 1]} : vector<2x128xf32> to vector<2x32xf32>
    %155 = vector.extract_strided_slice %150 {offsets = [0, 96], sizes = [2, 32], strides = [1, 1]} : vector<2x128xf32> to vector<2x32xf32>
    %156 = arith.mulf %153, %120 : vector<2x32xf32>
    %157 = arith.mulf %152, %154 : vector<2x32xf32>
    %158 = arith.addf %156, %157 : vector<2x32xf32>
    %159 = math.tanh %158 : vector<2x32xf32>
    %160 = arith.mulf %155, %159 : vector<2x32xf32>
    %c6 = arith.constant 6 : index
    %c0_32 = arith.constant 0 : index
    %161 = vector.load %arg12[%c6, %c0_32] : memref<16x64xf32, #tpu.memory_space<vmem>>, vector<2x32xf32>
    tpu.vector_store %arg12[%c6, %c0_32], %145 {strides = array<i32>} : memref<16x64xf32, #tpu.memory_space<vmem>>, vector<2x32xf32>,
    %c8 = arith.constant 8 : index
    %c32_33 = arith.constant 32 : index
    %162 = vector.load %arg12[%c8, %c32_33] : memref<16x64xf32, #tpu.memory_space<vmem>>, vector<2x32xf32>
    tpu.vector_store %arg12[%c8, %c32_33], %160 {strides = array<i32>} : memref<16x64xf32, #tpu.memory_space<vmem>>, vector<2x32xf32>,
    %163 = vector.extract_strided_slice %6 {offsets = [8, 0], sizes = [2, 128], strides = [1, 1]} : vector<16x128xf32> to vector<2x128xf32>
    %cst_34 = arith.constant dense<0.000000e+00> : vector<2x128xf32>
    %164 = tpu.matmul %145, %8, %cst_34 {dimension_numbers = #tpu.dot_dimension_numbers<[1], [0], [0], [1], [0, 0, 1, 1], [], []>} : vector<2x32xf32>, vector<32x128xf32>, vector<2x128xf32> -> vector<2x128xf32>
    %165 = arith.addf %163, %164 : vector<2x128xf32>
    %166 = vector.extract_strided_slice %7 {offsets = [6, 0], sizes = [2, 128], strides = [1, 1]} : vector<16x128xf32> to vector<2x128xf32>
    %cst_35 = arith.constant dense<0.000000e+00> : vector<2x128xf32>
    %167 = tpu.matmul %160, %9, %cst_35 {dimension_numbers = #tpu.dot_dimension_numbers<[1], [0], [0], [1], [0, 0, 1, 1], [], []>} : vector<2x32xf32>, vector<32x128xf32>, vector<2x128xf32> -> vector<2x128xf32>
    %168 = arith.addf %166, %167 : vector<2x128xf32>
    %169 = arith.negf %165 : vector<2x128xf32>
    %170 = math.exp %169 : vector<2x128xf32>
    %cst_36 = arith.constant 1.000000e+00 : f32
    %171 = vector.broadcast %cst_36 : f32 to vector<2x128xf32>
    %172 = arith.addf %171, %170 : vector<2x128xf32>
    %173 = arith.divf %171, %172 : vector<2x128xf32>
    %174 = math.tanh %165 : vector<2x128xf32>
    %175 = vector.extract_strided_slice %173 {offsets = [0, 0], sizes = [2, 32], strides = [1, 1]} : vector<2x128xf32> to vector<2x32xf32>
    %176 = vector.extract_strided_slice %173 {offsets = [0, 32], sizes = [2, 32], strides = [1, 1]} : vector<2x128xf32> to vector<2x32xf32>
    %177 = vector.extract_strided_slice %174 {offsets = [0, 64], sizes = [2, 32], strides = [1, 1]} : vector<2x128xf32> to vector<2x32xf32>
    %178 = vector.extract_strided_slice %173 {offsets = [0, 96], sizes = [2, 32], strides = [1, 1]} : vector<2x128xf32> to vector<2x32xf32>
    %179 = arith.mulf %176, %143 : vector<2x32xf32>
    %180 = arith.mulf %175, %177 : vector<2x32xf32>
    %181 = arith.addf %179, %180 : vector<2x32xf32>
    %182 = math.tanh %181 : vector<2x32xf32>
    %183 = arith.mulf %178, %182 : vector<2x32xf32>
    %184 = arith.negf %168 : vector<2x128xf32>
    %185 = math.exp %184 : vector<2x128xf32>
    %cst_37 = arith.constant 1.000000e+00 : f32
    %186 = vector.broadcast %cst_37 : f32 to vector<2x128xf32>
    %187 = arith.addf %186, %185 : vector<2x128xf32>
    %188 = arith.divf %186, %187 : vector<2x128xf32>
    %189 = math.tanh %168 : vector<2x128xf32>
    %190 = vector.extract_strided_slice %188 {offsets = [0, 0], sizes = [2, 32], strides = [1, 1]} : vector<2x128xf32> to vector<2x32xf32>
    %191 = vector.extract_strided_slice %188 {offsets = [0, 32], sizes = [2, 32], strides = [1, 1]} : vector<2x128xf32> to vector<2x32xf32>
    %192 = vector.extract_strided_slice %189 {offsets = [0, 64], sizes = [2, 32], strides = [1, 1]} : vector<2x128xf32> to vector<2x32xf32>
    %193 = vector.extract_strided_slice %188 {offsets = [0, 96], sizes = [2, 32], strides = [1, 1]} : vector<2x128xf32> to vector<2x32xf32>
    %194 = arith.mulf %191, %158 : vector<2x32xf32>
    %195 = arith.mulf %190, %192 : vector<2x32xf32>
    %196 = arith.addf %194, %195 : vector<2x32xf32>
    %197 = math.tanh %196 : vector<2x32xf32>
    %198 = arith.mulf %193, %197 : vector<2x32xf32>
    %c8_38 = arith.constant 8 : index
    %c0_39 = arith.constant 0 : index
    %199 = vector.load %arg12[%c8_38, %c0_39] : memref<16x64xf32, #tpu.memory_space<vmem>>, vector<2x32xf32>
    tpu.vector_store %arg12[%c8_38, %c0_39], %183 {strides = array<i32>} : memref<16x64xf32, #tpu.memory_space<vmem>>, vector<2x32xf32>,
    %c6_40 = arith.constant 6 : index
    %c32_41 = arith.constant 32 : index
    %200 = vector.load %arg12[%c6_40, %c32_41] : memref<16x64xf32, #tpu.memory_space<vmem>>, vector<2x32xf32>
    tpu.vector_store %arg12[%c6_40, %c32_41], %198 {strides = array<i32>} : memref<16x64xf32, #tpu.memory_space<vmem>>, vector<2x32xf32>,
    %201 = vector.extract_strided_slice %6 {offsets = [10, 0], sizes = [2, 128], strides = [1, 1]} : vector<16x128xf32> to vector<2x128xf32>
    %cst_42 = arith.constant dense<0.000000e+00> : vector<2x128xf32>
    %202 = tpu.matmul %183, %8, %cst_42 {dimension_numbers = #tpu.dot_dimension_numbers<[1], [0], [0], [1], [0, 0, 1, 1], [], []>} : vector<2x32xf32>, vector<32x128xf32>, vector<2x128xf32> -> vector<2x128xf32>
    %203 = arith.addf %201, %202 : vector<2x128xf32>
    %204 = vector.extract_strided_slice %7 {offsets = [4, 0], sizes = [2, 128], strides = [1, 1]} : vector<16x128xf32> to vector<2x128xf32>
    %cst_43 = arith.constant dense<0.000000e+00> : vector<2x128xf32>
    %205 = tpu.matmul %198, %9, %cst_43 {dimension_numbers = #tpu.dot_dimension_numbers<[1], [0], [0], [1], [0, 0, 1, 1], [], []>} : vector<2x32xf32>, vector<32x128xf32>, vector<2x128xf32> -> vector<2x128xf32>
    %206 = arith.addf %204, %205 : vector<2x128xf32>
    %207 = arith.negf %203 : vector<2x128xf32>
    %208 = math.exp %207 : vector<2x128xf32>
    %cst_44 = arith.constant 1.000000e+00 : f32
    %209 = vector.broadcast %cst_44 : f32 to vector<2x128xf32>
    %210 = arith.addf %209, %208 : vector<2x128xf32>
    %211 = arith.divf %209, %210 : vector<2x128xf32>
    %212 = math.tanh %203 : vector<2x128xf32>
    %213 = vector.extract_strided_slice %211 {offsets = [0, 0], sizes = [2, 32], strides = [1, 1]} : vector<2x128xf32> to vector<2x32xf32>
    %214 = vector.extract_strided_slice %211 {offsets = [0, 32], sizes = [2, 32], strides = [1, 1]} : vector<2x128xf32> to vector<2x32xf32>
    %215 = vector.extract_strided_slice %212 {offsets = [0, 64], sizes = [2, 32], strides = [1, 1]} : vector<2x128xf32> to vector<2x32xf32>
    %216 = vector.extract_strided_slice %211 {offsets = [0, 96], sizes = [2, 32], strides = [1, 1]} : vector<2x128xf32> to vector<2x32xf32>
    %217 = arith.mulf %214, %181 : vector<2x32xf32>
    %218 = arith.mulf %213, %215 : vector<2x32xf32>
    %219 = arith.addf %217, %218 : vector<2x32xf32>
    %220 = math.tanh %219 : vector<2x32xf32>
    %221 = arith.mulf %216, %220 : vector<2x32xf32>
    %222 = arith.negf %206 : vector<2x128xf32>
    %223 = math.exp %222 : vector<2x128xf32>
    %cst_45 = arith.constant 1.000000e+00 : f32
    %224 = vector.broadcast %cst_45 : f32 to vector<2x128xf32>
    %225 = arith.addf %224, %223 : vector<2x128xf32>
    %226 = arith.divf %224, %225 : vector<2x128xf32>
    %227 = math.tanh %206 : vector<2x128xf32>
    %228 = vector.extract_strided_slice %226 {offsets = [0, 0], sizes = [2, 32], strides = [1, 1]} : vector<2x128xf32> to vector<2x32xf32>
    %229 = vector.extract_strided_slice %226 {offsets = [0, 32], sizes = [2, 32], strides = [1, 1]} : vector<2x128xf32> to vector<2x32xf32>
    %230 = vector.extract_strided_slice %227 {offsets = [0, 64], sizes = [2, 32], strides = [1, 1]} : vector<2x128xf32> to vector<2x32xf32>
    %231 = vector.extract_strided_slice %226 {offsets = [0, 96], sizes = [2, 32], strides = [1, 1]} : vector<2x128xf32> to vector<2x32xf32>
    %232 = arith.mulf %229, %196 : vector<2x32xf32>
    %233 = arith.mulf %228, %230 : vector<2x32xf32>
    %234 = arith.addf %232, %233 : vector<2x32xf32>
    %235 = math.tanh %234 : vector<2x32xf32>
    %236 = arith.mulf %231, %235 : vector<2x32xf32>
    %c10_46 = arith.constant 10 : index
    %c0_47 = arith.constant 0 : index
    %237 = vector.load %arg12[%c10_46, %c0_47] : memref<16x64xf32, #tpu.memory_space<vmem>>, vector<2x32xf32>
    tpu.vector_store %arg12[%c10_46, %c0_47], %221 {strides = array<i32>} : memref<16x64xf32, #tpu.memory_space<vmem>>, vector<2x32xf32>,
    %c4_48 = arith.constant 4 : index
    %c32_49 = arith.constant 32 : index
    %238 = vector.load %arg12[%c4_48, %c32_49] : memref<16x64xf32, #tpu.memory_space<vmem>>, vector<2x32xf32>
    tpu.vector_store %arg12[%c4_48, %c32_49], %236 {strides = array<i32>} : memref<16x64xf32, #tpu.memory_space<vmem>>, vector<2x32xf32>,
    %239 = vector.extract_strided_slice %6 {offsets = [12, 0], sizes = [2, 128], strides = [1, 1]} : vector<16x128xf32> to vector<2x128xf32>
    %cst_50 = arith.constant dense<0.000000e+00> : vector<2x128xf32>
    %240 = tpu.matmul %221, %8, %cst_50 {dimension_numbers = #tpu.dot_dimension_numbers<[1], [0], [0], [1], [0, 0, 1, 1], [], []>} : vector<2x32xf32>, vector<32x128xf32>, vector<2x128xf32> -> vector<2x128xf32>
    %241 = arith.addf %239, %240 : vector<2x128xf32>
    %242 = vector.extract_strided_slice %7 {offsets = [2, 0], sizes = [2, 128], strides = [1, 1]} : vector<16x128xf32> to vector<2x128xf32>
    %cst_51 = arith.constant dense<0.000000e+00> : vector<2x128xf32>
    %243 = tpu.matmul %236, %9, %cst_51 {dimension_numbers = #tpu.dot_dimension_numbers<[1], [0], [0], [1], [0, 0, 1, 1], [], []>} : vector<2x32xf32>, vector<32x128xf32>, vector<2x128xf32> -> vector<2x128xf32>
    %244 = arith.addf %242, %243 : vector<2x128xf32>
    %245 = arith.negf %241 : vector<2x128xf32>
    %246 = math.exp %245 : vector<2x128xf32>
    %cst_52 = arith.constant 1.000000e+00 : f32
    %247 = vector.broadcast %cst_52 : f32 to vector<2x128xf32>
    %248 = arith.addf %247, %246 : vector<2x128xf32>
    %249 = arith.divf %247, %248 : vector<2x128xf32>
    %250 = math.tanh %241 : vector<2x128xf32>
    %251 = vector.extract_strided_slice %249 {offsets = [0, 0], sizes = [2, 32], strides = [1, 1]} : vector<2x128xf32> to vector<2x32xf32>
    %252 = vector.extract_strided_slice %249 {offsets = [0, 32], sizes = [2, 32], strides = [1, 1]} : vector<2x128xf32> to vector<2x32xf32>
    %253 = vector.extract_strided_slice %250 {offsets = [0, 64], sizes = [2, 32], strides = [1, 1]} : vector<2x128xf32> to vector<2x32xf32>
    %254 = vector.extract_strided_slice %249 {offsets = [0, 96], sizes = [2, 32], strides = [1, 1]} : vector<2x128xf32> to vector<2x32xf32>
    %255 = arith.mulf %252, %219 : vector<2x32xf32>
    %256 = arith.mulf %251, %253 : vector<2x32xf32>
    %257 = arith.addf %255, %256 : vector<2x32xf32>
    %258 = math.tanh %257 : vector<2x32xf32>
    %259 = arith.mulf %254, %258 : vector<2x32xf32>
    %260 = arith.negf %244 : vector<2x128xf32>
    %261 = math.exp %260 : vector<2x128xf32>
    %cst_53 = arith.constant 1.000000e+00 : f32
    %262 = vector.broadcast %cst_53 : f32 to vector<2x128xf32>
    %263 = arith.addf %262, %261 : vector<2x128xf32>
    %264 = arith.divf %262, %263 : vector<2x128xf32>
    %265 = math.tanh %244 : vector<2x128xf32>
    %266 = vector.extract_strided_slice %264 {offsets = [0, 0], sizes = [2, 32], strides = [1, 1]} : vector<2x128xf32> to vector<2x32xf32>
    %267 = vector.extract_strided_slice %264 {offsets = [0, 32], sizes = [2, 32], strides = [1, 1]} : vector<2x128xf32> to vector<2x32xf32>
    %268 = vector.extract_strided_slice %265 {offsets = [0, 64], sizes = [2, 32], strides = [1, 1]} : vector<2x128xf32> to vector<2x32xf32>
    %269 = vector.extract_strided_slice %264 {offsets = [0, 96], sizes = [2, 32], strides = [1, 1]} : vector<2x128xf32> to vector<2x32xf32>
    %270 = arith.mulf %267, %234 : vector<2x32xf32>
    %271 = arith.mulf %266, %268 : vector<2x32xf32>
    %272 = arith.addf %270, %271 : vector<2x32xf32>
    %273 = math.tanh %272 : vector<2x32xf32>
    %274 = arith.mulf %269, %273 : vector<2x32xf32>
    %c12_54 = arith.constant 12 : index
    %c0_55 = arith.constant 0 : index
    %275 = vector.load %arg12[%c12_54, %c0_55] : memref<16x64xf32, #tpu.memory_space<vmem>>, vector<2x32xf32>
    tpu.vector_store %arg12[%c12_54, %c0_55], %259 {strides = array<i32>} : memref<16x64xf32, #tpu.memory_space<vmem>>, vector<2x32xf32>,
    %c2_56 = arith.constant 2 : index
    %c32_57 = arith.constant 32 : index
    %276 = vector.load %arg12[%c2_56, %c32_57] : memref<16x64xf32, #tpu.memory_space<vmem>>, vector<2x32xf32>
    tpu.vector_store %arg12[%c2_56, %c32_57], %274 {strides = array<i32>} : memref<16x64xf32, #tpu.memory_space<vmem>>, vector<2x32xf32>,
    %277 = vector.extract_strided_slice %6 {offsets = [14, 0], sizes = [2, 128], strides = [1, 1]} : vector<16x128xf32> to vector<2x128xf32>
    %cst_58 = arith.constant dense<0.000000e+00> : vector<2x128xf32>
    %278 = tpu.matmul %259, %8, %cst_58 {dimension_numbers = #tpu.dot_dimension_numbers<[1], [0], [0], [1], [0, 0, 1, 1], [], []>} : vector<2x32xf32>, vector<32x128xf32>, vector<2x128xf32> -> vector<2x128xf32>
    %279 = arith.addf %277, %278 : vector<2x128xf32>
    %280 = vector.extract_strided_slice %7 {offsets = [0, 0], sizes = [2, 128], strides = [1, 1]} : vector<16x128xf32> to vector<2x128xf32>
    %cst_59 = arith.constant dense<0.000000e+00> : vector<2x128xf32>
    %281 = tpu.matmul %274, %9, %cst_59 {dimension_numbers = #tpu.dot_dimension_numbers<[1], [0], [0], [1], [0, 0, 1, 1], [], []>} : vector<2x32xf32>, vector<32x128xf32>, vector<2x128xf32> -> vector<2x128xf32>
    %282 = arith.addf %280, %281 : vector<2x128xf32>
    %283 = arith.negf %279 : vector<2x128xf32>
    %284 = math.exp %283 : vector<2x128xf32>
    %cst_60 = arith.constant 1.000000e+00 : f32
    %285 = vector.broadcast %cst_60 : f32 to vector<2x128xf32>
    %286 = arith.addf %285, %284 : vector<2x128xf32>
    %287 = arith.divf %285, %286 : vector<2x128xf32>
    %288 = math.tanh %279 : vector<2x128xf32>
    %289 = vector.extract_strided_slice %287 {offsets = [0, 0], sizes = [2, 32], strides = [1, 1]} : vector<2x128xf32> to vector<2x32xf32>
    %290 = vector.extract_strided_slice %287 {offsets = [0, 32], sizes = [2, 32], strides = [1, 1]} : vector<2x128xf32> to vector<2x32xf32>
    %291 = vector.extract_strided_slice %288 {offsets = [0, 64], sizes = [2, 32], strides = [1, 1]} : vector<2x128xf32> to vector<2x32xf32>
    %292 = vector.extract_strided_slice %287 {offsets = [0, 96], sizes = [2, 32], strides = [1, 1]} : vector<2x128xf32> to vector<2x32xf32>
    %293 = arith.mulf %290, %257 : vector<2x32xf32>
    %294 = arith.mulf %289, %291 : vector<2x32xf32>
    %295 = arith.addf %293, %294 : vector<2x32xf32>
    %296 = math.tanh %295 : vector<2x32xf32>
    %297 = arith.mulf %292, %296 : vector<2x32xf32>
    %298 = arith.negf %282 : vector<2x128xf32>
    %299 = math.exp %298 : vector<2x128xf32>
    %cst_61 = arith.constant 1.000000e+00 : f32
    %300 = vector.broadcast %cst_61 : f32 to vector<2x128xf32>
    %301 = arith.addf %300, %299 : vector<2x128xf32>
    %302 = arith.divf %300, %301 : vector<2x128xf32>
    %303 = math.tanh %282 : vector<2x128xf32>
    %304 = vector.extract_strided_slice %302 {offsets = [0, 0], sizes = [2, 32], strides = [1, 1]} : vector<2x128xf32> to vector<2x32xf32>
    %305 = vector.extract_strided_slice %302 {offsets = [0, 32], sizes = [2, 32], strides = [1, 1]} : vector<2x128xf32> to vector<2x32xf32>
    %306 = vector.extract_strided_slice %303 {offsets = [0, 64], sizes = [2, 32], strides = [1, 1]} : vector<2x128xf32> to vector<2x32xf32>
    %307 = vector.extract_strided_slice %302 {offsets = [0, 96], sizes = [2, 32], strides = [1, 1]} : vector<2x128xf32> to vector<2x32xf32>
    %308 = arith.mulf %305, %272 : vector<2x32xf32>
    %309 = arith.mulf %304, %306 : vector<2x32xf32>
    %310 = arith.addf %308, %309 : vector<2x32xf32>
    %311 = math.tanh %310 : vector<2x32xf32>
    %312 = arith.mulf %307, %311 : vector<2x32xf32>
    %c14_62 = arith.constant 14 : index
    %c0_63 = arith.constant 0 : index
    %313 = vector.load %arg12[%c14_62, %c0_63] : memref<16x64xf32, #tpu.memory_space<vmem>>, vector<2x32xf32>
    tpu.vector_store %arg12[%c14_62, %c0_63], %297 {strides = array<i32>} : memref<16x64xf32, #tpu.memory_space<vmem>>, vector<2x32xf32>,
    %c0_64 = arith.constant 0 : index
    %c32_65 = arith.constant 32 : index
    %314 = vector.load %arg12[%c0_64, %c32_65] : memref<16x64xf32, #tpu.memory_space<vmem>>, vector<2x32xf32>
    tpu.vector_store %arg12[%c0_64, %c32_65], %312 {strides = array<i32>} : memref<16x64xf32, #tpu.memory_space<vmem>>, vector<2x32xf32>,
    %c0_66 = arith.constant 0 : index
    %c0_67 = arith.constant 0 : index
    %315 = vector.load %arg12[%c0_66, %c0_67] : memref<16x64xf32, #tpu.memory_space<vmem>>, vector<16x64xf32>
    %c0_68 = arith.constant 0 : index
    %c0_69 = arith.constant 0 : index
    %316 = vector.load %arg5[%c0_68, %c0_69] : memref<64x256xf32, #tpu.memory_space<vmem>>, vector<64x256xf32>
    %cst_70 = arith.constant dense<0.000000e+00> : vector<16x256xf32>
    %317 = tpu.matmul %315, %316, %cst_70 {dimension_numbers = #tpu.dot_dimension_numbers<[1], [0], [0], [1], [0, 0, 1, 1], [], []>} : vector<16x64xf32>, vector<64x256xf32>, vector<16x256xf32> -> vector<16x256xf32>
    %c0_71 = arith.constant 0 : index
    %c0_72 = arith.constant 0 : index
    %318 = vector.load %arg8[%c0_71, %c0_72] : memref<1x256xf32, #tpu.memory_space<vmem>>, vector<1x256xf32>
    %319 = vector.broadcast %318 : vector<1x256xf32> to vector<16x256xf32>
    %320 = arith.addf %317, %319 : vector<16x256xf32>
    %321 = vector.extract_strided_slice %320 {offsets = [0, 0], sizes = [16, 128], strides = [1, 1]} : vector<16x256xf32> to vector<16x128xf32>
    %322 = vector.extract_strided_slice %320 {offsets = [0, 128], sizes = [16, 128], strides = [1, 1]} : vector<16x256xf32> to vector<16x128xf32>
    %c0_73 = arith.constant 0 : index
    %c0_74 = arith.constant 0 : index
    %323 = vector.load %arg6[%c0_73, %c0_74] : memref<32x128xf32, #tpu.memory_space<vmem>>, vector<32x128xf32>
    %c0_75 = arith.constant 0 : index
    %c0_76 = arith.constant 0 : index
    %324 = vector.load %arg7[%c0_75, %c0_76] : memref<32x128xf32, #tpu.memory_space<vmem>>, vector<32x128xf32>
    %cst_77 = arith.constant 0.000000e+00 : f32
    %325 = vector.broadcast %cst_77 : f32 to vector<2x32xf32>
    %326 = vector.extract_strided_slice %321 {offsets = [0, 0], sizes = [2, 128], strides = [1, 1]} : vector<16x128xf32> to vector<2x128xf32>
    %cst_78 = arith.constant dense<0.000000e+00> : vector<2x128xf32>
    %327 = tpu.matmul %325, %323, %cst_78 {dimension_numbers = #tpu.dot_dimension_numbers<[1], [0], [0], [1], [0, 0, 1, 1], [], []>} : vector<2x32xf32>, vector<32x128xf32>, vector<2x128xf32> -> vector<2x128xf32>
    %328 = arith.addf %326, %327 : vector<2x128xf32>
    %329 = vector.extract_strided_slice %322 {offsets = [14, 0], sizes = [2, 128], strides = [1, 1]} : vector<16x128xf32> to vector<2x128xf32>
    %cst_79 = arith.constant dense<0.000000e+00> : vector<2x128xf32>
    %330 = tpu.matmul %325, %324, %cst_79 {dimension_numbers = #tpu.dot_dimension_numbers<[1], [0], [0], [1], [0, 0, 1, 1], [], []>} : vector<2x32xf32>, vector<32x128xf32>, vector<2x128xf32> -> vector<2x128xf32>
    %331 = arith.addf %329, %330 : vector<2x128xf32>
    %332 = arith.negf %328 : vector<2x128xf32>
    %333 = math.exp %332 : vector<2x128xf32>
    %cst_80 = arith.constant 1.000000e+00 : f32
    %334 = vector.broadcast %cst_80 : f32 to vector<2x128xf32>
    %335 = arith.addf %334, %333 : vector<2x128xf32>
    %336 = arith.divf %334, %335 : vector<2x128xf32>
    %337 = math.tanh %328 : vector<2x128xf32>
    %338 = vector.extract_strided_slice %336 {offsets = [0, 0], sizes = [2, 32], strides = [1, 1]} : vector<2x128xf32> to vector<2x32xf32>
    %339 = vector.extract_strided_slice %336 {offsets = [0, 32], sizes = [2, 32], strides = [1, 1]} : vector<2x128xf32> to vector<2x32xf32>
    %340 = vector.extract_strided_slice %337 {offsets = [0, 64], sizes = [2, 32], strides = [1, 1]} : vector<2x128xf32> to vector<2x32xf32>
    %341 = vector.extract_strided_slice %336 {offsets = [0, 96], sizes = [2, 32], strides = [1, 1]} : vector<2x128xf32> to vector<2x32xf32>
    %342 = arith.mulf %339, %325 : vector<2x32xf32>
    %343 = arith.mulf %338, %340 : vector<2x32xf32>
    %344 = arith.addf %342, %343 : vector<2x32xf32>
    %345 = math.tanh %344 : vector<2x32xf32>
    %346 = arith.mulf %341, %345 : vector<2x32xf32>
    %347 = arith.negf %331 : vector<2x128xf32>
    %348 = math.exp %347 : vector<2x128xf32>
    %cst_81 = arith.constant 1.000000e+00 : f32
    %349 = vector.broadcast %cst_81 : f32 to vector<2x128xf32>
    %350 = arith.addf %349, %348 : vector<2x128xf32>
    %351 = arith.divf %349, %350 : vector<2x128xf32>
    %352 = math.tanh %331 : vector<2x128xf32>
    %353 = vector.extract_strided_slice %351 {offsets = [0, 0], sizes = [2, 32], strides = [1, 1]} : vector<2x128xf32> to vector<2x32xf32>
    %354 = vector.extract_strided_slice %351 {offsets = [0, 32], sizes = [2, 32], strides = [1, 1]} : vector<2x128xf32> to vector<2x32xf32>
    %355 = vector.extract_strided_slice %352 {offsets = [0, 64], sizes = [2, 32], strides = [1, 1]} : vector<2x128xf32> to vector<2x32xf32>
    %356 = vector.extract_strided_slice %351 {offsets = [0, 96], sizes = [2, 32], strides = [1, 1]} : vector<2x128xf32> to vector<2x32xf32>
    %357 = arith.mulf %354, %325 : vector<2x32xf32>
    %358 = arith.mulf %353, %355 : vector<2x32xf32>
    %359 = arith.addf %357, %358 : vector<2x32xf32>
    %360 = math.tanh %359 : vector<2x32xf32>
    %361 = arith.mulf %356, %360 : vector<2x32xf32>
    %362 = vector.extract_strided_slice %321 {offsets = [2, 0], sizes = [2, 128], strides = [1, 1]} : vector<16x128xf32> to vector<2x128xf32>
    %cst_82 = arith.constant dense<0.000000e+00> : vector<2x128xf32>
    %363 = tpu.matmul %346, %323, %cst_82 {dimension_numbers = #tpu.dot_dimension_numbers<[1], [0], [0], [1], [0, 0, 1, 1], [], []>} : vector<2x32xf32>, vector<32x128xf32>, vector<2x128xf32> -> vector<2x128xf32>
    %364 = arith.addf %362, %363 : vector<2x128xf32>
    %365 = vector.extract_strided_slice %322 {offsets = [12, 0], sizes = [2, 128], strides = [1, 1]} : vector<16x128xf32> to vector<2x128xf32>
    %cst_83 = arith.constant dense<0.000000e+00> : vector<2x128xf32>
    %366 = tpu.matmul %361, %324, %cst_83 {dimension_numbers = #tpu.dot_dimension_numbers<[1], [0], [0], [1], [0, 0, 1, 1], [], []>} : vector<2x32xf32>, vector<32x128xf32>, vector<2x128xf32> -> vector<2x128xf32>
    %367 = arith.addf %365, %366 : vector<2x128xf32>
    %368 = arith.negf %364 : vector<2x128xf32>
    %369 = math.exp %368 : vector<2x128xf32>
    %cst_84 = arith.constant 1.000000e+00 : f32
    %370 = vector.broadcast %cst_84 : f32 to vector<2x128xf32>
    %371 = arith.addf %370, %369 : vector<2x128xf32>
    %372 = arith.divf %370, %371 : vector<2x128xf32>
    %373 = math.tanh %364 : vector<2x128xf32>
    %374 = vector.extract_strided_slice %372 {offsets = [0, 0], sizes = [2, 32], strides = [1, 1]} : vector<2x128xf32> to vector<2x32xf32>
    %375 = vector.extract_strided_slice %372 {offsets = [0, 32], sizes = [2, 32], strides = [1, 1]} : vector<2x128xf32> to vector<2x32xf32>
    %376 = vector.extract_strided_slice %373 {offsets = [0, 64], sizes = [2, 32], strides = [1, 1]} : vector<2x128xf32> to vector<2x32xf32>
    %377 = vector.extract_strided_slice %372 {offsets = [0, 96], sizes = [2, 32], strides = [1, 1]} : vector<2x128xf32> to vector<2x32xf32>
    %378 = arith.mulf %375, %344 : vector<2x32xf32>
    %379 = arith.mulf %374, %376 : vector<2x32xf32>
    %380 = arith.addf %378, %379 : vector<2x32xf32>
    %381 = math.tanh %380 : vector<2x32xf32>
    %382 = arith.mulf %377, %381 : vector<2x32xf32>
    %383 = arith.negf %367 : vector<2x128xf32>
    %384 = math.exp %383 : vector<2x128xf32>
    %cst_85 = arith.constant 1.000000e+00 : f32
    %385 = vector.broadcast %cst_85 : f32 to vector<2x128xf32>
    %386 = arith.addf %385, %384 : vector<2x128xf32>
    %387 = arith.divf %385, %386 : vector<2x128xf32>
    %388 = math.tanh %367 : vector<2x128xf32>
    %389 = vector.extract_strided_slice %387 {offsets = [0, 0], sizes = [2, 32], strides = [1, 1]} : vector<2x128xf32> to vector<2x32xf32>
    %390 = vector.extract_strided_slice %387 {offsets = [0, 32], sizes = [2, 32], strides = [1, 1]} : vector<2x128xf32> to vector<2x32xf32>
    %391 = vector.extract_strided_slice %388 {offsets = [0, 64], sizes = [2, 32], strides = [1, 1]} : vector<2x128xf32> to vector<2x32xf32>
    %392 = vector.extract_strided_slice %387 {offsets = [0, 96], sizes = [2, 32], strides = [1, 1]} : vector<2x128xf32> to vector<2x32xf32>
    %393 = arith.mulf %390, %359 : vector<2x32xf32>
    %394 = arith.mulf %389, %391 : vector<2x32xf32>
    %395 = arith.addf %393, %394 : vector<2x32xf32>
    %396 = math.tanh %395 : vector<2x32xf32>
    %397 = arith.mulf %392, %396 : vector<2x32xf32>
    %398 = vector.extract_strided_slice %321 {offsets = [4, 0], sizes = [2, 128], strides = [1, 1]} : vector<16x128xf32> to vector<2x128xf32>
    %cst_86 = arith.constant dense<0.000000e+00> : vector<2x128xf32>
    %399 = tpu.matmul %382, %323, %cst_86 {dimension_numbers = #tpu.dot_dimension_numbers<[1], [0], [0], [1], [0, 0, 1, 1], [], []>} : vector<2x32xf32>, vector<32x128xf32>, vector<2x128xf32> -> vector<2x128xf32>
    %400 = arith.addf %398, %399 : vector<2x128xf32>
    %401 = vector.extract_strided_slice %322 {offsets = [10, 0], sizes = [2, 128], strides = [1, 1]} : vector<16x128xf32> to vector<2x128xf32>
    %cst_87 = arith.constant dense<0.000000e+00> : vector<2x128xf32>
    %402 = tpu.matmul %397, %324, %cst_87 {dimension_numbers = #tpu.dot_dimension_numbers<[1], [0], [0], [1], [0, 0, 1, 1], [], []>} : vector<2x32xf32>, vector<32x128xf32>, vector<2x128xf32> -> vector<2x128xf32>
    %403 = arith.addf %401, %402 : vector<2x128xf32>
    %404 = arith.negf %400 : vector<2x128xf32>
    %405 = math.exp %404 : vector<2x128xf32>
    %cst_88 = arith.constant 1.000000e+00 : f32
    %406 = vector.broadcast %cst_88 : f32 to vector<2x128xf32>
    %407 = arith.addf %406, %405 : vector<2x128xf32>
    %408 = arith.divf %406, %407 : vector<2x128xf32>
    %409 = math.tanh %400 : vector<2x128xf32>
    %410 = vector.extract_strided_slice %408 {offsets = [0, 0], sizes = [2, 32], strides = [1, 1]} : vector<2x128xf32> to vector<2x32xf32>
    %411 = vector.extract_strided_slice %408 {offsets = [0, 32], sizes = [2, 32], strides = [1, 1]} : vector<2x128xf32> to vector<2x32xf32>
    %412 = vector.extract_strided_slice %409 {offsets = [0, 64], sizes = [2, 32], strides = [1, 1]} : vector<2x128xf32> to vector<2x32xf32>
    %413 = vector.extract_strided_slice %408 {offsets = [0, 96], sizes = [2, 32], strides = [1, 1]} : vector<2x128xf32> to vector<2x32xf32>
    %414 = arith.mulf %411, %380 : vector<2x32xf32>
    %415 = arith.mulf %410, %412 : vector<2x32xf32>
    %416 = arith.addf %414, %415 : vector<2x32xf32>
    %417 = math.tanh %416 : vector<2x32xf32>
    %418 = arith.mulf %413, %417 : vector<2x32xf32>
    %419 = arith.negf %403 : vector<2x128xf32>
    %420 = math.exp %419 : vector<2x128xf32>
    %cst_89 = arith.constant 1.000000e+00 : f32
    %421 = vector.broadcast %cst_89 : f32 to vector<2x128xf32>
    %422 = arith.addf %421, %420 : vector<2x128xf32>
    %423 = arith.divf %421, %422 : vector<2x128xf32>
    %424 = math.tanh %403 : vector<2x128xf32>
    %425 = vector.extract_strided_slice %423 {offsets = [0, 0], sizes = [2, 32], strides = [1, 1]} : vector<2x128xf32> to vector<2x32xf32>
    %426 = vector.extract_strided_slice %423 {offsets = [0, 32], sizes = [2, 32], strides = [1, 1]} : vector<2x128xf32> to vector<2x32xf32>
    %427 = vector.extract_strided_slice %424 {offsets = [0, 64], sizes = [2, 32], strides = [1, 1]} : vector<2x128xf32> to vector<2x32xf32>
    %428 = vector.extract_strided_slice %423 {offsets = [0, 96], sizes = [2, 32], strides = [1, 1]} : vector<2x128xf32> to vector<2x32xf32>
    %429 = arith.mulf %426, %395 : vector<2x32xf32>
    %430 = arith.mulf %425, %427 : vector<2x32xf32>
    %431 = arith.addf %429, %430 : vector<2x32xf32>
    %432 = math.tanh %431 : vector<2x32xf32>
    %433 = arith.mulf %428, %432 : vector<2x32xf32>
    %434 = vector.extract_strided_slice %321 {offsets = [6, 0], sizes = [2, 128], strides = [1, 1]} : vector<16x128xf32> to vector<2x128xf32>
    %cst_90 = arith.constant dense<0.000000e+00> : vector<2x128xf32>
    %435 = tpu.matmul %418, %323, %cst_90 {dimension_numbers = #tpu.dot_dimension_numbers<[1], [0], [0], [1], [0, 0, 1, 1], [], []>} : vector<2x32xf32>, vector<32x128xf32>, vector<2x128xf32> -> vector<2x128xf32>
    %436 = arith.addf %434, %435 : vector<2x128xf32>
    %437 = vector.extract_strided_slice %322 {offsets = [8, 0], sizes = [2, 128], strides = [1, 1]} : vector<16x128xf32> to vector<2x128xf32>
    %cst_91 = arith.constant dense<0.000000e+00> : vector<2x128xf32>
    %438 = tpu.matmul %433, %324, %cst_91 {dimension_numbers = #tpu.dot_dimension_numbers<[1], [0], [0], [1], [0, 0, 1, 1], [], []>} : vector<2x32xf32>, vector<32x128xf32>, vector<2x128xf32> -> vector<2x128xf32>
    %439 = arith.addf %437, %438 : vector<2x128xf32>
    %440 = arith.negf %436 : vector<2x128xf32>
    %441 = math.exp %440 : vector<2x128xf32>
    %cst_92 = arith.constant 1.000000e+00 : f32
    %442 = vector.broadcast %cst_92 : f32 to vector<2x128xf32>
    %443 = arith.addf %442, %441 : vector<2x128xf32>
    %444 = arith.divf %442, %443 : vector<2x128xf32>
    %445 = math.tanh %436 : vector<2x128xf32>
    %446 = vector.extract_strided_slice %444 {offsets = [0, 0], sizes = [2, 32], strides = [1, 1]} : vector<2x128xf32> to vector<2x32xf32>
    %447 = vector.extract_strided_slice %444 {offsets = [0, 32], sizes = [2, 32], strides = [1, 1]} : vector<2x128xf32> to vector<2x32xf32>
    %448 = vector.extract_strided_slice %445 {offsets = [0, 64], sizes = [2, 32], strides = [1, 1]} : vector<2x128xf32> to vector<2x32xf32>
    %449 = vector.extract_strided_slice %444 {offsets = [0, 96], sizes = [2, 32], strides = [1, 1]} : vector<2x128xf32> to vector<2x32xf32>
    %450 = arith.mulf %447, %416 : vector<2x32xf32>
    %451 = arith.mulf %446, %448 : vector<2x32xf32>
    %452 = arith.addf %450, %451 : vector<2x32xf32>
    %453 = math.tanh %452 : vector<2x32xf32>
    %454 = arith.mulf %449, %453 : vector<2x32xf32>
    %455 = arith.negf %439 : vector<2x128xf32>
    %456 = math.exp %455 : vector<2x128xf32>
    %cst_93 = arith.constant 1.000000e+00 : f32
    %457 = vector.broadcast %cst_93 : f32 to vector<2x128xf32>
    %458 = arith.addf %457, %456 : vector<2x128xf32>
    %459 = arith.divf %457, %458 : vector<2x128xf32>
    %460 = math.tanh %439 : vector<2x128xf32>
    %461 = vector.extract_strided_slice %459 {offsets = [0, 0], sizes = [2, 32], strides = [1, 1]} : vector<2x128xf32> to vector<2x32xf32>
    %462 = vector.extract_strided_slice %459 {offsets = [0, 32], sizes = [2, 32], strides = [1, 1]} : vector<2x128xf32> to vector<2x32xf32>
    %463 = vector.extract_strided_slice %460 {offsets = [0, 64], sizes = [2, 32], strides = [1, 1]} : vector<2x128xf32> to vector<2x32xf32>
    %464 = vector.extract_strided_slice %459 {offsets = [0, 96], sizes = [2, 32], strides = [1, 1]} : vector<2x128xf32> to vector<2x32xf32>
    %465 = arith.mulf %462, %431 : vector<2x32xf32>
    %466 = arith.mulf %461, %463 : vector<2x32xf32>
    %467 = arith.addf %465, %466 : vector<2x32xf32>
    %468 = math.tanh %467 : vector<2x32xf32>
    %469 = arith.mulf %464, %468 : vector<2x32xf32>
    %470 = vector.extract_strided_slice %321 {offsets = [8, 0], sizes = [2, 128], strides = [1, 1]} : vector<16x128xf32> to vector<2x128xf32>
    %cst_94 = arith.constant dense<0.000000e+00> : vector<2x128xf32>
    %471 = tpu.matmul %454, %323, %cst_94 {dimension_numbers = #tpu.dot_dimension_numbers<[1], [0], [0], [1], [0, 0, 1, 1], [], []>} : vector<2x32xf32>, vector<32x128xf32>, vector<2x128xf32> -> vector<2x128xf32>
    %472 = arith.addf %470, %471 : vector<2x128xf32>
    %473 = vector.extract_strided_slice %322 {offsets = [6, 0], sizes = [2, 128], strides = [1, 1]} : vector<16x128xf32> to vector<2x128xf32>
    %cst_95 = arith.constant dense<0.000000e+00> : vector<2x128xf32>
    %474 = tpu.matmul %469, %324, %cst_95 {dimension_numbers = #tpu.dot_dimension_numbers<[1], [0], [0], [1], [0, 0, 1, 1], [], []>} : vector<2x32xf32>, vector<32x128xf32>, vector<2x128xf32> -> vector<2x128xf32>
    %475 = arith.addf %473, %474 : vector<2x128xf32>
    %476 = arith.negf %472 : vector<2x128xf32>
    %477 = math.exp %476 : vector<2x128xf32>
    %cst_96 = arith.constant 1.000000e+00 : f32
    %478 = vector.broadcast %cst_96 : f32 to vector<2x128xf32>
    %479 = arith.addf %478, %477 : vector<2x128xf32>
    %480 = arith.divf %478, %479 : vector<2x128xf32>
    %481 = math.tanh %472 : vector<2x128xf32>
    %482 = vector.extract_strided_slice %480 {offsets = [0, 0], sizes = [2, 32], strides = [1, 1]} : vector<2x128xf32> to vector<2x32xf32>
    %483 = vector.extract_strided_slice %480 {offsets = [0, 32], sizes = [2, 32], strides = [1, 1]} : vector<2x128xf32> to vector<2x32xf32>
    %484 = vector.extract_strided_slice %481 {offsets = [0, 64], sizes = [2, 32], strides = [1, 1]} : vector<2x128xf32> to vector<2x32xf32>
    %485 = vector.extract_strided_slice %480 {offsets = [0, 96], sizes = [2, 32], strides = [1, 1]} : vector<2x128xf32> to vector<2x32xf32>
    %486 = arith.mulf %483, %452 : vector<2x32xf32>
    %487 = arith.mulf %482, %484 : vector<2x32xf32>
    %488 = arith.addf %486, %487 : vector<2x32xf32>
    %489 = math.tanh %488 : vector<2x32xf32>
    %490 = arith.mulf %485, %489 : vector<2x32xf32>
    %491 = arith.negf %475 : vector<2x128xf32>
    %492 = math.exp %491 : vector<2x128xf32>
    %cst_97 = arith.constant 1.000000e+00 : f32
    %493 = vector.broadcast %cst_97 : f32 to vector<2x128xf32>
    %494 = arith.addf %493, %492 : vector<2x128xf32>
    %495 = arith.divf %493, %494 : vector<2x128xf32>
    %496 = math.tanh %475 : vector<2x128xf32>
    %497 = vector.extract_strided_slice %495 {offsets = [0, 0], sizes = [2, 32], strides = [1, 1]} : vector<2x128xf32> to vector<2x32xf32>
    %498 = vector.extract_strided_slice %495 {offsets = [0, 32], sizes = [2, 32], strides = [1, 1]} : vector<2x128xf32> to vector<2x32xf32>
    %499 = vector.extract_strided_slice %496 {offsets = [0, 64], sizes = [2, 32], strides = [1, 1]} : vector<2x128xf32> to vector<2x32xf32>
    %500 = vector.extract_strided_slice %495 {offsets = [0, 96], sizes = [2, 32], strides = [1, 1]} : vector<2x128xf32> to vector<2x32xf32>
    %501 = arith.mulf %498, %467 : vector<2x32xf32>
    %502 = arith.mulf %497, %499 : vector<2x32xf32>
    %503 = arith.addf %501, %502 : vector<2x32xf32>
    %504 = math.tanh %503 : vector<2x32xf32>
    %505 = arith.mulf %500, %504 : vector<2x32xf32>
    %506 = vector.extract_strided_slice %321 {offsets = [10, 0], sizes = [2, 128], strides = [1, 1]} : vector<16x128xf32> to vector<2x128xf32>
    %cst_98 = arith.constant dense<0.000000e+00> : vector<2x128xf32>
    %507 = tpu.matmul %490, %323, %cst_98 {dimension_numbers = #tpu.dot_dimension_numbers<[1], [0], [0], [1], [0, 0, 1, 1], [], []>} : vector<2x32xf32>, vector<32x128xf32>, vector<2x128xf32> -> vector<2x128xf32>
    %508 = arith.addf %506, %507 : vector<2x128xf32>
    %509 = vector.extract_strided_slice %322 {offsets = [4, 0], sizes = [2, 128], strides = [1, 1]} : vector<16x128xf32> to vector<2x128xf32>
    %cst_99 = arith.constant dense<0.000000e+00> : vector<2x128xf32>
    %510 = tpu.matmul %505, %324, %cst_99 {dimension_numbers = #tpu.dot_dimension_numbers<[1], [0], [0], [1], [0, 0, 1, 1], [], []>} : vector<2x32xf32>, vector<32x128xf32>, vector<2x128xf32> -> vector<2x128xf32>
    %511 = arith.addf %509, %510 : vector<2x128xf32>
    %512 = arith.negf %508 : vector<2x128xf32>
    %513 = math.exp %512 : vector<2x128xf32>
    %cst_100 = arith.constant 1.000000e+00 : f32
    %514 = vector.broadcast %cst_100 : f32 to vector<2x128xf32>
    %515 = arith.addf %514, %513 : vector<2x128xf32>
    %516 = arith.divf %514, %515 : vector<2x128xf32>
    %517 = math.tanh %508 : vector<2x128xf32>
    %518 = vector.extract_strided_slice %516 {offsets = [0, 0], sizes = [2, 32], strides = [1, 1]} : vector<2x128xf32> to vector<2x32xf32>
    %519 = vector.extract_strided_slice %516 {offsets = [0, 32], sizes = [2, 32], strides = [1, 1]} : vector<2x128xf32> to vector<2x32xf32>
    %520 = vector.extract_strided_slice %517 {offsets = [0, 64], sizes = [2, 32], strides = [1, 1]} : vector<2x128xf32> to vector<2x32xf32>
    %521 = vector.extract_strided_slice %516 {offsets = [0, 96], sizes = [2, 32], strides = [1, 1]} : vector<2x128xf32> to vector<2x32xf32>
    %522 = arith.mulf %519, %488 : vector<2x32xf32>
    %523 = arith.mulf %518, %520 : vector<2x32xf32>
    %524 = arith.addf %522, %523 : vector<2x32xf32>
    %525 = math.tanh %524 : vector<2x32xf32>
    %526 = arith.mulf %521, %525 : vector<2x32xf32>
    %527 = arith.negf %511 : vector<2x128xf32>
    %528 = math.exp %527 : vector<2x128xf32>
    %cst_101 = arith.constant 1.000000e+00 : f32
    %529 = vector.broadcast %cst_101 : f32 to vector<2x128xf32>
    %530 = arith.addf %529, %528 : vector<2x128xf32>
    %531 = arith.divf %529, %530 : vector<2x128xf32>
    %532 = math.tanh %511 : vector<2x128xf32>
    %533 = vector.extract_strided_slice %531 {offsets = [0, 0], sizes = [2, 32], strides = [1, 1]} : vector<2x128xf32> to vector<2x32xf32>
    %534 = vector.extract_strided_slice %531 {offsets = [0, 32], sizes = [2, 32], strides = [1, 1]} : vector<2x128xf32> to vector<2x32xf32>
    %535 = vector.extract_strided_slice %532 {offsets = [0, 64], sizes = [2, 32], strides = [1, 1]} : vector<2x128xf32> to vector<2x32xf32>
    %536 = vector.extract_strided_slice %531 {offsets = [0, 96], sizes = [2, 32], strides = [1, 1]} : vector<2x128xf32> to vector<2x32xf32>
    %537 = arith.mulf %534, %503 : vector<2x32xf32>
    %538 = arith.mulf %533, %535 : vector<2x32xf32>
    %539 = arith.addf %537, %538 : vector<2x32xf32>
    %540 = math.tanh %539 : vector<2x32xf32>
    %541 = arith.mulf %536, %540 : vector<2x32xf32>
    %542 = vector.extract_strided_slice %321 {offsets = [12, 0], sizes = [2, 128], strides = [1, 1]} : vector<16x128xf32> to vector<2x128xf32>
    %cst_102 = arith.constant dense<0.000000e+00> : vector<2x128xf32>
    %543 = tpu.matmul %526, %323, %cst_102 {dimension_numbers = #tpu.dot_dimension_numbers<[1], [0], [0], [1], [0, 0, 1, 1], [], []>} : vector<2x32xf32>, vector<32x128xf32>, vector<2x128xf32> -> vector<2x128xf32>
    %544 = arith.addf %542, %543 : vector<2x128xf32>
    %545 = vector.extract_strided_slice %322 {offsets = [2, 0], sizes = [2, 128], strides = [1, 1]} : vector<16x128xf32> to vector<2x128xf32>
    %cst_103 = arith.constant dense<0.000000e+00> : vector<2x128xf32>
    %546 = tpu.matmul %541, %324, %cst_103 {dimension_numbers = #tpu.dot_dimension_numbers<[1], [0], [0], [1], [0, 0, 1, 1], [], []>} : vector<2x32xf32>, vector<32x128xf32>, vector<2x128xf32> -> vector<2x128xf32>
    %547 = arith.addf %545, %546 : vector<2x128xf32>
    %548 = arith.negf %544 : vector<2x128xf32>
    %549 = math.exp %548 : vector<2x128xf32>
    %cst_104 = arith.constant 1.000000e+00 : f32
    %550 = vector.broadcast %cst_104 : f32 to vector<2x128xf32>
    %551 = arith.addf %550, %549 : vector<2x128xf32>
    %552 = arith.divf %550, %551 : vector<2x128xf32>
    %553 = math.tanh %544 : vector<2x128xf32>
    %554 = vector.extract_strided_slice %552 {offsets = [0, 0], sizes = [2, 32], strides = [1, 1]} : vector<2x128xf32> to vector<2x32xf32>
    %555 = vector.extract_strided_slice %552 {offsets = [0, 32], sizes = [2, 32], strides = [1, 1]} : vector<2x128xf32> to vector<2x32xf32>
    %556 = vector.extract_strided_slice %553 {offsets = [0, 64], sizes = [2, 32], strides = [1, 1]} : vector<2x128xf32> to vector<2x32xf32>
    %557 = vector.extract_strided_slice %552 {offsets = [0, 96], sizes = [2, 32], strides = [1, 1]} : vector<2x128xf32> to vector<2x32xf32>
    %558 = arith.mulf %555, %524 : vector<2x32xf32>
    %559 = arith.mulf %554, %556 : vector<2x32xf32>
    %560 = arith.addf %558, %559 : vector<2x32xf32>
    %561 = math.tanh %560 : vector<2x32xf32>
    %562 = arith.mulf %557, %561 : vector<2x32xf32>
    %563 = arith.negf %547 : vector<2x128xf32>
    %564 = math.exp %563 : vector<2x128xf32>
    %cst_105 = arith.constant 1.000000e+00 : f32
    %565 = vector.broadcast %cst_105 : f32 to vector<2x128xf32>
    %566 = arith.addf %565, %564 : vector<2x128xf32>
    %567 = arith.divf %565, %566 : vector<2x128xf32>
    %568 = math.tanh %547 : vector<2x128xf32>
    %569 = vector.extract_strided_slice %567 {offsets = [0, 0], sizes = [2, 32], strides = [1, 1]} : vector<2x128xf32> to vector<2x32xf32>
    %570 = vector.extract_strided_slice %567 {offsets = [0, 32], sizes = [2, 32], strides = [1, 1]} : vector<2x128xf32> to vector<2x32xf32>
    %571 = vector.extract_strided_slice %568 {offsets = [0, 64], sizes = [2, 32], strides = [1, 1]} : vector<2x128xf32> to vector<2x32xf32>
    %572 = vector.extract_strided_slice %567 {offsets = [0, 96], sizes = [2, 32], strides = [1, 1]} : vector<2x128xf32> to vector<2x32xf32>
    %573 = arith.mulf %570, %539 : vector<2x32xf32>
    %574 = arith.mulf %569, %571 : vector<2x32xf32>
    %575 = arith.addf %573, %574 : vector<2x32xf32>
    %576 = math.tanh %575 : vector<2x32xf32>
    %577 = arith.mulf %572, %576 : vector<2x32xf32>
    %578 = vector.extract_strided_slice %321 {offsets = [14, 0], sizes = [2, 128], strides = [1, 1]} : vector<16x128xf32> to vector<2x128xf32>
    %cst_106 = arith.constant dense<0.000000e+00> : vector<2x128xf32>
    %579 = tpu.matmul %562, %323, %cst_106 {dimension_numbers = #tpu.dot_dimension_numbers<[1], [0], [0], [1], [0, 0, 1, 1], [], []>} : vector<2x32xf32>, vector<32x128xf32>, vector<2x128xf32> -> vector<2x128xf32>
    %580 = arith.addf %578, %579 : vector<2x128xf32>
    %581 = vector.extract_strided_slice %322 {offsets = [0, 0], sizes = [2, 128], strides = [1, 1]} : vector<16x128xf32> to vector<2x128xf32>
    %cst_107 = arith.constant dense<0.000000e+00> : vector<2x128xf32>
    %582 = tpu.matmul %577, %324, %cst_107 {dimension_numbers = #tpu.dot_dimension_numbers<[1], [0], [0], [1], [0, 0, 1, 1], [], []>} : vector<2x32xf32>, vector<32x128xf32>, vector<2x128xf32> -> vector<2x128xf32>
    %583 = arith.addf %581, %582 : vector<2x128xf32>
    %584 = arith.negf %580 : vector<2x128xf32>
    %585 = math.exp %584 : vector<2x128xf32>
    %cst_108 = arith.constant 1.000000e+00 : f32
    %586 = vector.broadcast %cst_108 : f32 to vector<2x128xf32>
    %587 = arith.addf %586, %585 : vector<2x128xf32>
    %588 = arith.divf %586, %587 : vector<2x128xf32>
    %589 = math.tanh %580 : vector<2x128xf32>
    %590 = vector.extract_strided_slice %588 {offsets = [0, 0], sizes = [2, 32], strides = [1, 1]} : vector<2x128xf32> to vector<2x32xf32>
    %591 = vector.extract_strided_slice %588 {offsets = [0, 32], sizes = [2, 32], strides = [1, 1]} : vector<2x128xf32> to vector<2x32xf32>
    %592 = vector.extract_strided_slice %589 {offsets = [0, 64], sizes = [2, 32], strides = [1, 1]} : vector<2x128xf32> to vector<2x32xf32>
    %593 = vector.extract_strided_slice %588 {offsets = [0, 96], sizes = [2, 32], strides = [1, 1]} : vector<2x128xf32> to vector<2x32xf32>
    %594 = arith.mulf %591, %560 : vector<2x32xf32>
    %595 = arith.mulf %590, %592 : vector<2x32xf32>
    %596 = arith.addf %594, %595 : vector<2x32xf32>
    %597 = math.tanh %596 : vector<2x32xf32>
    %598 = arith.mulf %593, %597 : vector<2x32xf32>
    %599 = arith.negf %583 : vector<2x128xf32>
    %600 = math.exp %599 : vector<2x128xf32>
    %cst_109 = arith.constant 1.000000e+00 : f32
    %601 = vector.broadcast %cst_109 : f32 to vector<2x128xf32>
    %602 = arith.addf %601, %600 : vector<2x128xf32>
    %603 = arith.divf %601, %602 : vector<2x128xf32>
    %604 = math.tanh %583 : vector<2x128xf32>
    %605 = vector.extract_strided_slice %603 {offsets = [0, 0], sizes = [2, 32], strides = [1, 1]} : vector<2x128xf32> to vector<2x32xf32>
    %606 = vector.extract_strided_slice %603 {offsets = [0, 32], sizes = [2, 32], strides = [1, 1]} : vector<2x128xf32> to vector<2x32xf32>
    %607 = vector.extract_strided_slice %604 {offsets = [0, 64], sizes = [2, 32], strides = [1, 1]} : vector<2x128xf32> to vector<2x32xf32>
    %608 = vector.extract_strided_slice %603 {offsets = [0, 96], sizes = [2, 32], strides = [1, 1]} : vector<2x128xf32> to vector<2x32xf32>
    %609 = arith.mulf %606, %575 : vector<2x32xf32>
    %610 = arith.mulf %605, %607 : vector<2x32xf32>
    %611 = arith.addf %609, %610 : vector<2x32xf32>
    %612 = math.tanh %611 : vector<2x32xf32>
    %613 = arith.mulf %608, %612 : vector<2x32xf32>
    %614 = tpu.concatenate %598, %613 in 1 : vector<2x32xf32>, vector<2x32xf32> -> vector<2x64xf32>
    %c0_110 = arith.constant 0 : index
    %c0_111 = arith.constant 0 : index
    %615 = vector.load %arg9[%c0_110, %c0_111] : memref<64x1xf32, #tpu.memory_space<vmem>>, vector<64x1xf32>
    %cst_112 = arith.constant dense<0.000000e+00> : vector<2x1xf32>
    %616 = tpu.matmul %614, %615, %cst_112 {dimension_numbers = #tpu.dot_dimension_numbers<[1], [0], [0], [1], [0, 0, 1, 1], [], []>} : vector<2x64xf32>, vector<64x1xf32>, vector<2x1xf32> -> vector<2x1xf32>
    %c0_113 = arith.constant 0 : index
    %c0_114 = arith.constant 0 : index
    %617 = vector.load %arg10[%c0_113, %c0_114] : memref<1x1xf32, #tpu.memory_space<vmem>>, vector<1x1xf32>
    %618 = vector.broadcast %617 : vector<1x1xf32> to vector<2x1xf32>
    %619 = arith.addf %616, %618 : vector<2x1xf32>
    %620 = arith.negf %619 : vector<2x1xf32>
    %621 = math.exp %620 : vector<2x1xf32>
    %cst_115 = arith.constant 1.000000e+00 : f32
    %622 = vector.broadcast %cst_115 : f32 to vector<2x1xf32>
    %623 = arith.addf %622, %621 : vector<2x1xf32>
    %624 = arith.divf %622, %623 : vector<2x1xf32>
    %c0_116 = arith.constant 0 : index
    %c0_117 = arith.constant 0 : index
    %625 = vector.load %arg11[%c0_116, %c0_117] : memref<2x1xf32, #tpu.memory_space<vmem>>, vector<2x1xf32>
    tpu.vector_store %arg11[%c0_116, %c0_117], %624 {strides = array<i32>} : memref<2x1xf32, #tpu.memory_space<vmem>>, vector<2x1xf32>,
    return
  }
}

</mosaic_0001>

<bundles_post_ra>
// kernel: cat_transfer_lstm_forward.1
= control target key start
LH: loop header
LB: loop body
LE: loop exit
PB: predicated region body
PF: predicated region fallthrough
CT: control target
= control target key end

     0   :  { %v4695_v3 = vmov 0.0   ;;  %vm4696_vm0 = vmmov 0   ;;  %vm58_vm1 = vcmask 130048   ;;  %v48_v15 = vlaneseq  ;;  %s4698_s25 = smov 32   ;;  %s5699_s1 = inlined_call_operand.vmem [shape: f32[16,256], index: 1, kind: input, shape index: {}]   ;;  %s5700_s0 = inlined_call_operand.vmem [shape: f32[16,16], index: 0, kind: input, shape index: {}]   ;;  %s5701_s2 = inlined_call_operand.vmem [shape: f32[32,128], index: 2, kind: input, shape index: {}]   ;;  %s5702_s3 = inlined_call_operand.vmem [shape: f32[32,128], index: 3, kind: input, shape index: {}]   ;;  %s5703_s4 = inlined_call_operand.vmem [shape: f32[1,256], index: 4, kind: input, shape index: {}]   ;;  %s5704_s5 = inlined_call_operand.vmem [shape: f32[64,256], index: 5, kind: input, shape index: {}]   ;;  %s5705_s6 = inlined_call_operand.vmem [shape: f32[32,128], index: 6, kind: input, shape index: {}]   ;;  %s5706_s7 = inlined_call_operand.vmem [shape: f32[32,128], index: 7, kind: input, shape index: {}]   ;;  %s5707_s8 = inlined_call_operand.vmem [shape: f32[1,256], index: 8, kind: input, shape index: {}]   ;;  %s5708_s9 = inlined_call_operand.vmem [shape: f32[64,1], index: 9, kind: input, shape index: {}]   ;;  %s5709_s10 = inlined_call_operand.<no memory space> [shape: f32[1,1], index: 10, kind: input, shape index: {}]   ;;  %s5710_s11 = inlined_call_operand.vmem [shape: f32[2,1], index: 11, kind: output, shape index: {}]  }
   0x1   :  { %v45_v0 = vld [vmem:[%s5699_s1 + $0x18] sm:$0xff]  ;;  %v44_v1 = vld [vmem:[%s5699_s1 + $0x10] sm:$0xff]  ;;  %v43_v2 = vld [vmem:[%s5699_s1 + $0x8] sm:$0xff]  ;;  %129 = vmatprep.mubr.f32.mxu0 %v4695_v3  ;;  %4073 = vmatprep.subr.mxu1 %v4695_v3  ;;  %vm150_vm2 = vcmask 261120   ;;  %vm351_vm3 = vcmask 254976   ;;  %vm572_vm4 = vcmask 257026  }
   0x2   :  { %93 = vmatprep.subr.mxu0 %v45_v0  ;;  %v42_v4 = vld [vmem:[%s5699_s1] sm:$0xff]  ;;  %v4776_v5 = vld [vmem:[%s5701_s2 + $0x18] sm:$0xff]  ;;  %4081 = vmatprep.mubr.msk.f32.mxu1 %vm4696_vm0, %v4695_v3  ;;  %v4787_v7 = vld [vmem:[%s5701_s2 + $0x10] sm:$0xff]  ;;  %v4865_v16 = vshrl.u32 %v48_v15, 7  ;;  %vm1017_vm5 = vcmask 261126   ;;  %vm796_vm6 = vcmask 259076  }
   0x3   :  { %94 = vmatpush1.msra.mxu0 %v44_v1  ;;  %v40_v6 = vld [vmem:[%s5700_s0] sm:$0xff]  ;;  %4074 = vmatpush3.msra.mxu1 %v4776_v5  ;;  %v41_v8 = vld [vmem:[%s5700_s0 + $0x8] sm:$0xff]  ;;  %v4821_v11 = vld [vmem:[%s5702_s3 + $0x18] sm:$0xff]  ;;  %vm578_vm7 = vcmask 521476   ;;  %vm357_vm8 = vcmask 523526   ;;  %vm802_vm9 = vcmask 519426  }
   0x4   :  { %95 = vmatprep.subr.mxu0 %v43_v2  ;;  %4075 = vmatprep.subr.mxu1 %v4695_v3  ;;  %v4802_v9 = vld [vmem:[%s5701_s2 + $0x8] sm:$0xff]  ;;  %v4812_v10 = vld [vmem:[%s5701_s2] sm:$0xff]  ;;  %v4831_v12 = vld [vmem:[%s5702_s3 + $0x10] sm:$0xff]  ;;  %v54_v17 = vsub.s32 1, %v4865_v16  ;;  %v50_v19 = vsub.s32 0, %v4865_v16  ;;  %vm1023_vm10 = vcmask 517376  }
   0x5   :  { %96 = vmatpush1.msra.mxu0 %v42_v4  ;;  %4076 = vmatpush3.msra.mxu1 %v4787_v7  ;;  %v4840_v13 = vld [vmem:[%s5702_s3 + $0x8] sm:$0xff]  ;;  %v4848_v14 = vld [vmem:[%s5702_s3] sm:$0xff]  ;;  %vm1933_vm11 = vcmask 523264   ;;  %vm3809_vm12 = vcmask 1024  }
   0x6   :  { %3815 = vmatmul.mubr.msk.f32.vlgmr.msra.gmra.mxu0 %vm58_vm1, %v40_v6  ;;  %4051 = vmatprep.subr.mxu0 %v4695_v3  ;;  %v46_v18 = vld [vmem:[%s5703_s4] sm:$0x3]  ;;  %s4697_s4 = smov 64  }
   0x7   :  { %4052 = vmatpush3.msra.mxu0 %v4776_v5  ;;  %135 = vmatprep.mubr.f32.mxu0 %v4695_v3  ;;  %v55_v20 = vrot.slane %v46_v18, %v54_v17  ;;  %v51_v23 = vrot.slane %v46_v18, %v50_v19 }
   0x8   :  { %4053 = vmatprep.subr.mxu0 %v4695_v3  ;;  %4077 = vmatprep.subr.mxu1 %v4695_v3 }
   0x9   :  { %4054 = vmatpush3.msra.mxu0 %v4787_v7  ;;  %4078 = vmatpush3.msra.mxu1 %v4802_v9 }
   0xa   :  { %3816 = vmatmul.mubr.msk.f32.gmra.mxu0 %vm58_vm1, %v41_v8  ;;  %4055 = vmatprep.subr.mxu0 %v4695_v3 }
   0xb   :  { %4056 = vmatpush3.msra.mxu0 %v4802_v9  ;;  %4059 = vmatprep.mubr.msk.f32.mxu0 %vm4696_vm0, %v4695_v3 }
   0xc   :  { %4057 = vmatprep.subr.mxu0 %v4695_v3  ;;  %4079 = vmatprep.subr.mxu1 %v4695_v3 }
   0xd   :  { %4058 = vmatpush3.msra.mxu0 %v4812_v10  ;;  %4080 = vmatpush3.msra.mxu1 %v4812_v10 }
   0xe   :  { %4060 = vmatmul.mubr.f32.vlgmr.msra.gmra.mxu0 %v4695_v3  ;;  %4062 = vmatprep.subr.mxu0 %v4695_v3 }
   0xf   :  { %4063 = vmatpush3.msra.mxu0 %v4821_v11  ;;  %4070 = vmatprep.mubr.msk.f32.mxu0 %vm4696_vm0, %v4695_v3 }
  0x10   :  { %4064 = vmatprep.subr.mxu0 %v4695_v3  ;;  %4095 = vmatprep.subr.mxu1 %v4695_v3 }
  0x11   :  { %4065 = vmatpush3.msra.mxu0 %v4831_v12 }
  0x12   :  { %4066 = vmatprep.subr.mxu0 %v4695_v3 }
  0x13   :  { %4067 = vmatpush3.msra.mxu0 %v4840_v13 }
  0x14   :  { %4068 = vmatprep.subr.mxu0 %v4695_v3 }
  0x15   :  { %4069 = vmatpush3.msra.mxu0 %v4848_v14 }
  0x16   :  { %4071 = vmatmul.mubr.f32.vlgmr.msra.gmra.mxu0 %v4695_v3  ;;  %4084 = vmatprep.subr.mxu0 %v4695_v3 }
  0x17   :  { %4085 = vmatpush3.msra.mxu0 %v4821_v11  ;;  %4092 = vmatprep.mubr.msk.f32.mxu0 %vm4696_vm0, %v4695_v3 }
  0x18   :  { %4086 = vmatprep.subr.mxu0 %v4695_v3 }
  0x19   :  { %4087 = vmatpush3.msra.mxu0 %v4831_v12 }
  0x1a   :  { %4088 = vmatprep.subr.mxu0 %v4695_v3 }
  0x1b   :  { %4089 = vmatpush3.msra.mxu0 %v4840_v13 }
  0x1c   :  { %4090 = vmatprep.subr.mxu0 %v4695_v3 }
  0x1d   :  { %4091 = vmatpush3.msra.mxu0 %v4848_v14 }
  0x1e   :  { %4106 = vmatprep.subr.mxu0 %v4695_v3 }
  0xc6   :  { %v131_v21 = vpop.f32.mrf.mxu0 }
  0xc7   :  { %v4882_v34 = vadd.f32 %v131_v21, %v51_v23 }
  0xc8   :  { %v133_v22 = vpop.f32.mrf.mxu0 }
  0xc9   :  { %v4876_v24 = vadd.f32 %v133_v22, %v55_v20 }
  0xca   :  { %v137_v25 = vpop.f32.mrf.mxu0 }
  0xcb   :  { %v4878_v26 = vadd.f32 %v137_v25, %v51_v23 }
  0xcc   :  { %v139_v27 = vpop.f32.mrf.mxu0 }
  0xcd   :  { %v4880_v31 = vadd.f32 %v139_v27, %v55_v20 }
  0xce   :  { %v220_v28 = vpop.f32.mrf.mxu0 }
  0xcf   :  { %v224_v36 = vadd.f32 %v220_v28, %v4882_v34 }
  0xd0   :  { %v4061_v29 = vpop.f32.mrf.mxu0 }
  0xd1   :  { %v3817_v40 = vmul.f32 -1.442695, %v224_v36 }
  0xd6   :  { %v291_v30 = vpop.f32.mrf.mxu0 }
  0xd7   :  { %v296_v32 = vrot.slane %v291_v30, 2 }
  0xd8   :  { %v4072_v33 = vpop.f32.mrf.mxu0 }
  0xd9   :  { %v298_v35 = vadd.f32 %v296_v32, %v4880_v31 }
  0xdb   :  { %4426 = vtanh.f32 %v298_v35  ;;  %v3818_v39 = vmul.f32 -1.442695, %v298_v35 }
  0xdc   :  { %4428 = vtanh.f32 %v224_v36 }
  0xdd   :  { %4430 = vpow2.f32 %v3818_v39 }
  0xde   :  { %4432 = vpow2.f32 %v3817_v40 }
  0xe8   :  { %v4427_v37 = vpop.eup %4426 }
  0xe9   :  { %332 = vrot.lane.b32.xlu0 %v4427_v37, %s4697_s4  ;;  %v4429_v38 = vpop.eup %4428 }
  0xea   :  { %v4431_v41 = vpop.eup %4430 }
  0xeb   :  { %v326_v42 = vadd.f32 1.0, %v4431_v41  ;;  %v4433_v43 = vpop.eup %4432 }
  0xec   :  { %v302_v44 = vadd.f32 1.0, %v4433_v43 }
  0xed   :  { %308 = vrot.lane.b32.xlu0 %v4429_v38, %s4697_s4  ;;  %4434 = vrcp.f32 %v326_v42 }
  0xee   :  { %4436 = vrcp.f32 %v302_v44 }
  0xfa   :  { %v4435_v45 = vpop.eup %4434 }
  0xfb   :  { %v4437_v48 = vpop.eup %4436  ;;  %v330_v51 = vmul.f32 0.0, %v4435_v45 }
  0xfc   :  { %v306_v54 = vmul.f32 0.0, %v4437_v48 }
 0x15b   :  { %v333_v46 = vpop.permute.xlu0 %332 }
 0x15c   :  { %v335_v47 = vmul.f32 %v4435_v45, %v333_v46 }
 0x15e   :  { %337 = vrot.lane.b32.xlu1 %v335_v47, %s4698_s25 }
 0x15f   :  { %v309_v49 = vpop.permute.xlu0 %308 }
 0x160   :  { %v311_v50 = vmul.f32 %v4437_v48, %v309_v49 }
 0x162   :  { %313 = vrot.lane.b32.xlu1 %v311_v50, %s4698_s25 }
 0x1d0   :  { %v338_v52 = vpop.permute.xlu1 %337 }
 0x1d1   :  { %v4890_v53 = vadd.f32 %v338_v52, %v330_v51 }
 0x1d3   :  { %4438 = vtanh.f32 %v4890_v53  ;;  %v549_v40 = vrot.slane %v4890_v53, 2 }
 0x1d4   :  { %v314_v55 = vpop.permute.xlu1 %313 }
 0x1d5   :  { %v4893_v56 = vadd.f32 %v314_v55, %v306_v54 }
 0x1d7   :  { %4440 = vtanh.f32 %v4893_v56  ;;  %v522_v42 = vrot.slane %v4893_v56, 6 }
 0x1e0   :  { %v4439_v57 = vpop.eup %4438 }
 0x1e1   :  { %343 = vrot.lane.b32.xlu0 %v4439_v57, %s4697_s4 }
 0x1e4   :  { %v4441_v58 = vpop.eup %4440 }
 0x1e5   :  { %319 = vrot.lane.b32.xlu1 %v4441_v58, %s4697_s4 }
 0x253   :  { %v344_v59 = vpop.permute.xlu0 %343 }
 0x254   :  { %v4898_v60 = vmul.f32 %v4435_v45, %v344_v59 }
 0x256   :  { %v435_v61 = vrot.slane %v4898_v60, 6 }
 0x257   :  { %v320_v62 = vpop.permute.xlu1 %319 }
 0x258   :  { %v322_v63 = vmul.f32 %v4437_v48, %v320_v62  ;;  %436 = vrot.lane.b32.xlu0 %v435_v61, %s4698_s25 }
 0x25a   :  { %348 = vrot.lane.b32.xlu1 %v322_v63, %s4698_s25 }
 0x2ca   :  { %v437_v0 = vpop.permute.xlu0 %436 }
 0x2cb   :  { %4093 = vmatmul.mubr.msk.f32.vlgmr.msra.gmra.mxu0 %vm150_vm2, %v437_v0 }
 0x2cc   :  { %v349_v1 = vpop.permute.xlu1 %348  ;;  %4107 = vmatpush3.msra.mxu0 %v4821_v11  ;;  %4114 = vmatprep.mubr.msk.f32.mxu0 %vm4696_vm0, %v4695_v3 }
 0x2cd   :  { %352 = vst.msk [vmem:[#allocation2] sm:$0x3] %vm351_vm3, %v349_v1  ;;  %4082 = vmatmul.mubr.msk.f32.vlgmr.msra.gmra.mxu1 %vm150_vm2, %v349_v1  ;;  %4108 = vmatprep.subr.mxu0 %v4695_v3 }
 0x2ce   :  { %4096 = vmatpush3.msra.mxu1 %v4776_v5  ;;  %4109 = vmatpush3.msra.mxu0 %v4831_v12 }
 0x2cf   :  { %4097 = vmatprep.subr.mxu1 %v4695_v3  ;;  %4110 = vmatprep.subr.mxu0 %v4695_v3 }
 0x2d0   :  { %4098 = vmatpush3.msra.mxu1 %v4787_v7  ;;  %4111 = vmatpush3.msra.mxu0 %v4840_v13 }
 0x2d1   :  { %4099 = vmatprep.subr.mxu1 %v4695_v3  ;;  %4112 = vmatprep.subr.mxu0 %v4695_v3 }
 0x2d2   :  { %4113 = vmatpush3.msra.mxu0 %v4848_v14  ;;  %4100 = vmatpush3.msra.mxu1 %v4802_v9 }
 0x2d3   :  { %4101 = vmatprep.subr.mxu1 %v4695_v3  ;;  %4103 = vmatprep.mubr.msk.f32.mxu1 %vm4696_vm0, %v4695_v3 }
 0x2d4   :  { %4102 = vmatpush3.msra.mxu1 %v4812_v10  ;;  %4128 = vmatprep.subr.mxu0 %v4695_v3 }
 0x2d5   :  { %4117 = vmatprep.subr.mxu1 %v4695_v3 }
 0x38b   :  { %v506_v2 = vpop.f32.mrf.mxu0 }
 0x38c   :  { %v511_v4 = vrot.slane %v506_v2, 4 }
 0x38d   :  { %v427_v6 = vpop.f32.mrf.mxu1  ;;  %v4094_v8 = vpop.f32.mrf.mxu0 }
 0x38e   :  { %v513_v15 = vadd.f32 %v511_v4, %v4880_v31  ;;  %v432_v18 = vrot.slane %v427_v6, 6 }
 0x38f   :  { %v4083_v20 = vpop.f32.mrf.mxu1 }
 0x390   :  { %4442 = vtanh.f32 %v513_v15  ;;  %v434_v21 = vadd.f32 %v432_v18, %v4882_v34  ;;  %v3822_v25 = vmul.f32 -1.442695, %v513_v15 }
 0x392   :  { %4444 = vtanh.f32 %v434_v21  ;;  %v3821_v27 = vmul.f32 -1.442695, %v434_v21 }
 0x393   :  { %4446 = vpow2.f32 %v3822_v25 }
 0x394   :  { %4448 = vpow2.f32 %v3821_v27 }
 0x39d   :  { %v4443_v22 = vpop.eup %4442 }
 0x39e   :  { %553 = vrot.lane.b32.xlu0 %v4443_v22, %s4697_s4 }
 0x39f   :  { %v4445_v23 = vpop.eup %4444 }
 0x3a0   :  { %526 = vrot.lane.b32.xlu1 %v4445_v23, %s4697_s4  ;;  %v4447_v28 = vpop.eup %4446 }
 0x3a1   :  { %v4449_v29 = vpop.eup %4448  ;;  %v544_v30 = vadd.f32 1.0, %v4447_v28 }
 0x3a2   :  { %v517_v32 = vadd.f32 1.0, %v4449_v29 }
 0x3a3   :  { %4450 = vrcp.f32 %v544_v30 }
 0x3a4   :  { %4452 = vrcp.f32 %v517_v32 }
 0x3b0   :  { %v4451_v33 = vpop.eup %4450 }
 0x3b1   :  { %v4453_v37 = vpop.eup %4452  ;;  %v551_v41 = vmul.f32 %v4451_v33, %v549_v40 }
 0x3b2   :  { %v524_v45 = vmul.f32 %v4453_v37, %v522_v42 }
 0x410   :  { %v554_v35 = vpop.permute.xlu0 %553 }
 0x411   :  { %v556_v36 = vmul.f32 %v4451_v33, %v554_v35 }
 0x412   :  { %v527_v38 = vpop.permute.xlu1 %526 }
 0x413   :  { %558 = vrot.lane.b32.xlu0 %v556_v36, %s4698_s25  ;;  %v529_v39 = vmul.f32 %v4453_v37, %v527_v38 }
 0x415   :  { %531 = vrot.lane.b32.xlu1 %v529_v39, %s4698_s25 }
 0x485   :  { %v559_v43 = vpop.permute.xlu0 %558 }
 0x486   :  { %v4934_v44 = vadd.f32 %v559_v43, %v551_v41 }
 0x487   :  { %v532_v46 = vpop.permute.xlu1 %531 }
 0x488   :  { %4454 = vtanh.f32 %v4934_v44  ;;  %v4937_v47 = vadd.f32 %v532_v46, %v524_v45  ;;  %v773_v32 = vrot.slane %v4934_v44, 2 }
 0x48a   :  { %4456 = vtanh.f32 %v4937_v47  ;;  %v746_v35 = vrot.slane %v4937_v47, 6 }
 0x495   :  { %v4455_v48 = vpop.eup %4454 }
 0x496   :  { %564 = vrot.lane.b32.xlu0 %v4455_v48, %s4697_s4 }
 0x497   :  { %v4457_v49 = vpop.eup %4456 }
 0x498   :  { %537 = vrot.lane.b32.xlu1 %v4457_v49, %s4697_s4 }
 0x508   :  { %v565_v50 = vpop.permute.xlu0 %564 }
 0x509   :  { %v4942_v51 = vmul.f32 %v4451_v33, %v565_v50 }
 0x50a   :  { %v538_v53 = vpop.permute.xlu1 %537 }
 0x50b   :  { %v659_v52 = vrot.slane %v4942_v51, 4  ;;  %v4945_v54 = vmul.f32 %v4453_v37, %v538_v53 }
 0x50d   :  { %660 = vrot.lane.b32.xlu0 %v659_v52, %s4698_s25  ;;  %v580_v55 = vrot.slane %v4945_v54, 2 }
 0x50f   :  { %581 = vrot.lane.b32.xlu1 %v580_v55, %s4698_s25 }
 0x57f   :  { %v661_v56 = vpop.permute.xlu0 %660 }
 0x580   :  { %4115 = vmatmul.mubr.msk.f32.vlgmr.msra.gmra.mxu0 %vm150_vm2, %v661_v56 }
 0x581   :  { %4129 = vmatpush3.msra.mxu0 %v4821_v11  ;;  %4136 = vmatprep.mubr.msk.f32.mxu0 %vm4696_vm0, %v4695_v3  ;;  %v582_v57 = vpop.permute.xlu1 %581 }
 0x582   :  { %4130 = vmatprep.subr.mxu0 %v4695_v3  ;;  %4104 = vmatmul.mubr.msk.f32.vlgmr.msra.gmra.mxu1 %vm150_vm2, %v582_v57 }
 0x583   :  { %4131 = vmatpush3.msra.mxu0 %v4831_v12  ;;  %4118 = vmatpush3.msra.mxu1 %v4776_v5 }
 0x584   :  { %4132 = vmatprep.subr.mxu0 %v4695_v3  ;;  %4119 = vmatprep.subr.mxu1 %v4695_v3 }
 0x585   :  { %4133 = vmatpush3.msra.mxu0 %v4840_v13  ;;  %4120 = vmatpush3.msra.mxu1 %v4787_v7 }
 0x586   :  { %4134 = vmatprep.subr.mxu0 %v4695_v3  ;;  %4121 = vmatprep.subr.mxu1 %v4695_v3 }
 0x587   :  { %4135 = vmatpush3.msra.mxu0 %v4848_v14  ;;  %4122 = vmatpush3.msra.mxu1 %v4802_v9 }
 0x588   :  { %4125 = vmatprep.mubr.msk.f32.mxu1 %vm4696_vm0, %v4695_v3  ;;  %4123 = vmatprep.subr.mxu1 %v4695_v3 }
 0x589   :  { %4150 = vmatprep.subr.mxu0 %v4695_v3  ;;  %4124 = vmatpush3.msra.mxu1 %v4812_v10 }
 0x58a   :  { %4139 = vmatprep.subr.mxu1 %v4695_v3 }
 0x640   :  { %v730_v58 = vpop.f32.mrf.mxu0 }
 0x641   :  { %v735_v59 = vrot.slane %v730_v58, 6 }
 0x642   :  { %v4116_v61 = vpop.f32.mrf.mxu0  ;;  %v651_v63 = vpop.f32.mrf.mxu1 }
 0x643   :  { %v737_v62 = vadd.f32 %v735_v59, %v4880_v31  ;;  %v656_v0 = vrot.slane %v651_v63, 4 }
 0x644   :  { %v4105_v1 = vpop.f32.mrf.mxu1 }
 0x645   :  { %4458 = vtanh.f32 %v737_v62  ;;  %v658_v2 = vadd.f32 %v656_v0, %v4882_v34  ;;  %v3826_v8 = vmul.f32 -1.442695, %v737_v62 }
 0x647   :  { %4460 = vtanh.f32 %v658_v2  ;;  %v3825_v15 = vmul.f32 -1.442695, %v658_v2 }
 0x648   :  { %4462 = vpow2.f32 %v3826_v8 }
 0x649   :  { %4464 = vpow2.f32 %v3825_v15 }
 0x652   :  { %v4459_v4 = vpop.eup %4458 }
 0x653   :  { %777 = vrot.lane.b32.xlu0 %v4459_v4, %s4697_s4 }
 0x654   :  { %v4461_v6 = vpop.eup %4460 }
 0x655   :  { %750 = vrot.lane.b32.xlu1 %v4461_v6, %s4697_s4  ;;  %v4463_v18 = vpop.eup %4462 }
 0x656   :  { %v4465_v20 = vpop.eup %4464  ;;  %v768_v21 = vadd.f32 1.0, %v4463_v18 }
 0x657   :  { %v741_v22 = vadd.f32 1.0, %v4465_v20 }
 0x658   :  { %4466 = vrcp.f32 %v768_v21 }
 0x659   :  { %4468 = vrcp.f32 %v741_v22 }
 0x665   :  { %v4467_v23 = vpop.eup %4466 }
 0x666   :  { %v4469_v28 = vpop.eup %4468  ;;  %v775_v33 = vmul.f32 %v4467_v23, %v773_v32 }
 0x667   :  { %v748_v38 = vmul.f32 %v4469_v28, %v746_v35 }
 0x6c5   :  { %v778_v25 = vpop.permute.xlu0 %777 }
 0x6c6   :  { %v780_v27 = vmul.f32 %v4467_v23, %v778_v25 }
 0x6c7   :  { %v751_v29 = vpop.permute.xlu1 %750 }
 0x6c8   :  { %782 = vrot.lane.b32.xlu0 %v780_v27, %s4698_s25  ;;  %v753_v30 = vmul.f32 %v4469_v28, %v751_v29 }
 0x6ca   :  { %755 = vrot.lane.b32.xlu1 %v753_v30, %s4698_s25 }
 0x73a   :  { %v783_v36 = vpop.permute.xlu0 %782 }
 0x73b   :  { %v4980_v37 = vadd.f32 %v783_v36, %v775_v33 }
 0x73c   :  { %v756_v39 = vpop.permute.xlu1 %755 }
 0x73d   :  { %4470 = vtanh.f32 %v4980_v37  ;;  %v4983_v40 = vadd.f32 %v756_v39, %v748_v38  ;;  %v994_v21 = vrot.slane %v4980_v37, 2 }
 0x73f   :  { %4472 = vtanh.f32 %v4983_v40  ;;  %v967_v27 = vrot.slane %v4983_v40, 6 }
 0x74a   :  { %v4471_v41 = vpop.eup %4470 }
 0x74b   :  { %788 = vrot.lane.b32.xlu0 %v4471_v41, %s4697_s4 }
 0x74c   :  { %v4473_v42 = vpop.eup %4472 }
 0x74d   :  { %761 = vrot.lane.b32.xlu1 %v4473_v42, %s4697_s4 }
 0x7bd   :  { %v789_v43 = vpop.permute.xlu0 %788 }
 0x7be   :  { %v4988_v44 = vmul.f32 %v4467_v23, %v789_v43 }
 0x7bf   :  { %v762_v46 = vpop.permute.xlu1 %761 }
 0x7c0   :  { %v883_v45 = vrot.slane %v4988_v44, 2  ;;  %v4991_v47 = vmul.f32 %v4469_v28, %v762_v46 }
 0x7c2   :  { %884 = vrot.lane.b32.xlu0 %v883_v45, %s4698_s25  ;;  %v804_v48 = vrot.slane %v4991_v47, 4 }
 0x7c4   :  { %805 = vrot.lane.b32.xlu1 %v804_v48, %s4698_s25 }
 0x834   :  { %v885_v49 = vpop.permute.xlu0 %884 }
 0x835   :  { %4137 = vmatmul.mubr.msk.f32.vlgmr.msra.gmra.mxu0 %vm150_vm2, %v885_v49 }
 0x836   :  { %4151 = vmatpush3.msra.mxu0 %v4821_v11  ;;  %4158 = vmatprep.mubr.msk.f32.mxu0 %vm4696_vm0, %v4695_v3  ;;  %v806_v50 = vpop.permute.xlu1 %805 }
 0x837   :  { %4152 = vmatprep.subr.mxu0 %v4695_v3  ;;  %4126 = vmatmul.mubr.msk.f32.vlgmr.msra.gmra.mxu1 %vm150_vm2, %v806_v50 }
 0x838   :  { %4153 = vmatpush3.msra.mxu0 %v4831_v12  ;;  %4140 = vmatpush3.msra.mxu1 %v4776_v5 }
 0x839   :  { %4154 = vmatprep.subr.mxu0 %v4695_v3  ;;  %4141 = vmatprep.subr.mxu1 %v4695_v3 }
 0x83a   :  { %4155 = vmatpush3.msra.mxu0 %v4840_v13  ;;  %4142 = vmatpush3.msra.mxu1 %v4787_v7 }
 0x83b   :  { %4156 = vmatprep.subr.mxu0 %v4695_v3  ;;  %4143 = vmatprep.subr.mxu1 %v4695_v3 }
 0x83c   :  { %4157 = vmatpush3.msra.mxu0 %v4848_v14  ;;  %4144 = vmatpush3.msra.mxu1 %v4802_v9 }
 0x83d   :  { %4147 = vmatprep.mubr.msk.f32.mxu1 %vm4696_vm0, %v4695_v3  ;;  %4145 = vmatprep.subr.mxu1 %v4695_v3 }
 0x83e   :  { %4172 = vmatprep.subr.mxu0 %v4695_v3  ;;  %4146 = vmatpush3.msra.mxu1 %v4812_v10 }
 0x83f   :  { %4161 = vmatprep.subr.mxu1 %v4695_v3 }
 0x8f5   :  { %v954_v52 = vpop.f32.mrf.mxu0 }
 0x8f6   :  { %v958_v53 = vadd.f32 %v954_v52, %v4880_v31 }
 0x8f7   :  { %v4138_v55 = vpop.f32.mrf.mxu0  ;;  %v875_v56 = vpop.f32.mrf.mxu1 }
 0x8f8   :  { %4474 = vtanh.f32 %v958_v53  ;;  %v880_v57 = vrot.slane %v875_v56, 2  ;;  %v3830_v63 = vmul.f32 -1.442695, %v958_v53 }
 0x8f9   :  { %v4127_v58 = vpop.f32.mrf.mxu1 }
 0x8fa   :  { %v882_v59 = vadd.f32 %v880_v57, %v4882_v34 }
 0x8fc   :  { %4476 = vtanh.f32 %v882_v59  ;;  %v3829_v0 = vmul.f32 -1.442695, %v882_v59 }
 0x8fd   :  { %4478 = vpow2.f32 %v3830_v63 }
 0x8fe   :  { %4480 = vpow2.f32 %v3829_v0 }
 0x905   :  { %v4475_v61 = vpop.eup %4474 }
 0x906   :  { %998 = vrot.lane.b32.xlu0 %v4475_v61, %s4697_s4 }
 0x909   :  { %v4477_v62 = vpop.eup %4476 }
 0x90a   :  { %971 = vrot.lane.b32.xlu1 %v4477_v62, %s4697_s4  ;;  %v4479_v1 = vpop.eup %4478 }
 0x90b   :  { %v989_v31 = vadd.f32 1.0, %v4479_v1  ;;  %v4481_v2 = vpop.eup %4480 }
 0x90c   :  { %v962_v4 = vadd.f32 1.0, %v4481_v2 }
 0x90d   :  { %4482 = vrcp.f32 %v989_v31 }
 0x90e   :  { %4484 = vrcp.f32 %v962_v4 }
 0x91a   :  { %v4483_v6 = vpop.eup %4482 }
 0x91b   :  { %v4485_v15 = vpop.eup %4484  ;;  %v996_v22 = vmul.f32 %v4483_v6, %v994_v21 }
 0x91c   :  { %v969_v28 = vmul.f32 %v4485_v15, %v967_v27 }
 0x978   :  { %v999_v8 = vpop.permute.xlu0 %998 }
 0x979   :  { %v1001_v34 = vmul.f32 %v4483_v6, %v999_v8 }
 0x97b   :  { %1003 = vrot.lane.b32.xlu0 %v1001_v34, %s4698_s25 }
 0x97c   :  { %v972_v18 = vpop.permute.xlu1 %971 }
 0x97d   :  { %v974_v20 = vmul.f32 %v4485_v15, %v972_v18 }
 0x97f   :  { %976 = vrot.lane.b32.xlu1 %v974_v20, %s4698_s25 }
 0x9ed   :  { %v1004_v23 = vpop.permute.xlu0 %1003 }
 0x9ee   :  { %v5025_v25 = vadd.f32 %v1004_v23, %v996_v22 }
 0x9f0   :  { %4486 = vtanh.f32 %v5025_v25  ;;  %v1214_v4 = vrot.slane %v5025_v25, 2 }
 0x9f1   :  { %v977_v29 = vpop.permute.xlu1 %976 }
 0x9f2   :  { %v5029_v30 = vadd.f32 %v977_v29, %v969_v28 }
 0x9f4   :  { %4488 = vtanh.f32 %v5029_v30 }
 0x9fd   :  { %v4487_v32 = vpop.eup %4486 }
 0x9fe   :  { %1009 = vrot.lane.b32.xlu0 %v4487_v32, %s4697_s4 }
 0xa01   :  { %v4489_v33 = vpop.eup %4488 }
 0xa02   :  { %982 = vrot.lane.b32.xlu1 %v4489_v33, %s4697_s4 }
 0xa70   :  { %v1010_v35 = vpop.permute.xlu0 %1009 }
 0xa71   :  { %v5034_v36 = vmul.f32 %v4483_v6, %v1010_v35 }
 0xa73   :  { %1101 = vrot.lane.b32.xlu0 %v5034_v36, %s4698_s25 }
 0xa74   :  { %v983_v37 = vpop.permute.xlu1 %982 }
 0xa75   :  { %v5038_v38 = vmul.f32 %v4485_v15, %v983_v37  ;;  %v1187_v15 = vrot.slane %v5029_v30, 6 }
 0xa77   :  { %v1025_v39 = vrot.slane %v5038_v38, 6 }
 0xa79   :  { %1026 = vrot.lane.b32.xlu1 %v1025_v39, %s4698_s25 }
 0xae5   :  { %v1102_v40 = vpop.permute.xlu0 %1101 }
 0xae6   :  { %4159 = vmatmul.mubr.msk.f32.vlgmr.msra.gmra.mxu0 %vm150_vm2, %v1102_v40 }
 0xae7   :  { %4173 = vmatpush3.msra.mxu0 %v4821_v11  ;;  %4180 = vmatprep.mubr.msk.f32.mxu0 %vm4696_vm0, %v4695_v3 }
 0xae8   :  { %4174 = vmatprep.subr.mxu0 %v4695_v3 }
 0xae9   :  { %4175 = vmatpush3.msra.mxu0 %v4831_v12 }
 0xaea   :  { %4176 = vmatprep.subr.mxu0 %v4695_v3 }
 0xaeb   :  { %4177 = vmatpush3.msra.mxu0 %v4840_v13  ;;  %v1027_v41 = vpop.permute.xlu1 %1026 }
 0xaec   :  { %4178 = vmatprep.subr.mxu0 %v4695_v3  ;;  %4148 = vmatmul.mubr.msk.f32.vlgmr.msra.gmra.mxu1 %vm150_vm2, %v1027_v41 }
 0xaed   :  { %4179 = vmatpush3.msra.mxu0 %v4848_v14  ;;  %4162 = vmatpush3.msra.mxu1 %v4776_v5 }
 0xaee   :  { %4169 = vmatprep.mubr.msk.f32.mxu1 %vm4696_vm0, %v4695_v3  ;;  %4163 = vmatprep.subr.mxu1 %v4695_v3 }
 0xaef   :  { %4194 = vmatprep.subr.mxu0 %v4695_v3  ;;  %4164 = vmatpush3.msra.mxu1 %v4787_v7 }
 0xaf0   :  { %4165 = vmatprep.subr.mxu1 %v4695_v3 }
 0xaf1   :  { %4166 = vmatpush3.msra.mxu1 %v4802_v9 }
 0xaf2   :  { %4167 = vmatprep.subr.mxu1 %v4695_v3 }
 0xaf3   :  { %4168 = vmatpush3.msra.mxu1 %v4812_v10 }
 0xaf4   :  { %4183 = vmatprep.subr.mxu1 %v4695_v3 }
 0xba6   :  { %v1171_v42 = vpop.f32.mrf.mxu0 }
 0xba7   :  { %v1176_v43 = vrot.slane %v1171_v42, 2 }
 0xba8   :  { %v4160_v45 = vpop.f32.mrf.mxu0 }
 0xba9   :  { %v1178_v46 = vadd.f32 %v1176_v43, %v4876_v24 }
 0xbab   :  { %4490 = vtanh.f32 %v1178_v46  ;;  %v3834_v55 = vmul.f32 -1.442695, %v1178_v46 }
 0xbac   :  { %v1096_v48 = vpop.f32.mrf.mxu1 }
 0xbad   :  { %v1100_v49 = vadd.f32 %v1096_v48, %v4878_v26 }
 0xbae   :  { %v4149_v50 = vpop.f32.mrf.mxu1 }
 0xbaf   :  { %4492 = vtanh.f32 %v1100_v49  ;;  %v3833_v56 = vmul.f32 -1.442695, %v1100_v49 }
 0xbb0   :  { %4494 = vpow2.f32 %v3834_v55 }
 0xbb1   :  { %4496 = vpow2.f32 %v3833_v56 }
 0xbb8   :  { %v4491_v52 = vpop.eup %4490 }
 0xbb9   :  { %1218 = vrot.lane.b32.xlu0 %v4491_v52, %s4697_s4 }
 0xbbc   :  { %v4493_v53 = vpop.eup %4492 }
 0xbbd   :  { %1191 = vrot.lane.b32.xlu1 %v4493_v53, %s4697_s4  ;;  %v4495_v57 = vpop.eup %4494 }
 0xbbe   :  { %v1209_v58 = vadd.f32 1.0, %v4495_v57  ;;  %v4497_v59 = vpop.eup %4496 }
 0xbbf   :  { %v1182_v61 = vadd.f32 1.0, %v4497_v59 }
 0xbc0   :  { %4498 = vrcp.f32 %v1209_v58 }
 0xbc1   :  { %4500 = vrcp.f32 %v1182_v61 }
 0xbcd   :  { %v4499_v62 = vpop.eup %4498 }
 0xbce   :  { %v4501_v1 = vpop.eup %4500  ;;  %v1216_v6 = vmul.f32 %v4499_v62, %v1214_v4 }
 0xbcf   :  { %v1189_v18 = vmul.f32 %v4501_v1, %v1187_v15 }
 0xc2b   :  { %v1219_v63 = vpop.permute.xlu0 %1218 }
 0xc2c   :  { %v1221_v0 = vmul.f32 %v4499_v62, %v1219_v63 }
 0xc2e   :  { %1223 = vrot.lane.b32.xlu0 %v1221_v0, %s4698_s25 }
 0xc2f   :  { %v1192_v31 = vpop.permute.xlu1 %1191 }
 0xc30   :  { %v1194_v2 = vmul.f32 %v4501_v1, %v1192_v31 }
 0xc32   :  { %1196 = vrot.lane.b32.xlu1 %v1194_v2, %s4698_s25 }
 0xca0   :  { %v1224_v8 = vpop.permute.xlu0 %1223 }
 0xca1   :  { %v5071_v34 = vadd.f32 %v1224_v8, %v1216_v6 }
 0xca3   :  { %4502 = vtanh.f32 %v5071_v34  ;;  %v1433_v63 = vrot.slane %v5071_v34, 2 }
 0xca4   :  { %v1197_v20 = vpop.permute.xlu1 %1196 }
 0xca5   :  { %v5075_v21 = vadd.f32 %v1197_v20, %v1189_v18 }
 0xca7   :  { %4504 = vtanh.f32 %v5075_v21 }
 0xcb0   :  { %v4503_v22 = vpop.eup %4502 }
 0xcb1   :  { %1229 = vrot.lane.b32.xlu0 %v4503_v22, %s4697_s4 }
 0xcb4   :  { %v4505_v23 = vpop.eup %4504 }
 0xcb5   :  { %1202 = vrot.lane.b32.xlu1 %v4505_v23, %s4697_s4 }
 0xd23   :  { %v1230_v25 = vpop.permute.xlu0 %1229 }
 0xd24   :  { %v5080_v27 = vmul.f32 %v4499_v62, %v1230_v25 }
 0xd26   :  { %v1319_v28 = vrot.slane %v5080_v27, 6 }
 0xd27   :  { %v1203_v29 = vpop.permute.xlu1 %1202 }
 0xd28   :  { %1320 = vrot.lane.b32.xlu0 %v1319_v28, %s4698_s25  ;;  %v1205_v30 = vmul.f32 %v4501_v1, %v1203_v29  ;;  %v1406_v1 = vrot.slane %v5075_v21, 6 }
 0xd2a   :  { %1234 = vrot.lane.b32.xlu1 %v1205_v30, %s4698_s25  ;;  %v4686_v30 = vld [vmem:[%s5701_s2 + $0x18] sm:$0xff] }
 0xd9a   :  { %v1321_v32 = vpop.permute.xlu0 %1320 }
 0xd9b   :  { %4181 = vmatmul.mubr.msk.f32.vlgmr.msra.gmra.mxu0 %vm150_vm2, %v1321_v32 }
 0xd9c   :  { %4195 = vmatpush3.msra.mxu0 %v4821_v11  ;;  %4202 = vmatprep.mubr.msk.f32.mxu0 %vm4696_vm0, %v4695_v3  ;;  %v5089_v33 = vpop.permute.xlu1 %1234 }
 0xd9d   :  { %4196 = vmatprep.subr.mxu0 %v4695_v3  ;;  %4170 = vmatmul.mubr.msk.f32.vlgmr.msra.gmra.mxu1 %vm150_vm2, %v5089_v33 }
 0xd9e   :  { %4197 = vmatpush3.msra.mxu0 %v4831_v12  ;;  %4184 = vmatpush3.msra.mxu1 %v4776_v5 }
 0xd9f   :  { %4198 = vmatprep.subr.mxu0 %v4695_v3  ;;  %4185 = vmatprep.subr.mxu1 %v4695_v3 }
 0xda0   :  { %4199 = vmatpush3.msra.mxu0 %v4840_v13  ;;  %4186 = vmatpush3.msra.mxu1 %v4787_v7 }
 0xda1   :  { %4200 = vmatprep.subr.mxu0 %v4695_v3  ;;  %4187 = vmatprep.subr.mxu1 %v4695_v3 }
 0xda2   :  { %4201 = vmatpush3.msra.mxu0 %v4848_v14  ;;  %4188 = vmatpush3.msra.mxu1 %v4802_v9 }
 0xda3   :  { %4191 = vmatprep.mubr.msk.f32.mxu1 %vm4696_vm0, %v4695_v3  ;;  %4189 = vmatprep.subr.mxu1 %v4695_v3 }
 0xda4   :  { %4216 = vmatprep.subr.mxu0 %v4695_v3  ;;  %4190 = vmatpush3.msra.mxu1 %v4812_v10 }
 0xda5   :  { %4205 = vmatprep.subr.mxu1 %v4695_v3 }
 0xe5b   :  { %v1390_v5 = vpop.f32.mrf.mxu0 }
 0xe5c   :  { %v1395_v35 = vrot.slane %v1390_v5, 4 }
 0xe5d   :  { %v4182_v37 = vpop.f32.mrf.mxu0  ;;  %v1311_v40 = vpop.f32.mrf.mxu1 }
 0xe5e   :  { %v1397_v39 = vadd.f32 %v1395_v35, %v4876_v24  ;;  %v1316_v41 = vrot.slane %v1311_v40, 6 }
 0xe5f   :  { %v4171_v42 = vpop.f32.mrf.mxu1 }
 0xe60   :  { %4506 = vtanh.f32 %v1397_v39  ;;  %v1318_v43 = vadd.f32 %v1316_v41, %v4878_v26  ;;  %v3838_v48 = vmul.f32 -1.442695, %v1397_v39 }
 0xe62   :  { %4508 = vtanh.f32 %v1318_v43  ;;  %v3837_v49 = vmul.f32 -1.442695, %v1318_v43 }
 0xe63   :  { %4510 = vpow2.f32 %v3838_v48 }
 0xe64   :  { %4512 = vpow2.f32 %v3837_v49 }
 0xe6d   :  { %v4507_v45 = vpop.eup %4506 }
 0xe6e   :  { %1437 = vrot.lane.b32.xlu0 %v4507_v45, %s4697_s4 }
 0xe6f   :  { %v4509_v46 = vpop.eup %4508 }
 0xe70   :  { %1410 = vrot.lane.b32.xlu1 %v4509_v46, %s4697_s4  ;;  %v4511_v50 = vpop.eup %4510 }
 0xe71   :  { %v4513_v52 = vpop.eup %4512  ;;  %v1428_v53 = vadd.f32 1.0, %v4511_v50 }
 0xe72   :  { %v1401_v55 = vadd.f32 1.0, %v4513_v52 }
 0xe73   :  { %4514 = vrcp.f32 %v1428_v53 }
 0xe74   :  { %4516 = vrcp.f32 %v1401_v55 }
 0xe80   :  { %v4515_v56 = vpop.eup %4514 }
 0xe81   :  { %v4517_v59 = vpop.eup %4516  ;;  %v1435_v0 = vmul.f32 %v4515_v56, %v1433_v63 }
 0xe82   :  { %v1408_v4 = vmul.f32 %v4517_v59, %v1406_v1 }
 0xee0   :  { %v1438_v57 = vpop.permute.xlu0 %1437 }
 0xee1   :  { %v1440_v58 = vmul.f32 %v4515_v56, %v1438_v57 }
 0xee2   :  { %v1411_v61 = vpop.permute.xlu1 %1410 }
 0xee3   :  { %1442 = vrot.lane.b32.xlu0 %v1440_v58, %s4698_s25  ;;  %v1413_v62 = vmul.f32 %v4517_v59, %v1411_v61 }
 0xee5   :  { %1415 = vrot.lane.b32.xlu1 %v1413_v62, %s4698_s25 }
 0xf55   :  { %v1443_v31 = vpop.permute.xlu0 %1442 }
 0xf56   :  { %v5118_v2 = vadd.f32 %v1443_v31, %v1435_v0 }
 0xf57   :  { %v1416_v6 = vpop.permute.xlu1 %1415 }
 0xf58   :  { %4518 = vtanh.f32 %v5118_v2  ;;  %v5121_v8 = vadd.f32 %v1416_v6, %v1408_v4  ;;  %v1655_v53 = vrot.slane %v5118_v2, 2 }
 0xf5a   :  { %4520 = vtanh.f32 %v5121_v8 }
 0xf65   :  { %v4519_v15 = vpop.eup %4518 }
 0xf66   :  { %1448 = vrot.lane.b32.xlu0 %v4519_v15, %s4697_s4 }
 0xf67   :  { %v4521_v18 = vpop.eup %4520 }
 0xf68   :  { %1421 = vrot.lane.b32.xlu1 %v4521_v18, %s4697_s4 }
 0xfd8   :  { %v1449_v34 = vpop.permute.xlu0 %1448 }
 0xfd9   :  { %v5126_v20 = vmul.f32 %v4515_v56, %v1449_v34  ;;  %v1628_v56 = vrot.slane %v5121_v8, 6 }
 0xfda   :  { %v1422_v22 = vpop.permute.xlu1 %1421 }
 0xfdb   :  { %v1541_v21 = vrot.slane %v5126_v20, 4  ;;  %v5129_v23 = vmul.f32 %v4517_v59, %v1422_v22 }
 0xfdd   :  { %1542 = vrot.lane.b32.xlu0 %v1541_v21, %s4698_s25  ;;  %v1462_v25 = vrot.slane %v5129_v23, 2 }
 0xfdf   :  { %1463 = vrot.lane.b32.xlu1 %v1462_v25, %s4698_s25 }
0x104f   :  { %v1543_v28 = vpop.permute.xlu0 %1542 }
0x1050   :  { %4203 = vmatmul.mubr.msk.f32.vlgmr.msra.gmra.mxu0 %vm150_vm2, %v1543_v28 }
0x1051   :  { %4217 = vmatpush3.msra.mxu0 %v4821_v11  ;;  %4224 = vmatprep.mubr.msk.f32.mxu0 %vm4696_vm0, %v4695_v3  ;;  %v1464_v29 = vpop.permute.xlu1 %1463 }
0x1052   :  { %4218 = vmatprep.subr.mxu0 %v4695_v3  ;;  %4192 = vmatmul.mubr.msk.f32.vlgmr.msra.gmra.mxu1 %vm150_vm2, %v1464_v29 }
0x1053   :  { %4219 = vmatpush3.msra.mxu0 %v4831_v12  ;;  %4206 = vmatpush3.msra.mxu1 %v4686_v30 }
0x1054   :  { %4220 = vmatprep.subr.mxu0 %v4695_v3  ;;  %4207 = vmatprep.subr.mxu1 %v4695_v3 }
0x1055   :  { %4221 = vmatpush3.msra.mxu0 %v4840_v13  ;;  %4208 = vmatpush3.msra.mxu1 %v4787_v7 }
0x1056   :  { %4222 = vmatprep.subr.mxu0 %v4695_v3  ;;  %4209 = vmatprep.subr.mxu1 %v4695_v3 }
0x1057   :  { %4223 = vmatpush3.msra.mxu0 %v4848_v14  ;;  %4210 = vmatpush3.msra.mxu1 %v4802_v9 }
0x1058   :  { %4213 = vmatprep.mubr.msk.f32.mxu1 %vm4696_vm0, %v4695_v3  ;;  %4211 = vmatprep.subr.mxu1 %v4695_v3 }
0x1059   :  { %4227 = vmatprep.subr.mxu0 %v4695_v3  ;;  %4212 = vmatpush3.msra.mxu1 %v4812_v10 }
0x1110   :  { %v1612_v11 = vpop.f32.mrf.mxu0 }
0x1111   :  { %v1617_v12 = vrot.slane %v1612_v11, 6 }
0x1112   :  { %v4204_v7 = vpop.f32.mrf.mxu0  ;;  %v1533_v32 = vpop.f32.mrf.mxu1 }
0x1113   :  { %v1619_v13 = vadd.f32 %v1617_v12, %v4876_v24  ;;  %v1538_v5 = vrot.slane %v1533_v32, 4 }
0x1114   :  { %v4193_v14 = vpop.f32.mrf.mxu1 }
0x1115   :  { %4522 = vtanh.f32 %v1619_v13  ;;  %v1540_v9 = vadd.f32 %v1538_v5, %v4878_v26  ;;  %v3842_v39 = vmul.f32 -1.442695, %v1619_v13 }
0x1117   :  { %4524 = vtanh.f32 %v1540_v9  ;;  %v3841_v10 = vmul.f32 -1.442695, %v1540_v9 }
0x1118   :  { %4526 = vpow2.f32 %v3842_v39 }
0x1119   :  { %4528 = vpow2.f32 %v3841_v10 }
0x1122   :  { %v4523_v35 = vpop.eup %4522 }
0x1123   :  { %1659 = vrot.lane.b32.xlu0 %v4523_v35, %s4697_s4 }
0x1124   :  { %v4525_v37 = vpop.eup %4524 }
0x1125   :  { %1632 = vrot.lane.b32.xlu1 %v4525_v37, %s4697_s4  ;;  %v4527_v40 = vpop.eup %4526 }
0x1126   :  { %v4529_v41 = vpop.eup %4528  ;;  %v1650_v42 = vadd.f32 1.0, %v4527_v40 }
0x1127   :  { %v1623_v43 = vadd.f32 1.0, %v4529_v41 }
0x1128   :  { %4530 = vrcp.f32 %v1650_v42 }
0x1129   :  { %4532 = vrcp.f32 %v1623_v43 }
0x1135   :  { %v4531_v45 = vpop.eup %4530 }
0x1136   :  { %v4533_v49 = vpop.eup %4532  ;;  %v1657_v55 = vmul.f32 %v4531_v45, %v1655_v53  ;;  %v1915_v53 = vld [vmem:[%s5704_s5 + $0x50] sm:$0xff] }
0x1137   :  { %v1630_v59 = vmul.f32 %v4533_v49, %v1628_v56  ;;  %v5243_v56 = vld [vmem:[%s5705_s6 + $0x10] sm:$0xff] }
0x1195   :  { %v1660_v46 = vpop.permute.xlu0 %1659 }
0x1196   :  { %v1662_v48 = vmul.f32 %v4531_v45, %v1660_v46 }
0x1197   :  { %v1633_v50 = vpop.permute.xlu1 %1632 }
0x1198   :  { %1664 = vrot.lane.b32.xlu0 %v1662_v48, %s4698_s25  ;;  %v1635_v52 = vmul.f32 %v4533_v49, %v1633_v50 }
0x119a   :  { %1637 = vrot.lane.b32.xlu1 %v1635_v52, %s4698_s25 }
0x120a   :  { %v1665_v57 = vpop.permute.xlu0 %1664 }
0x120b   :  { %v1667_v58 = vadd.f32 %v1665_v57, %v1657_v55  ;;  %v1914_v55 = vld [vmem:[%s5704_s5 + $0x48] sm:$0xff]  ;;  %v1911_v57 = vld [vmem:[%s5704_s5 + $0x30] sm:$0xff] }
0x120c   :  { %v1638_v61 = vpop.permute.xlu1 %1637 }
0x120d   :  { %4534 = vtanh.f32 %v1667_v58  ;;  %v1640_v62 = vadd.f32 %v1638_v61, %v1630_v59  ;;  %v1874_v40 = vrot.slane %v1667_v58, 2  ;;  %v5274_v58 = vld [vmem:[%s5705_s6] sm:$0xff]  ;;  %v1908_v61 = vld [vmem:[%s5704_s5 + $0x18] sm:$0xff] }
0x120e   :  { %v1909_v59 = vld [vmem:[%s5704_s5 + $0x20] sm:$0xff] }
0x120f   :  { %4536 = vtanh.f32 %v1640_v62 }
0x121a   :  { %v4535_v63 = vpop.eup %4534 }
0x121b   :  { %1670 = vrot.lane.b32.xlu0 %v4535_v63, %s4697_s4  ;;  %v5292_v63 = vld [vmem:[%s5706_s7 + $0x18] sm:$0xff] }
0x121c   :  { %v4537_v0 = vpop.eup %4536 }
0x121d   :  { %1643 = vrot.lane.b32.xlu1 %v4537_v0, %s4697_s4  ;;  %v1906_v0 = vld [vmem:[%s5704_s5 + $0x8] sm:$0xff] }
0x128d   :  { %v1671_v1 = vpop.permute.xlu0 %1670 }
0x128e   :  { %v5167_v31 = vmul.f32 %v4531_v45, %v1671_v1  ;;  %v1847_v45 = vrot.slane %v1640_v62, 6  ;;  %v1907_v62 = vld [vmem:[%s5704_s5 + $0x10] sm:$0xff]  ;;  %v1905_v1 = vld [vmem:[%s5704_s5] sm:$0xff] }
0x128f   :  { %v1644_v4 = vpop.permute.xlu1 %1643 }
0x1290   :  { %v1763_v2 = vrot.slane %v5167_v31, 2  ;;  %v5170_v6 = vmul.f32 %v4533_v49, %v1644_v4  ;;  %v5317_v4 = vld [vmem:[%s5706_s7] sm:$0xff] }
0x1292   :  { %1764 = vrot.lane.b32.xlu0 %v1763_v2, %s4698_s25  ;;  %v1684_v8 = vrot.slane %v5170_v6, 4  ;;  %v5311_v2 = vld [vmem:[%s5706_s7 + $0x8] sm:$0xff] }
0x1294   :  { %1685 = vrot.lane.b32.xlu1 %v1684_v8, %s4698_s25 }
0x1304   :  { %v1765_v15 = vpop.permute.xlu0 %1764 }
0x1305   :  { %4225 = vmatmul.mubr.msk.f32.vlgmr.msra.gmra.mxu0 %vm150_vm2, %v1765_v15 }
0x1306   :  { %4235 = vmatprep.mubr.msk.f32.mxu0 %vm4696_vm0, %v4695_v3  ;;  %v1686_v18 = vpop.permute.xlu1 %1685 }
0x1307   :  { %4214 = vmatmul.mubr.msk.f32.vlgmr.msra.gmra.mxu1 %vm150_vm2, %v1686_v18 }
0x1308   :  { %2004 = vmatprep.mubr.f32.mxu1 %v4695_v3 }
0x13c5   :  { %v1834_v34 = vpop.f32.mrf.mxu0 }
0x13c6   :  { %v1838_v21 = vadd.f32 %v1834_v34, %v4876_v24 }
0x13c7   :  { %v4226_v22 = vpop.f32.mrf.mxu0  ;;  %v1755_v25 = vpop.f32.mrf.mxu1 }
0x13c8   :  { %4538 = vtanh.f32 %v1838_v21  ;;  %v1760_v28 = vrot.slane %v1755_v25, 2  ;;  %v3846_v7 = vmul.f32 -1.442695, %v1838_v21 }
0x13c9   :  { %v4215_v29 = vpop.f32.mrf.mxu1 }
0x13ca   :  { %v1762_v30 = vadd.f32 %v1760_v28, %v4878_v26 }
0x13cc   :  { %4540 = vtanh.f32 %v1762_v30  ;;  %v3845_v13 = vmul.f32 -1.442695, %v1762_v30 }
0x13cd   :  { %4542 = vpow2.f32 %v3846_v7 }
0x13ce   :  { %4544 = vpow2.f32 %v3845_v13 }
0x13d5   :  { %v4539_v11 = vpop.eup %4538 }
0x13d6   :  { %1878 = vrot.lane.b32.xlu0 %v4539_v11, %s4697_s4 }
0x13d9   :  { %v4541_v12 = vpop.eup %4540 }
0x13da   :  { %1851 = vrot.lane.b32.xlu1 %v4541_v12, %s4697_s4  ;;  %v4543_v32 = vpop.eup %4542 }
0x13db   :  { %v1869_v24 = vadd.f32 1.0, %v4543_v32  ;;  %v4545_v5 = vpop.eup %4544 }
0x13dc   :  { %v1842_v14 = vadd.f32 1.0, %v4545_v5 }
0x13dd   :  { %4546 = vrcp.f32 %v1869_v24 }
0x13de   :  { %4548 = vrcp.f32 %v1842_v14 }
0x13ea   :  { %v5184_v9 = vpop.eup %4546 }
0x13eb   :  { %v5188_v37 = vpop.eup %4548  ;;  %v1876_v41 = vmul.f32 %v5184_v9, %v1874_v40 }
0x13ec   :  { %v1849_v46 = vmul.f32 %v5188_v37, %v1847_v45 }
0x1448   :  { %v1879_v26 = vpop.permute.xlu0 %1878 }
0x1449   :  { %v1881_v35 = vmul.f32 %v5184_v9, %v1879_v26 }
0x144b   :  { %1883 = vrot.lane.b32.xlu0 %v1881_v35, %s4698_s25 }
0x144c   :  { %v1852_v39 = vpop.permute.xlu1 %1851 }
0x144d   :  { %v1854_v10 = vmul.f32 %v5188_v37, %v1852_v39  ;;  %v1921_v39 = vld [vmem:[%s5707_s8] sm:$0x3] }
0x144e   :  { %v1930_v40 = vrot.slane %v1921_v39, %v54_v17 }
0x144f   :  { %1856 = vrot.lane.b32.xlu1 %v1854_v10, %s4698_s25  ;;  %v1926_v10 = vrot.slane %v1921_v39, %v50_v19 }
0x14bd   :  { %v1884_v42 = vpop.permute.xlu0 %1883 }
0x14be   :  { %v1886_v43 = vadd.f32 %v1884_v42, %v1876_v41 }
0x14c0   :  { %4550 = vtanh.f32 %v1886_v43 }
0x14c1   :  { %v1857_v48 = vpop.permute.xlu1 %1856 }
0x14c2   :  { %v1859_v49 = vadd.f32 %v1857_v48, %v1849_v46 }
0x14c4   :  { %4552 = vtanh.f32 %v1859_v49 }
0x14cd   :  { %v4551_v50 = vpop.eup %4550 }
0x14ce   :  { %1889 = vrot.lane.b32.xlu0 %v4551_v50, %s4697_s4 }
0x14d1   :  { %v4553_v52 = vpop.eup %4552 }
0x14d2   :  { %569 = vrot.lane.b32.xlu0 %v4945_v54, %s4698_s25  ;;  %1862 = vrot.lane.b32.xlu1 %v4553_v52, %s4697_s4  ;;  %v1920_v54 = vld [vmem:[%s5704_s5 + $0x78] sm:$0xff] }
0x14d3   :  { %1956 = vmatprep.subr.mxu1 %v1920_v54 }
0x14d6   :  { %1014 = vrot.lane.b32.xlu0 %v5038_v38, %s4698_s25  ;;  %793 = vrot.lane.b32.xlu1 %v4991_v47, %s4698_s25  ;;  %v1919_v47 = vld [vmem:[%s5704_s5 + $0x70] sm:$0xff]  ;;  %v1918_v38 = vld [vmem:[%s5704_s5 + $0x68] sm:$0xff] }
0x14d7   :  { %1957 = vmatpush1.msra.mxu1 %v1919_v47 }
0x14d8   :  { %1958 = vmatprep.subr.mxu1 %v1918_v38 }
0x14da   :  { %1458 = vrot.lane.b32.xlu0 %v5126_v20, %s4697_s4  ;;  %1239 = vrot.lane.b32.xlu1 %v5080_v27, %s4697_s4  ;;  %v1916_v27 = vld [vmem:[%s5704_s5 + $0x58] sm:$0xff] }
0x14db   :  { %v5228_v20 = vld [vmem:[%s5705_s6 + $0x18] sm:$0xff] }
0x14dc   :  { %4228 = vmatpush3.msra.mxu0 %v5228_v20 }
0x14dd   :  { %4229 = vmatprep.subr.mxu0 %v4695_v3 }
0x14de   :  { %575 = vrot.lane.b32.xlu0 %v4942_v51, %s4697_s4  ;;  %1680 = vrot.lane.b32.xlu1 %v5167_v31, %s4697_s4  ;;  %v1917_v51 = vld [vmem:[%s5704_s5 + $0x60] sm:$0xff]  ;;  %v5304_v31 = vld [vmem:[%s5706_s7 + $0x10] sm:$0xff] }
0x14df   :  { %1959 = vmatpush1.msra.mxu1 %v1917_v51  ;;  %4230 = vmatpush3.msra.mxu0 %v5243_v56 }
0x14e0   :  { %1960 = vmatprep.subr.mxu1 %v1916_v27  ;;  %4231 = vmatprep.subr.mxu0 %v4695_v3 }
0x14e1   :  { %1961 = vmatpush1.msra.mxu1 %v1915_v53 }
0x14e2   :  { %1020 = vrot.lane.b32.xlu0 %v5034_v36, %s4697_s4  ;;  %354 = vrot.lane.b32.xlu1 %v4898_v60, %s4697_s4  ;;  %v1913_v60 = vld [vmem:[%s5704_s5 + $0x40] sm:$0xff]  ;;  %v1912_v36 = vld [vmem:[%s5704_s5 + $0x38] sm:$0xff] }
0x14e3   :  { %1962 = vmatprep.subr.mxu1 %v1914_v55 }
0x14e4   :  { %1963 = vmatpush1.msra.mxu1 %v1913_v60 }
0x14e5   :  { %1964 = vmatprep.subr.mxu1 %v1912_v36 }
0x14e6   :  { %799 = vrot.lane.b32.xlu1 %v4988_v44, %s4697_s4  ;;  %v5265_v44 = vld [vmem:[%s5705_s6 + $0x8] sm:$0xff]  ;;  %1965 = vmatpush1.msra.mxu1 %v1911_v57 }
0x14e7   :  { %4232 = vmatpush3.msra.mxu0 %v5265_v44 }
0x14e8   :  { %4233 = vmatprep.subr.mxu0 %v4695_v3 }
0x14e9   :  { %4234 = vmatpush3.msra.mxu0 %v5274_v58 }
0x14ea   :  { %1453 = vrot.lane.b32.xlu1 %v5129_v23, %s4698_s25  ;;  %v1910_v23 = vld [vmem:[%s5704_s5 + $0x28] sm:$0xff]  ;;  %4238 = vmatprep.subr.mxu0 %v4695_v3 }
0x14eb   :  { %1966 = vmatprep.subr.mxu1 %v1910_v23  ;;  %4236 = vmatmul.mubr.f32.vlgmr.msra.gmra.mxu0 %v4695_v3 }
0x14ec   :  { %1967 = vmatpush1.msra.mxu1 %v1909_v59  ;;  %4239 = vmatpush3.msra.mxu0 %v5292_v63 }
0x14ed   :  { %1968 = vmatprep.subr.mxu1 %v1908_v61  ;;  %4240 = vmatprep.subr.mxu0 %v4695_v3 }
0x14ee   :  { %1969 = vmatpush1.msra.mxu1 %v1907_v62  ;;  %4241 = vmatpush3.msra.mxu0 %v5304_v31 }
0x14ef   :  { %1970 = vmatprep.subr.mxu1 %v1906_v0  ;;  %4242 = vmatprep.subr.mxu0 %v4695_v3 }
0x14f0   :  { %1971 = vmatpush1.msra.mxu1 %v1905_v1  ;;  %4246 = vmatprep.mubr.msk.f32.mxu0 %vm4696_vm0, %v4695_v3 }
0x14f1   :  { %4243 = vmatpush3.msra.mxu0 %v5311_v2  ;;  %4249 = vmatprep.subr.mxu1 %v4695_v3 }
0x14f2   :  { %4244 = vmatprep.subr.mxu0 %v4695_v3 }
0x14f3   :  { %4245 = vmatpush3.msra.mxu0 %v5317_v4 }
0x14f4   :  { %4247 = vmatmul.mubr.f32.vlgmr.msra.gmra.mxu0 %v4695_v3  ;;  %4260 = vmatprep.subr.mxu0 %v4695_v3 }
0x14f5   :  { %4268 = vmatprep.mubr.msk.f32.mxu0 %vm4696_vm0, %v4695_v3  ;;  %4261 = vmatpush3.msra.mxu0 %v5292_v63 }
0x14f6   :  { %4262 = vmatprep.subr.mxu0 %v4695_v3 }
0x14f7   :  { %4263 = vmatpush3.msra.mxu0 %v5304_v31 }
0x14f8   :  { %4264 = vmatprep.subr.mxu0 %v4695_v3 }
0x14f9   :  { %4265 = vmatpush3.msra.mxu0 %v5311_v2 }
0x14fa   :  { %4266 = vmatprep.subr.mxu0 %v4695_v3 }
0x14fb   :  { %4267 = vmatpush3.msra.mxu0 %v5317_v4 }
0x14fc   :  { %4282 = vmatprep.subr.mxu0 %v4695_v3 }
0x1540   :  { %v1890_v8 = vpop.permute.xlu0 %1889 }
0x1541   :  { %v1892_v15 = vmul.f32 %v5184_v9, %v1890_v8 }
0x1543   :  { %1899 = vrot.lane.b32.xlu0 %v1892_v15, %s4697_s4 }
0x1544   :  { %v570_v18 = vpop.permute.xlu0 %569  ;;  %v1863_v34 = vpop.permute.xlu1 %1862 }
0x1545   :  { %573 = vst.msk [vmem:[#allocation2] sm:$0xc] %vm572_vm4, %v570_v18  ;;  %v1865_v21 = vmul.f32 %v5188_v37, %v1863_v34 }
0x1547   :  { %1675 = vrot.lane.b32.xlu0 %v5170_v6, %s4698_s25  ;;  %1894 = vrot.lane.b32.xlu1 %v1865_v21, %s4698_s25 }
0x1548   :  { %v1015_v22 = vpop.permute.xlu0 %1014  ;;  %v794_v25 = vpop.permute.xlu1 %793 }
0x1549   :  { %1018 = vst.msk [vmem:[#allocation2] sm:$0xc0] %vm1017_vm5, %v1015_v22 }
0x154a   :  { %797 = vst.msk [vmem:[#allocation2] sm:$0x30] %vm796_vm6, %v794_v25 }
0x154c   :  { %v1459_v6 = vpop.permute.xlu0 %1458  ;;  %v1240_v28 = vpop.permute.xlu1 %1239 }
0x154d   :  { %1461 = vst.msk [vmem:[#allocation2] sm:$0x30] %vm578_vm7, %v1459_v6 }
0x154e   :  { %1242 = vst.msk [vmem:[#allocation2] sm:$0xc0] %vm357_vm8, %v1240_v28 }
0x1550   :  { %v576_v29 = vpop.permute.xlu0 %575  ;;  %v1681_v30 = vpop.permute.xlu1 %1680 }
0x1551   :  { %579 = vst.msk [vmem:[#allocation2 + $0x8] sm:$0x30] %vm578_vm7, %v576_v29 }
0x1552   :  { %1683 = vst.msk [vmem:[#allocation2] sm:$0xc] %vm802_vm9, %v1681_v30 }
0x1554   :  { %v1021_v11 = vpop.permute.xlu0 %1020  ;;  %v355_v12 = vpop.permute.xlu1 %354 }
0x1555   :  { %1024 = vst.msk [vmem:[#allocation2 + $0x8] sm:$0x3] %vm1023_vm10, %v1021_v11 }
0x1556   :  { %1237 = vst.msk [vmem:[#allocation2 + $0x8] sm:$0x3] %vm351_vm3, %v5089_v33 }
0x1557   :  { %358 = vst.msk [vmem:[#allocation2 + $0x8] sm:$0xc0] %vm357_vm8, %v355_v12 }
0x1558   :  { %v800_v7 = vpop.permute.xlu1 %799 }
0x1559   :  { %803 = vst.msk [vmem:[#allocation2 + $0x8] sm:$0xc] %vm802_vm9, %v800_v7 }
0x155c   :  { %v1454_v13 = vpop.permute.xlu1 %1453 }
0x155d   :  { %1456 = vst.msk [vmem:[#allocation2 + $0x8] sm:$0xc] %vm572_vm4, %v1454_v13 }
0x15ab   :  { %v2091_v9 = vpop.f32.mrf.mxu0 }
0x15ad   :  { %v4237_v26 = vpop.f32.mrf.mxu0 }
0x15b4   :  { %v2162_v35 = vpop.f32.mrf.mxu0 }
0x15b5   :  { %v1900_v32 = vpop.permute.xlu0 %1899  ;;  %v2167_v50 = vrot.slane %v2162_v35, 2 }
0x15b6   :  { %1902 = vst.msk [vmem:[#allocation2] sm:$0x3] %vm1023_vm10, %v1900_v32  ;;  %v4248_v37 = vpop.f32.mrf.mxu0 }
0x15b9   :  { %v1676_v24 = vpop.permute.xlu0 %1675  ;;  %v1895_v5 = vpop.permute.xlu1 %1894 }
0x15ba   :  { %1678 = vst.msk [vmem:[#allocation2 + $0x8] sm:$0x30] %vm796_vm6, %v1676_v24 }
0x15bb   :  { %1897 = vst.msk [vmem:[#allocation2 + $0x8] sm:$0xc0] %vm1017_vm5, %v1895_v5 }
0x15bd   :  { %v1903_v14 = vld [vmem:[#allocation2] sm:$0xff] }
0x15be   :  { %3847 = vmatmul.mubr.msk.f32.vlgmr.msra.gmra.mxu1 %vm1933_vm11, %v1903_v14 }
0x15bf   :  { %2010 = vmatprep.mubr.f32.mxu1 %v4695_v3  ;;  %4250 = vmatpush3.msra.mxu1 %v5228_v20 }
0x15c0   :  { %4251 = vmatprep.subr.mxu1 %v4695_v3 }
0x15c1   :  { %4252 = vmatpush3.msra.mxu1 %v5243_v56 }
0x15c2   :  { %v1904_v33 = vld [vmem:[#allocation2 + $0x8] sm:$0xff]  ;;  %4253 = vmatprep.subr.mxu1 %v4695_v3 }
0x15c3   :  { %3848 = vmatmul.mubr.msk.f32.gmra.mxu1 %vm1933_vm11, %v1904_v33 }
0x15c4   :  { %4254 = vmatpush3.msra.mxu1 %v5265_v44  ;;  %4257 = vmatprep.mubr.msk.f32.mxu1 %vm4696_vm0, %v4695_v3 }
0x15c5   :  { %4255 = vmatprep.subr.mxu1 %v4695_v3 }
0x15c6   :  { %4256 = vmatpush3.msra.mxu1 %v5274_v58 }
0x15c7   :  { %4271 = vmatprep.subr.mxu1 %v4695_v3 }
0x167e   :  { %v2006_v41 = vpop.f32.mrf.mxu1 }
0x167f   :  { %v5373_v42 = vadd.f32 %v2006_v41, %v1926_v10 }
0x1680   :  { %v2008_v43 = vpop.f32.mrf.mxu1 }
0x1681   :  { %v2095_v45 = vadd.f32 %v2091_v9, %v5373_v42  ;;  %v5376_v46 = vadd.f32 %v2008_v43, %v1930_v40 }
0x1683   :  { %4554 = vtanh.f32 %v2095_v45  ;;  %v2012_v48 = vpop.f32.mrf.mxu1  ;;  %v3849_v47 = vmul.f32 -1.442695, %v2095_v45 }
0x1684   :  { %v5378_v49 = vadd.f32 %v2012_v48, %v1926_v10 }
0x1685   :  { %v2014_v52 = vpop.f32.mrf.mxu1 }
0x1686   :  { %v5380_v54 = vadd.f32 %v2014_v52, %v1930_v40 }
0x1688   :  { %v2169_v19 = vadd.f32 %v2167_v50, %v5380_v54 }
0x168a   :  { %4556 = vtanh.f32 %v2169_v19  ;;  %v3850_v38 = vmul.f32 -1.442695, %v2169_v19 }
0x168b   :  { %4558 = vpow2.f32 %v3849_v47 }
0x168c   :  { %4560 = vpow2.f32 %v3850_v38 }
0x1690   :  { %v4555_v16 = vpop.eup %4554 }
0x1691   :  { %2179 = vrot.lane.b32.xlu1 %v4555_v16, %s4697_s4 }
0x1697   :  { %v4557_v17 = vpop.eup %4556 }
0x1698   :  { %2203 = vrot.lane.b32.xlu0 %v4557_v17, %s4697_s4  ;;  %v4559_v51 = vpop.eup %4558 }
0x1699   :  { %v2173_v27 = vadd.f32 1.0, %v4559_v51  ;;  %v4561_v53 = vpop.eup %4560 }
0x169a   :  { %v2197_v55 = vadd.f32 1.0, %v4561_v53 }
0x169b   :  { %4562 = vrcp.f32 %v2173_v27 }
0x169c   :  { %4564 = vrcp.f32 %v2197_v55 }
0x16a8   :  { %v4563_v60 = vpop.eup %4562 }
0x16a9   :  { %v4565_v23 = vpop.eup %4564  ;;  %v2177_v62 = vmul.f32 0.0, %v4563_v60 }
0x16aa   :  { %v2201_v8 = vmul.f32 0.0, %v4565_v23 }
0x1703   :  { %v2180_v36 = vpop.permute.xlu1 %2179 }
0x1704   :  { %v2182_v57 = vmul.f32 %v4563_v60, %v2180_v36 }
0x1706   :  { %2184 = vrot.lane.b32.xlu1 %v2182_v57, %s4698_s25 }
0x170a   :  { %v2204_v59 = vpop.permute.xlu0 %2203 }
0x170b   :  { %v2206_v61 = vmul.f32 %v4565_v23, %v2204_v59 }
0x170d   :  { %2208 = vrot.lane.b32.xlu0 %v2206_v61, %s4698_s25 }
0x1778   :  { %v2185_v0 = vpop.permute.xlu1 %2184 }
0x1779   :  { %v5387_v1 = vadd.f32 %v2185_v0, %v2177_v62 }
0x177b   :  { %4566 = vtanh.f32 %v5387_v1  ;;  %v2385_v16 = vrot.slane %v5387_v1, 6 }
0x177f   :  { %v2209_v15 = vpop.permute.xlu0 %2208 }
0x1780   :  { %v5390_v18 = vadd.f32 %v2209_v15, %v2201_v8 }
0x1782   :  { %4568 = vtanh.f32 %v5390_v18  ;;  %v2412_v51 = vrot.slane %v5390_v18, 2 }
0x1788   :  { %v4567_v34 = vpop.eup %4566 }
0x1789   :  { %2190 = vrot.lane.b32.xlu1 %v4567_v34, %s4697_s4 }
0x178f   :  { %v4569_v21 = vpop.eup %4568 }
0x1790   :  { %2214 = vrot.lane.b32.xlu0 %v4569_v21, %s4697_s4 }
0x17fb   :  { %v2191_v22 = vpop.permute.xlu1 %2190 }
0x17fc   :  { %v2193_v25 = vmul.f32 %v4563_v60, %v2191_v22 }
0x17fe   :  { %2219 = vrot.lane.b32.xlu0 %v2193_v25, %s4698_s25 }
0x1802   :  { %v2215_v6 = vpop.permute.xlu0 %2214 }
0x1803   :  { %v2217_v28 = vmul.f32 %v4565_v23, %v2215_v6 }
0x1805   :  { %v2298_v29 = vrot.slane %v2217_v28, 6 }
0x1807   :  { %2299 = vrot.lane.b32.xlu1 %v2298_v29, %s4698_s25 }
0x1870   :  { %v2220_v30 = vpop.permute.xlu0 %2219 }
0x1871   :  { %4258 = vmatmul.mubr.msk.f32.vlgmr.msra.gmra.mxu1 %vm150_vm2, %v2220_v30 }
0x1872   :  { %4272 = vmatpush3.msra.mxu1 %v5228_v20  ;;  %4279 = vmatprep.mubr.msk.f32.mxu1 %vm4696_vm0, %v4695_v3 }
0x1873   :  { %4273 = vmatprep.subr.mxu1 %v4695_v3 }
0x1874   :  { %4274 = vmatpush3.msra.mxu1 %v5243_v56 }
0x1875   :  { %4275 = vmatprep.subr.mxu1 %v4695_v3 }
0x1876   :  { %4276 = vmatpush3.msra.mxu1 %v5265_v44 }
0x1877   :  { %4277 = vmatprep.subr.mxu1 %v4695_v3 }
0x1878   :  { %4278 = vmatpush3.msra.mxu1 %v5274_v58 }
0x1879   :  { %v2300_v11 = vpop.permute.xlu1 %2299  ;;  %4293 = vmatprep.subr.mxu1 %v4695_v3 }
0x187a   :  { %4269 = vmatmul.mubr.msk.f32.vlgmr.msra.gmra.mxu0 %vm150_vm2, %v2300_v11 }
0x187b   :  { %4283 = vmatpush3.msra.mxu0 %v5292_v63  ;;  %4290 = vmatprep.mubr.msk.f32.mxu0 %vm4696_vm0, %v4695_v3 }
0x187c   :  { %4284 = vmatprep.subr.mxu0 %v4695_v3 }
0x187d   :  { %4285 = vmatpush3.msra.mxu0 %v5304_v31 }
0x187e   :  { %4286 = vmatprep.subr.mxu0 %v4695_v3 }
0x187f   :  { %4287 = vmatpush3.msra.mxu0 %v5311_v2 }
0x1880   :  { %4288 = vmatprep.subr.mxu0 %v4695_v3 }
0x1881   :  { %4289 = vmatpush3.msra.mxu0 %v5317_v4 }
0x1882   :  { %4304 = vmatprep.subr.mxu0 %v4695_v3 }
0x1931   :  { %v2289_v12 = vpop.f32.mrf.mxu1 }
0x1932   :  { %v2294_v7 = vrot.slane %v2289_v12, 6 }
0x1933   :  { %v4259_v13 = vpop.f32.mrf.mxu1 }
0x1934   :  { %v2296_v32 = vadd.f32 %v2294_v7, %v5373_v42 }
0x1936   :  { %4570 = vtanh.f32 %v2296_v32  ;;  %v3853_v35 = vmul.f32 -1.442695, %v2296_v32 }
0x193a   :  { %v2369_v24 = vpop.f32.mrf.mxu0 }
0x193b   :  { %v2374_v5 = vrot.slane %v2369_v24, 4 }
0x193c   :  { %v4270_v14 = vpop.f32.mrf.mxu0 }
0x193d   :  { %v2376_v33 = vadd.f32 %v2374_v5, %v5380_v54 }
0x193f   :  { %4572 = vtanh.f32 %v2376_v33  ;;  %v3854_v37 = vmul.f32 -1.442695, %v2376_v33 }
0x1940   :  { %4574 = vpow2.f32 %v3853_v35 }
0x1941   :  { %4576 = vpow2.f32 %v3854_v37 }
0x1943   :  { %v4571_v9 = vpop.eup %4570 }
0x1944   :  { %2389 = vrot.lane.b32.xlu0 %v4571_v9, %s4697_s4 }
0x194c   :  { %v4573_v26 = vpop.eup %4572 }
0x194d   :  { %2416 = vrot.lane.b32.xlu1 %v4573_v26, %s4697_s4  ;;  %v4575_v39 = vpop.eup %4574 }
0x194e   :  { %v2380_v10 = vadd.f32 1.0, %v4575_v39  ;;  %v4577_v40 = vpop.eup %4576 }
0x194f   :  { %v2407_v41 = vadd.f32 1.0, %v4577_v40 }
0x1950   :  { %4578 = vrcp.f32 %v2380_v10 }
0x1951   :  { %4580 = vrcp.f32 %v2407_v41 }
0x195d   :  { %v4579_v43 = vpop.eup %4578 }
0x195e   :  { %v4581_v50 = vpop.eup %4580  ;;  %v2387_v17 = vmul.f32 %v4579_v43, %v2385_v16 }
0x195f   :  { %v2414_v27 = vmul.f32 %v4581_v50, %v2412_v51 }
0x19b6   :  { %v2390_v45 = vpop.permute.xlu0 %2389 }
0x19b7   :  { %v2392_v48 = vmul.f32 %v4579_v43, %v2390_v45 }
0x19b9   :  { %2394 = vrot.lane.b32.xlu0 %v2392_v48, %s4698_s25 }
0x19bf   :  { %v2417_v52 = vpop.permute.xlu1 %2416 }
0x19c0   :  { %v2419_v19 = vmul.f32 %v4581_v50, %v2417_v52 }
0x19c2   :  { %2421 = vrot.lane.b32.xlu1 %v2419_v19, %s4698_s25 }
0x1a2b   :  { %v2395_v47 = vpop.permute.xlu0 %2394 }
0x1a2c   :  { %v5426_v38 = vadd.f32 %v2395_v47, %v2387_v17 }
0x1a2e   :  { %4582 = vtanh.f32 %v5426_v38  ;;  %v2599_v37 = vrot.slane %v5426_v38, 6 }
0x1a34   :  { %v2422_v53 = vpop.permute.xlu1 %2421 }
0x1a35   :  { %v5430_v55 = vadd.f32 %v2422_v53, %v2414_v27 }
0x1a37   :  { %4584 = vtanh.f32 %v5430_v55  ;;  %v2626_v41 = vrot.slane %v5430_v55, 2 }
0x1a3b   :  { %v4583_v60 = vpop.eup %4582 }
0x1a3c   :  { %2400 = vrot.lane.b32.xlu0 %v4583_v60, %s4697_s4 }
0x1a44   :  { %v4585_v36 = vpop.eup %4584 }
0x1a45   :  { %2427 = vrot.lane.b32.xlu1 %v4585_v36, %s4697_s4 }
0x1aae   :  { %v2401_v57 = vpop.permute.xlu0 %2400 }
0x1aaf   :  { %v2403_v23 = vmul.f32 %v4579_v43, %v2401_v57 }
0x1ab1   :  { %v2432_v59 = vrot.slane %v2403_v23, 2 }
0x1ab3   :  { %2433 = vrot.lane.b32.xlu0 %v2432_v59, %s4698_s25 }
0x1ab7   :  { %v2428_v61 = vpop.permute.xlu1 %2427 }
0x1ab8   :  { %v2430_v62 = vmul.f32 %v4581_v50, %v2428_v61 }
0x1aba   :  { %v2512_v0 = vrot.slane %v2430_v62, 4 }
0x1abc   :  { %2513 = vrot.lane.b32.xlu1 %v2512_v0, %s4698_s25 }
0x1b25   :  { %v2434_v1 = vpop.permute.xlu0 %2433 }
0x1b26   :  { %4280 = vmatmul.mubr.msk.f32.vlgmr.msra.gmra.mxu1 %vm150_vm2, %v2434_v1 }
0x1b27   :  { %4294 = vmatpush3.msra.mxu1 %v5228_v20  ;;  %4301 = vmatprep.mubr.msk.f32.mxu1 %vm4696_vm0, %v4695_v3 }
0x1b28   :  { %4295 = vmatprep.subr.mxu1 %v4695_v3 }
0x1b29   :  { %4296 = vmatpush3.msra.mxu1 %v5243_v56 }
0x1b2a   :  { %4297 = vmatprep.subr.mxu1 %v4695_v3 }
0x1b2b   :  { %4298 = vmatpush3.msra.mxu1 %v5265_v44 }
0x1b2c   :  { %4299 = vmatprep.subr.mxu1 %v4695_v3 }
0x1b2d   :  { %4300 = vmatpush3.msra.mxu1 %v5274_v58 }
0x1b2e   :  { %v2514_v8 = vpop.permute.xlu1 %2513  ;;  %4315 = vmatprep.subr.mxu1 %v4695_v3 }
0x1b2f   :  { %4291 = vmatmul.mubr.msk.f32.vlgmr.msra.gmra.mxu0 %vm150_vm2, %v2514_v8 }
0x1b30   :  { %4305 = vmatpush3.msra.mxu0 %v5292_v63  ;;  %4312 = vmatprep.mubr.msk.f32.mxu0 %vm4696_vm0, %v4695_v3 }
0x1b31   :  { %4306 = vmatprep.subr.mxu0 %v4695_v3 }
0x1b32   :  { %4307 = vmatpush3.msra.mxu0 %v5304_v31 }
0x1b33   :  { %4308 = vmatprep.subr.mxu0 %v4695_v3 }
0x1b34   :  { %4309 = vmatpush3.msra.mxu0 %v5311_v2 }
0x1b35   :  { %4310 = vmatprep.subr.mxu0 %v4695_v3 }
0x1b36   :  { %4311 = vmatpush3.msra.mxu0 %v5317_v4 }
0x1b37   :  { %4326 = vmatprep.subr.mxu0 %v4695_v3 }
0x1be6   :  { %v2503_v15 = vpop.f32.mrf.mxu1 }
0x1be7   :  { %v2508_v18 = vrot.slane %v2503_v15, 4 }
0x1be8   :  { %v4281_v34 = vpop.f32.mrf.mxu1 }
0x1be9   :  { %v2510_v21 = vadd.f32 %v2508_v18, %v5373_v42 }
0x1beb   :  { %4586 = vtanh.f32 %v2510_v21  ;;  %v3857_v11 = vmul.f32 -1.442695, %v2510_v21 }
0x1bef   :  { %v2583_v22 = vpop.f32.mrf.mxu0 }
0x1bf0   :  { %v2588_v25 = vrot.slane %v2583_v22, 6 }
0x1bf1   :  { %v4292_v6 = vpop.f32.mrf.mxu0 }
0x1bf2   :  { %v2590_v28 = vadd.f32 %v2588_v25, %v5380_v54 }
0x1bf4   :  { %4588 = vtanh.f32 %v2590_v28  ;;  %v3858_v12 = vmul.f32 -1.442695, %v2590_v28 }
0x1bf5   :  { %4590 = vpow2.f32 %v3857_v11 }
0x1bf6   :  { %4592 = vpow2.f32 %v3858_v12 }
0x1bf8   :  { %v4587_v29 = vpop.eup %4586 }
0x1bf9   :  { %2603 = vrot.lane.b32.xlu0 %v4587_v29, %s4697_s4 }
0x1c01   :  { %v4589_v30 = vpop.eup %4588 }
0x1c02   :  { %2630 = vrot.lane.b32.xlu1 %v4589_v30, %s4697_s4  ;;  %v4591_v7 = vpop.eup %4590 }
0x1c03   :  { %v2594_v13 = vadd.f32 1.0, %v4591_v7  ;;  %v4593_v32 = vpop.eup %4592 }
0x1c04   :  { %v2621_v24 = vadd.f32 1.0, %v4593_v32 }
0x1c05   :  { %4594 = vrcp.f32 %v2594_v13 }
0x1c06   :  { %4596 = vrcp.f32 %v2621_v24 }
0x1c12   :  { %v4595_v5 = vpop.eup %4594 }
0x1c13   :  { %v4597_v9 = vpop.eup %4596  ;;  %v2601_v39 = vmul.f32 %v4595_v5, %v2599_v37 }
0x1c14   :  { %v2628_v43 = vmul.f32 %v4597_v9, %v2626_v41 }
0x1c6b   :  { %v2604_v14 = vpop.permute.xlu0 %2603 }
0x1c6c   :  { %v2606_v33 = vmul.f32 %v4595_v5, %v2604_v14 }
0x1c6e   :  { %2608 = vrot.lane.b32.xlu0 %v2606_v33, %s4698_s25 }
0x1c74   :  { %v2631_v26 = vpop.permute.xlu1 %2630 }
0x1c75   :  { %v2633_v35 = vmul.f32 %v4597_v9, %v2631_v26 }
0x1c77   :  { %2635 = vrot.lane.b32.xlu1 %v2633_v35, %s4698_s25 }
0x1ce0   :  { %v2609_v10 = vpop.permute.xlu0 %2608 }
0x1ce1   :  { %v5466_v40 = vadd.f32 %v2609_v10, %v2601_v39 }
0x1ce3   :  { %4598 = vtanh.f32 %v5466_v40  ;;  %v2810_v29 = vrot.slane %v5466_v40, 6 }
0x1ce9   :  { %v2636_v45 = vpop.permute.xlu1 %2635 }
0x1cea   :  { %v5470_v48 = vadd.f32 %v2636_v45, %v2628_v43 }
0x1cec   :  { %4600 = vtanh.f32 %v5470_v48  ;;  %v2837_v7 = vrot.slane %v5470_v48, 2 }
0x1cf0   :  { %v4599_v50 = vpop.eup %4598 }
0x1cf1   :  { %2614 = vrot.lane.b32.xlu0 %v4599_v50, %s4697_s4 }
0x1cf9   :  { %v4601_v52 = vpop.eup %4600 }
0x1cfa   :  { %2641 = vrot.lane.b32.xlu1 %v4601_v52, %s4697_s4 }
0x1d63   :  { %v2615_v19 = vpop.permute.xlu0 %2614 }
0x1d64   :  { %v2617_v16 = vmul.f32 %v4595_v5, %v2615_v19 }
0x1d66   :  { %v2646_v17 = vrot.slane %v2617_v16, 4 }
0x1d68   :  { %2647 = vrot.lane.b32.xlu0 %v2646_v17, %s4698_s25 }
0x1d6c   :  { %v2642_v47 = vpop.permute.xlu1 %2641 }
0x1d6d   :  { %v2644_v38 = vmul.f32 %v4597_v9, %v2642_v47 }
0x1d6f   :  { %v2726_v51 = vrot.slane %v2644_v38, 2 }
0x1d71   :  { %2727 = vrot.lane.b32.xlu1 %v2726_v51, %s4698_s25 }
0x1dda   :  { %v2648_v27 = vpop.permute.xlu0 %2647 }
0x1ddb   :  { %4302 = vmatmul.mubr.msk.f32.vlgmr.msra.gmra.mxu1 %vm150_vm2, %v2648_v27 }
0x1ddc   :  { %4316 = vmatpush3.msra.mxu1 %v5228_v20  ;;  %4323 = vmatprep.mubr.msk.f32.mxu1 %vm4696_vm0, %v4695_v3 }
0x1ddd   :  { %4317 = vmatprep.subr.mxu1 %v4695_v3 }
0x1dde   :  { %4318 = vmatpush3.msra.mxu1 %v5243_v56 }
0x1ddf   :  { %4319 = vmatprep.subr.mxu1 %v4695_v3 }
0x1de0   :  { %4320 = vmatpush3.msra.mxu1 %v5265_v44 }
0x1de1   :  { %4321 = vmatprep.subr.mxu1 %v4695_v3 }
0x1de2   :  { %4322 = vmatpush3.msra.mxu1 %v5274_v58 }
0x1de3   :  { %v2728_v53 = vpop.permute.xlu1 %2727  ;;  %4337 = vmatprep.subr.mxu1 %v4695_v3 }
0x1de4   :  { %4313 = vmatmul.mubr.msk.f32.vlgmr.msra.gmra.mxu0 %vm150_vm2, %v2728_v53 }
0x1de5   :  { %4327 = vmatpush3.msra.mxu0 %v5292_v63  ;;  %4334 = vmatprep.mubr.msk.f32.mxu0 %vm4696_vm0, %v4695_v3 }
0x1de6   :  { %4328 = vmatprep.subr.mxu0 %v4695_v3 }
0x1de7   :  { %4329 = vmatpush3.msra.mxu0 %v5304_v31 }
0x1de8   :  { %4330 = vmatprep.subr.mxu0 %v4695_v3 }
0x1de9   :  { %4331 = vmatpush3.msra.mxu0 %v5311_v2 }
0x1dea   :  { %4332 = vmatprep.subr.mxu0 %v4695_v3 }
0x1deb   :  { %4333 = vmatpush3.msra.mxu0 %v5317_v4 }
0x1dec   :  { %4348 = vmatprep.subr.mxu0 %v4695_v3 }
0x1e9b   :  { %v2717_v55 = vpop.f32.mrf.mxu1 }
0x1e9c   :  { %v2722_v60 = vrot.slane %v2717_v55, 2 }
0x1e9d   :  { %v4303_v36 = vpop.f32.mrf.mxu1 }
0x1e9e   :  { %v2724_v57 = vadd.f32 %v2722_v60, %v5373_v42 }
0x1ea0   :  { %4602 = vtanh.f32 %v2724_v57  ;;  %v3861_v1 = vmul.f32 -1.442695, %v2724_v57 }
0x1ea4   :  { %v2797_v23 = vpop.f32.mrf.mxu0 }
0x1ea5   :  { %v2801_v59 = vadd.f32 %v2797_v23, %v5380_v54 }
0x1ea6   :  { %v4314_v61 = vpop.f32.mrf.mxu0 }
0x1ea7   :  { %4604 = vtanh.f32 %v2801_v59  ;;  %v3862_v8 = vmul.f32 -1.442695, %v2801_v59 }
0x1ea8   :  { %4606 = vpow2.f32 %v3861_v1 }
0x1ea9   :  { %4608 = vpow2.f32 %v3862_v8 }
0x1ead   :  { %v4603_v62 = vpop.eup %4602 }
0x1eae   :  { %2814 = vrot.lane.b32.xlu1 %v4603_v62, %s4697_s4 }
0x1eb4   :  { %v4605_v0 = vpop.eup %4604 }
0x1eb5   :  { %2841 = vrot.lane.b32.xlu0 %v4605_v0, %s4697_s4  ;;  %v4607_v15 = vpop.eup %4606 }
0x1eb6   :  { %v2805_v18 = vadd.f32 1.0, %v4607_v15  ;;  %v4609_v34 = vpop.eup %4608 }
0x1eb7   :  { %v2832_v42 = vadd.f32 1.0, %v4609_v34 }
0x1eb8   :  { %4610 = vrcp.f32 %v2805_v18 }
0x1eb9   :  { %4612 = vrcp.f32 %v2832_v42 }
0x1ec5   :  { %v4611_v21 = vpop.eup %4610 }
0x1ec6   :  { %v4613_v25 = vpop.eup %4612  ;;  %v2812_v30 = vmul.f32 %v4611_v21, %v2810_v29 }
0x1ec7   :  { %v2839_v13 = vmul.f32 %v4613_v25, %v2837_v7 }
0x1f20   :  { %v2815_v54 = vpop.permute.xlu1 %2814 }
0x1f21   :  { %v2817_v22 = vmul.f32 %v4611_v21, %v2815_v54 }
0x1f23   :  { %2819 = vrot.lane.b32.xlu1 %v2817_v22, %s4698_s25 }
0x1f27   :  { %v2842_v6 = vpop.permute.xlu0 %2841 }
0x1f28   :  { %v2844_v28 = vmul.f32 %v4613_v25, %v2842_v6 }
0x1f2a   :  { %2846 = vrot.lane.b32.xlu0 %v2844_v28, %s4698_s25 }
0x1f95   :  { %v2820_v11 = vpop.permute.xlu1 %2819 }
0x1f96   :  { %v5506_v12 = vadd.f32 %v2820_v11, %v2812_v30 }
0x1f98   :  { %4614 = vtanh.f32 %v5506_v12  ;;  %v3020_v61 = vrot.slane %v5506_v12, 6 }
0x1f9c   :  { %v2847_v32 = vpop.permute.xlu0 %2846 }
0x1f9d   :  { %v5510_v24 = vadd.f32 %v2847_v32, %v2839_v13 }
0x1f9f   :  { %4616 = vtanh.f32 %v5510_v24  ;;  %v3047_v8 = vrot.slane %v5510_v24, 2 }
0x1fa5   :  { %v4615_v5 = vpop.eup %4614 }
0x1fa6   :  { %2825 = vrot.lane.b32.xlu1 %v4615_v5, %s4697_s4 }
0x1fac   :  { %v4617_v14 = vpop.eup %4616 }
0x1fad   :  { %2852 = vrot.lane.b32.xlu0 %v4617_v14, %s4697_s4 }
0x2018   :  { %v2826_v33 = vpop.permute.xlu1 %2825 }
0x2019   :  { %v2828_v9 = vmul.f32 %v4611_v21, %v2826_v33 }
0x201b   :  { %v2857_v26 = vrot.slane %v2828_v9, 6 }
0x201d   :  { %2858 = vrot.lane.b32.xlu1 %v2857_v26, %s4698_s25 }
0x201f   :  { %v2853_v35 = vpop.permute.xlu0 %2852 }
0x2020   :  { %v2855_v37 = vmul.f32 %v4613_v25, %v2853_v35 }
0x2022   :  { %2934 = vrot.lane.b32.xlu0 %v2855_v37, %s4698_s25 }
0x208f   :  { %v2859_v39 = vpop.permute.xlu1 %2858 }
0x2090   :  { %4324 = vmatmul.mubr.msk.f32.vlgmr.msra.gmra.mxu1 %vm150_vm2, %v2859_v39 }
0x2091   :  { %4338 = vmatpush3.msra.mxu1 %v5228_v20  ;;  %4345 = vmatprep.mubr.msk.f32.mxu1 %vm4696_vm0, %v4695_v3 }
0x2092   :  { %4339 = vmatprep.subr.mxu1 %v4695_v3 }
0x2093   :  { %4340 = vmatpush3.msra.mxu1 %v5243_v56 }
0x2094   :  { %v2935_v10 = vpop.permute.xlu0 %2934  ;;  %4341 = vmatprep.subr.mxu1 %v4695_v3 }
0x2095   :  { %4335 = vmatmul.mubr.msk.f32.vlgmr.msra.gmra.mxu0 %vm150_vm2, %v2935_v10  ;;  %4342 = vmatpush3.msra.mxu1 %v5265_v44 }
0x2096   :  { %4343 = vmatprep.subr.mxu1 %v4695_v3  ;;  %4349 = vmatpush3.msra.mxu0 %v5292_v63 }
0x2097   :  { %4344 = vmatpush3.msra.mxu1 %v5274_v58  ;;  %4350 = vmatprep.subr.mxu0 %v4695_v3 }
0x2098   :  { %4351 = vmatpush3.msra.mxu0 %v5304_v31  ;;  %4356 = vmatprep.mubr.msk.f32.mxu0 %vm4696_vm0, %v4695_v3 }
0x2099   :  { %4352 = vmatprep.subr.mxu0 %v4695_v3  ;;  %4359 = vmatprep.subr.mxu1 %v4695_v3 }
0x209a   :  { %4353 = vmatpush3.msra.mxu0 %v5311_v2 }
0x209b   :  { %4354 = vmatprep.subr.mxu0 %v4695_v3 }
0x209c   :  { %4355 = vmatpush3.msra.mxu0 %v5317_v4 }
0x209d   :  { %4370 = vmatprep.subr.mxu0 %v4695_v3 }
0x2150   :  { %v2928_v40 = vpop.f32.mrf.mxu1 }
0x2151   :  { %v2932_v41 = vadd.f32 %v2928_v40, %v5378_v49 }
0x2152   :  { %v4325_v43 = vpop.f32.mrf.mxu1 }
0x2153   :  { %4618 = vtanh.f32 %v2932_v41  ;;  %v3865_v17 = vmul.f32 -1.442695, %v2932_v41 }
0x2155   :  { %v3004_v45 = vpop.f32.mrf.mxu0 }
0x2156   :  { %v3009_v48 = vrot.slane %v3004_v45, 2 }
0x2157   :  { %v4336_v50 = vpop.f32.mrf.mxu0 }
0x2158   :  { %v3011_v52 = vadd.f32 %v3009_v48, %v5376_v46 }
0x215a   :  { %4620 = vtanh.f32 %v3011_v52  ;;  %v3866_v47 = vmul.f32 -1.442695, %v3011_v52 }
0x215b   :  { %4622 = vpow2.f32 %v3865_v17 }
0x215c   :  { %4624 = vpow2.f32 %v3866_v47 }
0x2160   :  { %v4619_v19 = vpop.eup %4618 }
0x2161   :  { %3024 = vrot.lane.b32.xlu1 %v4619_v19, %s4697_s4 }
0x2167   :  { %v4621_v16 = vpop.eup %4620 }
0x2168   :  { %3051 = vrot.lane.b32.xlu0 %v4621_v16, %s4697_s4  ;;  %v4623_v38 = vpop.eup %4622 }
0x2169   :  { %v3015_v51 = vadd.f32 1.0, %v4623_v38  ;;  %v4625_v27 = vpop.eup %4624 }
0x216a   :  { %v3042_v53 = vadd.f32 1.0, %v4625_v27 }
0x216b   :  { %4626 = vrcp.f32 %v3015_v51 }
0x216c   :  { %4628 = vrcp.f32 %v3042_v53 }
0x2178   :  { %v4627_v55 = vpop.eup %4626 }
0x2179   :  { %v4629_v57 = vpop.eup %4628  ;;  %v3022_v62 = vmul.f32 %v4627_v55, %v3020_v61  ;;  %v4691_v61 = vld [vmem:[%s5706_s7 + $0x18] sm:$0xff] }
0x217a   :  { %v3049_v15 = vmul.f32 %v4629_v57, %v3047_v8 }
0x21d3   :  { %v3025_v60 = vpop.permute.xlu1 %3024 }
0x21d4   :  { %v3027_v36 = vmul.f32 %v4627_v55, %v3025_v60  ;;  %v4687_v60 = vld [vmem:[%s5705_s6 + $0x18] sm:$0xff] }
0x21d6   :  { %3029 = vrot.lane.b32.xlu1 %v3027_v36, %s4698_s25  ;;  %v4688_v36 = vld [vmem:[%s5705_s6 + $0x10] sm:$0xff] }
0x21da   :  { %v3052_v23 = vpop.permute.xlu0 %3051 }
0x21db   :  { %v3054_v59 = vmul.f32 %v4629_v57, %v3052_v23  ;;  %v4690_v23 = vld [vmem:[%s5705_s6] sm:$0xff] }
0x21dd   :  { %3056 = vrot.lane.b32.xlu0 %v3054_v59, %s4698_s25 }
0x2248   :  { %v3030_v0 = vpop.permute.xlu1 %3029 }
0x2249   :  { %v5546_v1 = vadd.f32 %v3030_v0, %v3022_v62  ;;  %v4692_v62 = vld [vmem:[%s5706_s7 + $0x10] sm:$0xff]  ;;  %v4693_v0 = vld [vmem:[%s5706_s7 + $0x8] sm:$0xff] }
0x224b   :  { %4630 = vtanh.f32 %v5546_v1  ;;  %v3233_v10 = vrot.slane %v5546_v1, 6  ;;  %v4694_v1 = vld [vmem:[%s5706_s7] sm:$0xff] }
0x224f   :  { %v3057_v18 = vpop.permute.xlu0 %3056 }
0x2250   :  { %v5550_v34 = vadd.f32 %v3057_v18, %v3049_v15 }
0x2252   :  { %4632 = vtanh.f32 %v5550_v34  ;;  %v3260_v45 = vrot.slane %v5550_v34, 2 }
0x2258   :  { %v4631_v42 = vpop.eup %4630 }
0x2259   :  { %3035 = vrot.lane.b32.xlu1 %v4631_v42, %s4697_s4 }
0x225f   :  { %v4633_v21 = vpop.eup %4632 }
0x2260   :  { %3062 = vrot.lane.b32.xlu0 %v4633_v21, %s4697_s4 }
0x22cb   :  { %v3036_v54 = vpop.permute.xlu1 %3035 }
0x22cc   :  { %v3038_v22 = vmul.f32 %v4627_v55, %v3036_v54 }
0x22ce   :  { %3067 = vrot.lane.b32.xlu0 %v3038_v22, %s4698_s25 }
0x22d2   :  { %v3063_v25 = vpop.permute.xlu0 %3062 }
0x22d3   :  { %v3065_v6 = vmul.f32 %v4629_v57, %v3063_v25  ;;  %v4689_v57 = vld [vmem:[%s5705_s6 + $0x8] sm:$0xff] }
0x22d5   :  { %v3146_v28 = vrot.slane %v3065_v6, 6 }
0x22d7   :  { %3147 = vrot.lane.b32.xlu1 %v3146_v28, %s4698_s25 }
0x2340   :  { %v3068_v29 = vpop.permute.xlu0 %3067 }
0x2341   :  { %4346 = vmatmul.mubr.msk.f32.vlgmr.msra.gmra.mxu1 %vm150_vm2, %v3068_v29 }
0x2342   :  { %4360 = vmatpush3.msra.mxu1 %v5228_v20  ;;  %4367 = vmatprep.mubr.msk.f32.mxu1 %vm4696_vm0, %v4695_v3 }
0x2343   :  { %4361 = vmatprep.subr.mxu1 %v4695_v3 }
0x2344   :  { %4362 = vmatpush3.msra.mxu1 %v5243_v56 }
0x2345   :  { %4363 = vmatprep.subr.mxu1 %v4695_v3 }
0x2346   :  { %4364 = vmatpush3.msra.mxu1 %v5265_v44 }
0x2347   :  { %4365 = vmatprep.subr.mxu1 %v4695_v3 }
0x2348   :  { %4366 = vmatpush3.msra.mxu1 %v5274_v58 }
0x2349   :  { %v3148_v30 = vpop.permute.xlu1 %3147  ;;  %4381 = vmatprep.subr.mxu1 %v4695_v3 }
0x234a   :  { %4357 = vmatmul.mubr.msk.f32.vlgmr.msra.gmra.mxu0 %vm150_vm2, %v3148_v30 }
0x234b   :  { %4371 = vmatpush3.msra.mxu0 %v5292_v63  ;;  %4378 = vmatprep.mubr.msk.f32.mxu0 %vm4696_vm0, %v4695_v3 }
0x234c   :  { %4372 = vmatprep.subr.mxu0 %v4695_v3 }
0x234d   :  { %4373 = vmatpush3.msra.mxu0 %v5304_v31 }
0x234e   :  { %4374 = vmatprep.subr.mxu0 %v4695_v3 }
0x234f   :  { %4375 = vmatpush3.msra.mxu0 %v5311_v2 }
0x2350   :  { %4376 = vmatprep.subr.mxu0 %v4695_v3 }
0x2351   :  { %4377 = vmatpush3.msra.mxu0 %v5317_v4 }
0x2352   :  { %4392 = vmatprep.subr.mxu0 %v4695_v3 }
0x2401   :  { %v3137_v20 = vpop.f32.mrf.mxu1 }
0x2402   :  { %v3142_v56 = vrot.slane %v3137_v20, 6 }
0x2403   :  { %v4347_v44 = vpop.f32.mrf.mxu1 }
0x2404   :  { %v3144_v58 = vadd.f32 %v3142_v56, %v5378_v49 }
0x2406   :  { %4634 = vtanh.f32 %v3144_v58  ;;  %v3869_v4 = vmul.f32 -1.442695, %v3144_v58 }
0x240a   :  { %v3217_v63 = vpop.f32.mrf.mxu0 }
0x240b   :  { %v3222_v11 = vrot.slane %v3217_v63, 4 }
0x240c   :  { %v4358_v12 = vpop.f32.mrf.mxu0 }
0x240d   :  { %v3224_v31 = vadd.f32 %v3222_v11, %v5376_v46 }
0x240f   :  { %4636 = vtanh.f32 %v3224_v31  ;;  %v3870_v13 = vmul.f32 -1.442695, %v3224_v31 }
0x2410   :  { %4638 = vpow2.f32 %v3869_v4 }
0x2411   :  { %4640 = vpow2.f32 %v3870_v13 }
0x2413   :  { %v4635_v7 = vpop.eup %4634 }
0x2414   :  { %3237 = vrot.lane.b32.xlu0 %v4635_v7, %s4697_s4 }
0x241c   :  { %v4637_v2 = vpop.eup %4636 }
0x241d   :  { %3264 = vrot.lane.b32.xlu1 %v4637_v2, %s4697_s4  ;;  %v4639_v32 = vpop.eup %4638 }
0x241e   :  { %v3228_v24 = vadd.f32 1.0, %v4639_v32  ;;  %v4641_v5 = vpop.eup %4640 }
0x241f   :  { %v3255_v14 = vadd.f32 1.0, %v4641_v5 }
0x2420   :  { %4642 = vrcp.f32 %v3228_v24 }
0x2421   :  { %4644 = vrcp.f32 %v3255_v14 }
0x242d   :  { %v4643_v33 = vpop.eup %4642 }
0x242e   :  { %v4645_v35 = vpop.eup %4644  ;;  %v3235_v40 = vmul.f32 %v4643_v33, %v3233_v10 }
0x242f   :  { %v3262_v48 = vmul.f32 %v4645_v35, %v3260_v45 }
0x2486   :  { %v3238_v9 = vpop.permute.xlu0 %3237 }
0x2487   :  { %v3240_v26 = vmul.f32 %v4643_v33, %v3238_v9 }
0x2489   :  { %3242 = vrot.lane.b32.xlu0 %v3240_v26, %s4698_s25 }
0x248f   :  { %v3265_v37 = vpop.permute.xlu1 %3264 }
0x2490   :  { %v3267_v39 = vmul.f32 %v4645_v35, %v3265_v37 }
0x2492   :  { %3269 = vrot.lane.b32.xlu1 %v3267_v39, %s4698_s25 }
0x24fb   :  { %v3243_v41 = vpop.permute.xlu0 %3242 }
0x24fc   :  { %v5586_v43 = vadd.f32 %v3243_v41, %v3235_v40 }
0x24fe   :  { %4646 = vtanh.f32 %v5586_v43  ;;  %v3447_v2 = vrot.slane %v5586_v43, 6 }
0x2504   :  { %v3270_v50 = vpop.permute.xlu1 %3269 }
0x2505   :  { %v5590_v52 = vadd.f32 %v3270_v50, %v3262_v48 }
0x2507   :  { %4648 = vtanh.f32 %v5590_v52  ;;  %v3474_v24 = vrot.slane %v5590_v52, 2 }
0x250b   :  { %v4647_v19 = vpop.eup %4646 }
0x250c   :  { %3248 = vrot.lane.b32.xlu0 %v4647_v19, %s4697_s4 }
0x2514   :  { %v4649_v16 = vpop.eup %4648 }
0x2515   :  { %3275 = vrot.lane.b32.xlu1 %v4649_v16, %s4697_s4 }
0x257e   :  { %v3249_v17 = vpop.permute.xlu0 %3248 }
0x257f   :  { %v3251_v47 = vmul.f32 %v4643_v33, %v3249_v17 }
0x2581   :  { %v3280_v38 = vrot.slane %v3251_v47, 2 }
0x2583   :  { %3281 = vrot.lane.b32.xlu0 %v3280_v38, %s4698_s25 }
0x2587   :  { %v3276_v51 = vpop.permute.xlu1 %3275 }
0x2588   :  { %v3278_v27 = vmul.f32 %v4645_v35, %v3276_v51 }
0x258a   :  { %v3360_v53 = vrot.slane %v3278_v27, 4 }
0x258c   :  { %3361 = vrot.lane.b32.xlu1 %v3360_v53, %s4698_s25 }
0x25f5   :  { %v3282_v55 = vpop.permute.xlu0 %3281 }
0x25f6   :  { %4368 = vmatmul.mubr.msk.f32.vlgmr.msra.gmra.mxu1 %vm150_vm2, %v3282_v55 }
0x25f7   :  { %4382 = vmatpush3.msra.mxu1 %v4687_v60  ;;  %4389 = vmatprep.mubr.msk.f32.mxu1 %vm4696_vm0, %v4695_v3 }
0x25f8   :  { %4383 = vmatprep.subr.mxu1 %v4695_v3 }
0x25f9   :  { %4384 = vmatpush3.msra.mxu1 %v4688_v36 }
0x25fa   :  { %4385 = vmatprep.subr.mxu1 %v4695_v3 }
0x25fb   :  { %4386 = vmatpush3.msra.mxu1 %v4689_v57 }
0x25fc   :  { %4387 = vmatprep.subr.mxu1 %v4695_v3 }
0x25fd   :  { %4388 = vmatpush3.msra.mxu1 %v4690_v23 }
0x25fe   :  { %v3362_v59 = vpop.permute.xlu1 %3361  ;;  %4403 = vmatprep.subr.mxu1 %v4695_v3 }
0x25ff   :  { %4379 = vmatmul.mubr.msk.f32.vlgmr.msra.gmra.mxu0 %vm150_vm2, %v3362_v59 }
0x2600   :  { %4393 = vmatpush3.msra.mxu0 %v4691_v61  ;;  %4400 = vmatprep.mubr.msk.f32.mxu0 %vm4696_vm0, %v4695_v3 }
0x2601   :  { %4394 = vmatprep.subr.mxu0 %v4695_v3 }
0x2602   :  { %4395 = vmatpush3.msra.mxu0 %v4692_v62 }
0x2603   :  { %4396 = vmatprep.subr.mxu0 %v4695_v3 }
0x2604   :  { %4397 = vmatpush3.msra.mxu0 %v4693_v0 }
0x2605   :  { %4398 = vmatprep.subr.mxu0 %v4695_v3 }
0x2606   :  { %4399 = vmatpush3.msra.mxu0 %v4694_v1 }
0x26b6   :  { %v3351_v8 = vpop.f32.mrf.mxu1 }
0x26b7   :  { %v3356_v15 = vrot.slane %v3351_v8, 4 }
0x26b8   :  { %v4369_v18 = vpop.f32.mrf.mxu1 }
0x26b9   :  { %v3358_v34 = vadd.f32 %v3356_v15, %v5378_v49 }
0x26bb   :  { %4650 = vtanh.f32 %v3358_v34  ;;  %v3873_v28 = vmul.f32 -1.442695, %v3358_v34 }
0x26bf   :  { %v3431_v42 = vpop.f32.mrf.mxu0 }
0x26c0   :  { %v3436_v21 = vrot.slane %v3431_v42, 6 }
0x26c1   :  { %v4380_v54 = vpop.f32.mrf.mxu0 }
0x26c2   :  { %v3438_v22 = vadd.f32 %v3436_v21, %v5376_v46 }
0x26c4   :  { %4652 = vtanh.f32 %v3438_v22  ;;  %v3874_v29 = vmul.f32 -1.442695, %v3438_v22  ;;  %v3721_v22 = vld [vmem:[%s5708_s9 + $0x38] sm:$0xff] }
0x26c5   :  { %4654 = vpow2.f32 %v3873_v28  ;;  %v3719_v28 = vld [vmem:[%s5708_s9 + $0x28] sm:$0xff] }
0x26c6   :  { %4656 = vpow2.f32 %v3874_v29  ;;  %v3718_v29 = vld [vmem:[%s5708_s9 + $0x20] sm:$0xff] }
0x26c8   :  { %v4651_v25 = vpop.eup %4650 }
0x26c9   :  { %3451 = vrot.lane.b32.xlu0 %v4651_v25, %s4697_s4  ;;  %v3720_v25 = vld [vmem:[%s5708_s9 + $0x30] sm:$0xff] }
0x26d1   :  { %v4653_v6 = vpop.eup %4652 }
0x26d2   :  { %3478 = vrot.lane.b32.xlu1 %v4653_v6, %s4697_s4  ;;  %v4655_v30 = vpop.eup %4654 }
0x26d3   :  { %v3442_v20 = vadd.f32 1.0, %v4655_v30  ;;  %v4657_v56 = vpop.eup %4656  ;;  %v3717_v30 = vld [vmem:[%s5708_s9 + $0x18] sm:$0xff] }
0x26d4   :  { %v3469_v44 = vadd.f32 1.0, %v4657_v56  ;;  %v3715_v56 = vld [vmem:[%s5708_s9 + $0x8] sm:$0xff] }
0x26d5   :  { %4658 = vrcp.f32 %v3442_v20  ;;  %v3716_v20 = vld [vmem:[%s5708_s9 + $0x10] sm:$0xff] }
0x26d6   :  { %4660 = vrcp.f32 %v3469_v44 }
0x26e2   :  { %v4659_v58 = vpop.eup %4658 }
0x26e3   :  { %v4661_v12 = vpop.eup %4660  ;;  %v3449_v4 = vmul.f32 %v4659_v58, %v3447_v2 }
0x26e4   :  { %v3476_v5 = vmul.f32 %v4661_v12, %v3474_v24 }
0x273b   :  { %v3452_v63 = vpop.permute.xlu0 %3451 }
0x273c   :  { %v3454_v11 = vmul.f32 %v4659_v58, %v3452_v63 }
0x273e   :  { %3456 = vrot.lane.b32.xlu0 %v3454_v11, %s4698_s25  ;;  %v16_v11 = vstv %s5709_s10 }
0x273f   :  { %17 = vst [vmem:[#allocation3] sm:$0x1] %v16_v11 }
0x2744   :  { %v3479_v31 = vpop.permute.xlu1 %3478 }
0x2745   :  { %v3481_v7 = vmul.f32 %v4661_v12, %v3479_v31 }
0x2747   :  { %3483 = vrot.lane.b32.xlu1 %v3481_v7, %s4698_s25 }
0x27b0   :  { %v3457_v13 = vpop.permute.xlu0 %3456 }
0x27b1   :  { %v3459_v32 = vadd.f32 %v3457_v13, %v3449_v4 }
0x27b3   :  { %4662 = vtanh.f32 %v3459_v32  ;;  %v3658_v0 = vrot.slane %v3459_v32, 6  ;;  %v3879_v32 = vld [vmem:[#allocation3] ss:$0 sm:$0xff] }
0x27b9   :  { %v3484_v14 = vpop.permute.xlu1 %3483 }
0x27ba   :  { %v3486_v33 = vadd.f32 %v3484_v14, %v3476_v5 }
0x27bc   :  { %4664 = vtanh.f32 %v3486_v33  ;;  %v3685_v18 = vrot.slane %v3486_v33, 2 }
0x27c0   :  { %v4663_v9 = vpop.eup %4662 }
0x27c1   :  { %3462 = vrot.lane.b32.xlu0 %v4663_v9, %s4697_s4 }
0x27c9   :  { %v4665_v26 = vpop.eup %4664 }
0x27ca   :  { %3489 = vrot.lane.b32.xlu1 %v4665_v26, %s4697_s4 }
0x2833   :  { %v3463_v35 = vpop.permute.xlu0 %3462 }
0x2834   :  { %v3465_v37 = vmul.f32 %v4659_v58, %v3463_v35  ;;  %v3714_v58 = vld [vmem:[%s5708_s9] sm:$0xff] }
0x2836   :  { %v3494_v39 = vrot.slane %v3465_v37, 4 }
0x2838   :  { %3495 = vrot.lane.b32.xlu0 %v3494_v39, %s4698_s25 }
0x283c   :  { %v3490_v10 = vpop.permute.xlu1 %3489 }
0x283d   :  { %v3492_v40 = vmul.f32 %v4661_v12, %v3490_v10 }
0x283f   :  { %v3574_v41 = vrot.slane %v3492_v40, 2 }
0x2841   :  { %3575 = vrot.lane.b32.xlu1 %v3574_v41, %s4698_s25 }
0x28aa   :  { %v3496_v43 = vpop.permute.xlu0 %3495 }
0x28ab   :  { %4390 = vmatmul.mubr.msk.f32.vlgmr.msra.gmra.mxu1 %vm150_vm2, %v3496_v43 }
0x28ac   :  { %4419 = vmatprep.mubr.msk.f32.mxu1 %vm4696_vm0, %v4695_v3  ;;  %4404 = vmatpush3.msra.mxu1 %v3721_v22 }
0x28ad   :  { %4405 = vmatprep.subr.mxu1 %v4695_v3 }
0x28ae   :  { %4406 = vmatpush3.msra.mxu1 %v3720_v25 }
0x28af   :  { %4407 = vmatprep.subr.mxu1 %v4695_v3 }
0x28b0   :  { %4408 = vmatpush3.msra.mxu1 %v3719_v28 }
0x28b1   :  { %4409 = vmatprep.subr.mxu1 %v4695_v3 }
0x28b2   :  { %4410 = vmatpush3.msra.mxu1 %v3718_v29 }
0x28b3   :  { %v3576_v45 = vpop.permute.xlu1 %3575  ;;  %4411 = vmatprep.subr.mxu1 %v4695_v3 }
0x28b4   :  { %4401 = vmatmul.mubr.msk.f32.vlgmr.msra.gmra.mxu0 %vm150_vm2, %v3576_v45  ;;  %4412 = vmatpush3.msra.mxu1 %v3717_v30 }
0x28b5   :  { %4413 = vmatprep.subr.mxu1 %v4695_v3 }
0x28b6   :  { %4414 = vmatpush3.msra.mxu1 %v3716_v20 }
0x28b7   :  { %4415 = vmatprep.subr.mxu1 %v4695_v3 }
0x28b8   :  { %4416 = vmatpush3.msra.mxu1 %v3715_v56 }
0x28b9   :  { %4417 = vmatprep.subr.mxu1 %v4695_v3 }
0x28ba   :  { %4418 = vmatpush3.msra.mxu1 %v3714_v58 }
0x296b   :  { %v3565_v48 = vpop.f32.mrf.mxu1 }
0x296c   :  { %v3570_v50 = vrot.slane %v3565_v48, 2 }
0x296d   :  { %v4391_v52 = vpop.f32.mrf.mxu1 }
0x296e   :  { %v3572_v19 = vadd.f32 %v3570_v50, %v5378_v49 }
0x2970   :  { %4666 = vtanh.f32 %v3572_v19  ;;  %v3877_v27 = vmul.f32 -1.442695, %v3572_v19 }
0x2974   :  { %v3645_v16 = vpop.f32.mrf.mxu0 }
0x2975   :  { %v3649_v17 = vadd.f32 %v3645_v16, %v5376_v46 }
0x2976   :  { %v4402_v47 = vpop.f32.mrf.mxu0 }
0x2977   :  { %4668 = vtanh.f32 %v3649_v17  ;;  %v3878_v53 = vmul.f32 -1.442695, %v3649_v17 }
0x2978   :  { %4670 = vpow2.f32 %v3877_v27 }
0x2979   :  { %4672 = vpow2.f32 %v3878_v53 }
0x297d   :  { %v4667_v38 = vpop.eup %4666 }
0x297e   :  { %3662 = vrot.lane.b32.xlu1 %v4667_v38, %s4697_s4 }
0x2984   :  { %v4669_v51 = vpop.eup %4668 }
0x2985   :  { %3689 = vrot.lane.b32.xlu0 %v4669_v51, %s4697_s4  ;;  %v4671_v55 = vpop.eup %4670 }
0x2986   :  { %v3653_v60 = vadd.f32 1.0, %v4671_v55  ;;  %v4673_v36 = vpop.eup %4672 }
0x2987   :  { %v3680_v49 = vadd.f32 1.0, %v4673_v36 }
0x2988   :  { %4674 = vrcp.f32 %v3653_v60 }
0x2989   :  { %4676 = vrcp.f32 %v3680_v49 }
0x2995   :  { %v4675_v57 = vpop.eup %4674 }
0x2996   :  { %v4677_v59 = vpop.eup %4676  ;;  %v3660_v1 = vmul.f32 %v4675_v57, %v3658_v0 }
0x2997   :  { %v3687_v34 = vmul.f32 %v4677_v59, %v3685_v18 }
0x29f0   :  { %v3663_v46 = vpop.permute.xlu1 %3662 }
0x29f1   :  { %v3665_v23 = vmul.f32 %v4675_v57, %v3663_v46 }
0x29f3   :  { %3667 = vrot.lane.b32.xlu1 %v3665_v23, %s4698_s25 }
0x29f7   :  { %v3690_v61 = vpop.permute.xlu0 %3689 }
0x29f8   :  { %v3692_v62 = vmul.f32 %v4677_v59, %v3690_v61 }
0x29fa   :  { %3694 = vrot.lane.b32.xlu0 %v3692_v62, %s4698_s25 }
0x2a65   :  { %v3668_v8 = vpop.permute.xlu1 %3667 }
0x2a66   :  { %v3670_v15 = vadd.f32 %v3668_v8, %v3660_v1 }
0x2a68   :  { %4678 = vtanh.f32 %v3670_v15 }
0x2a6c   :  { %v3695_v42 = vpop.permute.xlu0 %3694 }
0x2a6d   :  { %v3697_v21 = vadd.f32 %v3695_v42, %v3687_v34 }
0x2a6f   :  { %4680 = vtanh.f32 %v3697_v21 }
0x2a75   :  { %v4679_v54 = vpop.eup %4678 }
0x2a76   :  { %3673 = vrot.lane.b32.xlu1 %v4679_v54, %s4697_s4 }
0x2a7c   :  { %v4681_v6 = vpop.eup %4680 }
0x2a7d   :  { %3700 = vrot.lane.b32.xlu0 %v4681_v6, %s4697_s4 }
0x2ae8   :  { %v3674_v44 = vpop.permute.xlu1 %3673 }
0x2ae9   :  { %v3676_v63 = vmul.f32 %v4675_v57, %v3674_v44 }
0x2aeb   :  { %3705 = vrot.lane.b32.xlu0 %v3676_v63, %s4698_s25 }
0x2aef   :  { %v3701_v12 = vpop.permute.xlu0 %3700 }
0x2af0   :  { %v3703_v31 = vmul.f32 %v4677_v59, %v3701_v12 }
0x2af2   :  { %v3709_v7 = vrot.slane %v3703_v31, 2 }
0x2af4   :  { %3710 = vrot.lane.b32.xlu1 %v3709_v7, %s4697_s4 }
0x2b5d   :  { %v3706_v2 = vpop.permute.xlu0 %3705 }
0x2b66   :  { %v3711_v3 = vpop.permute.xlu1 %3710 }
0x2b67   :  { %v3713_v4 = vsel %vm150_vm2, %v3706_v2, %v3711_v3 }
0x2b68   :  { %v3730_v13 = vrot.slane %v3713_v4, 6 }
0x2b6a   :  { %4420 = vmatmul.mubr.msk.f32.vlgmr.msra.gmra.mxu1 %vm1933_vm11, %v3730_v13 }
0x2c2a   :  { %v3799_v24 = vpop.f32.mrf.mxu1 }
0x2c2b   :  { %v3800_v5 = vadd.f32 %v3879_v32, %v3799_v24 }
0x2c2c   :  { %v4421_v14 = vpop.f32.mrf.mxu1 }
0x2c2d   :  { %v3881_v33 = vmul.f32 -1.442695, %v3800_v5 }
0x2c2f   :  { %4682 = vpow2.f32 %v3881_v33 }
0x2c3c   :  { %v4683_v9 = vpop.eup %4682 }
0x2c3d   :  { %v3806_v26 = vadd.f32 1.0, %v4683_v9 }
0x2c3f   :  { %4684 = vrcp.f32 %v3806_v26 }
0x2c4c   :  { %v4685_v35 = vpop.eup %4684 }
0x2c4d   :  { %3810 = vst.msk [vmem:[%s5710_s11] sm:$0x3] %vm3809_vm12, %v4685_v35 }

</bundles_post_ra>
